<compile_context>
chip_gen: v7x
topology: tpu7x:2x2x1
jax: 0.10.0
libtpu: 0.0.40
codegen_flags: <defaults>
</compile_context>

<pallas_src>
import jax
import jax.numpy as jnp
from jax import lax
from jax.experimental import pallas as pl
from jax.experimental.pallas import tpu as pltpu

LN_EPS = 1e-5
TOP_K = 3
_IDX_LANE = 8          # lane offset of the bitcast int32 indices in the packed output slab
_PACK_W = 128          # lane-dense packed output width
_PAD_LOGIT = -1e30     # finite "minus infinity" for padded vocab columns


def _check_monotonicity_kernel(x_ref, wl_ref, bl_ref, g_ref, be_ref, wh_ref, bh_ref,
                               hid_ref, packed_ref,
                               ln_sc, md_sc, tv_sc, ti_sc):
    v = pl.program_id(1)
    nv = pl.num_programs(1)
    tile_v = wh_ref.shape[1]
    neg_inf = jnp.float32(-jnp.inf)
    int_max = jnp.iinfo(jnp.int32).max

    # ---- first vocab step of each row tile: monitored layer + final layer norm + state init ----
    @pl.when(v == 0)
    def _init():
        x = x_ref[...]                                          # [TT, H] f32
        y = x + jnp.dot(x.astype(jnp.bfloat16), wl_ref[...],
                        preferred_element_type=jnp.float32) + bl_ref[...]
        hid_ref[...] = y                                        # monitored-layer output
        mean = jnp.mean(y, axis=-1, keepdims=True)
        c = y - mean
        var = jnp.mean(c * c, axis=-1, keepdims=True)
        ln = c * lax.rsqrt(var + LN_EPS) * g_ref[...] + be_ref[...]
        ln_sc[...] = ln.astype(jnp.bfloat16)                    # bf16 MXU operand reused per vocab tile
        lane2 = lax.broadcasted_iota(jnp.int32, md_sc.shape, 1)
        md_sc[...] = jnp.where(lane2 == 0, neg_inf, 0.0)        # m = -inf, d = 0
        tv_sc[...] = jnp.full_like(tv_sc, neg_inf)              # running top-3 logit values
        ti_sc[...] = jnp.zeros_like(ti_sc)                      # running top-3 global indices

    # ---- lm_head tile: bf16 operands, f32 accumulation on the MXU ----
    logits = jnp.dot(ln_sc[...], wh_ref[...],
                     preferred_element_type=jnp.float32) + bh_ref[...]     # [TT, TV] f32

    # ---- online softmax statistics: single slab read/write of the (m, d) state ----
    tile_m = jnp.max(logits, axis=-1, keepdims=True)            # reused below as tile top-1
    md = md_sc[...]
    m_old = md[:, 0:1]
    d_old = md[:, 1:2]
    m_new = jnp.maximum(m_old, tile_m)
    d_new = d_old * jnp.exp(m_old - m_new) + \
        jnp.sum(jnp.exp(logits - m_new), axis=-1, keepdims=True)
    lane2 = lax.broadcasted_iota(jnp.int32, md_sc.shape, 1)
    md_sc[...] = jnp.where(lane2 == 0, m_new, d_new)

    # ---- running top-3 on raw logits (softmax is monotone -> same order). The whole scan is
    #      skipped when this vocab tile cannot improve any row's current third-best value. ----
    improve = jnp.max(tile_m - tv_sc[:, 2:3])                   # > 0 iff some row can improve

    @pl.when(improve > 0.0)
    def _topk_update():
        tv = tv_sc[...]                                         # one masked [TT, 3] load each
        ti = ti_sc[...]
        r0v, r1v, r2v = tv[:, 0:1], tv[:, 1:2], tv[:, 2:3]
        r0i, r1i, r2i = ti[:, 0:1], ti[:, 1:2], ti[:, 2:3]
        lidx = lax.broadcasted_iota(jnp.int32, logits.shape, 1) # tile-LOCAL lane indices
        base = v * tile_v
        p = logits
        vmax = tile_m                                           # k == 0: reuse the softmax max
        for k in range(TOP_K):
            if k > 0:
                vmax = jnp.max(p, axis=-1, keepdims=True)
            # lowest index achieving the max (matches lax.top_k / torch.topk tie order)
            cloc = jnp.min(jnp.where(p == vmax, lidx, int_max), axis=-1, keepdims=True)
            if k < TOP_K - 1:
                p = jnp.where(lidx == cloc, neg_inf, p)         # mask winner
            cidx = cloc + base                                  # [TT, 1] add only (not full-tile)
            # branch-free sorted insert; strict '>' keeps existing entries on ties
            # (existing entries always have a lower global index -> correct tie order).
            gt0 = vmax > r0v
            gt1 = vmax > r1v
            gt2 = vmax > r2v
            n0v = jnp.where(gt0, vmax, r0v)
            n0i = jnp.where(gt0, cidx, r0i)
            n1v = jnp.where(gt0, r0v, jnp.where(gt1, vmax, r1v))
            n1i = jnp.where(gt0, r0i, jnp.where(gt1, cidx, r1i))
            n2v = jnp.where(gt1, r1v, jnp.where(gt2, vmax, r2v))
            n2i = jnp.where(gt1, r1i, jnp.where(gt2, cidx, r2i))
            r0v, r1v, r2v, r0i, r1i, r2i = n0v, n1v, n2v, n0i, n1i, n2i
        lane3 = lax.broadcasted_iota(jnp.int32, tv_sc.shape, 1)
        tv_sc[...] = jnp.where(lane3 == 0, r0v, jnp.where(lane3 == 1, r1v, r2v))
        ti_sc[...] = jnp.where(lane3 == 0, r0i, jnp.where(lane3 == 1, r1i, r2i))

    # ---- last vocab step: probabilities of the 3 winners only, single lane-dense store ----
    @pl.when(v == nv - 1)
    def _finalize():
        md_f = md_sc[...]
        m_fin = md_f[:, 0:1]
        inv_d = 1.0 / md_f[:, 1:2]                              # exact division: [TT,1] once per tile
        tv = tv_sc[...]
        ti = ti_sc[...]
        lane = lax.broadcasted_iota(jnp.int32, packed_ref.shape, 1)
        out = jnp.zeros(packed_ref.shape, jnp.float32)
        for k in range(TOP_K):
            pv = jnp.exp(tv[:, k:k + 1] - m_fin) * inv_d        # softmax value of winner k
            out = jnp.where(lane == k, pv, out)
            out = jnp.where(lane == _IDX_LANE + k,
                            pltpu.bitcast(ti[:, k:k + 1], jnp.float32), out)
        packed_ref[...] = out                                   # one unmasked [TT, 128] store


def _round_up(n, m):
    return ((n + m - 1) // m) * m


def _chip_kind():
    try:
        kind = jax.devices()[0].device_kind.lower()
    except Exception:
        return "other"
    if "v5 lite" in kind or "v5e" in kind or "v5lite" in kind:
        return "v5e"
    if "v6" in kind:
        return "v6e"
    if "v7" in kind or "7x" in kind:
        return "v7x"
    return "other"


def _tile_plan(T, V, chip):
    # token tile: 128 fills v5e's 4x128 MXU; 256 matches the v6e/v7x 256-wide MXU M dimension.
    tgt_t = 128 if chip == "v5e" else 256
    tile_t = min(tgt_t, _round_up(T, 8))
    if chip == "v7x" and T >= 16:
        # keep >= 2 row tiles so both TensorCores get work on the 'parallel' axis
        tile_t = min(tile_t, max(8, _round_up(T // 2, 8)))
    T_pad = _round_up(T, tile_t)
    # vocab tile: 1024 on v6e (128 MiB VMEM), 512 on v5e (16 MiB scoped default) and v7x (64 MiB).
    tgt_v = 1024 if chip == "v6e" else 512
    tile_v = min(tgt_v, _round_up(V, 128))
    V_pad = _round_up(V, tile_v)
    return tile_t, T_pad, tile_v, V_pad


def _vmem_limit(chip):
    if chip == "v7x":
        return 56 * 1024 * 1024     # 64 MiB physical per TensorCore: leave headroom
    return 100 * 1024 * 1024        # v5e / v6e: 128 MiB physical, raise the scoped default


def check_monotonicity_forward(x, w_layer, b_layer, gamma, beta, w_head, b_head):
    """x: [T, H] f32.  Returns (layer_hidden [T,H] f32, top3_vals [T,3] f32, top3_idx [T,3] i32)."""
    T, H = x.shape
    V = w_head.shape[1]
    chip = _chip_kind()
    tile_t, T_pad, tile_v, V_pad = _tile_plan(T, V, chip)
    nt, nv = T_pad // tile_t, V_pad // tile_v

    # pad the token axis (zero rows, sliced off after) and the vocab axis (zero weight columns +
    # huge-negative bias -> padded logits never reach the top-3, exp() == 0 in the denominator).
    xp = x if T_pad == T else jnp.pad(x, ((0, T_pad - T), (0, 0)))
    whp = w_head if V_pad == V else jnp.pad(w_head, ((0, 0), (0, V_pad - V)))
    bhp = b_head if V_pad == V else jnp.pad(b_head, ((0, 0), (0, V_pad - V)),
                                            constant_values=_PAD_LOGIT)

    # bf16 weights at the boundary: halves HBM->VMEM DMA bytes, native MXU path.
    wl = w_layer.astype(jnp.bfloat16)
    wh = whp.astype(jnp.bfloat16)

    def run(single_buffer_resident):
        if single_buffer_resident:
            def resident(shape):
                # grid-invariant input: single-buffered (no point double-buffering a constant block)
                return pl.BlockSpec(shape, lambda t, v: (0, 0), pipeline_mode=pl.Buffered(1))
        else:
            def resident(shape):
                return pl.BlockSpec(shape, lambda t, v: (0, 0))
        return pl.pallas_call(
            _check_monotonicity_kernel,
            out_shape=(
                jax.ShapeDtypeStruct((T_pad, H), jnp.float32),
                jax.ShapeDtypeStruct((T_pad, _PACK_W), jnp.float32),
            ),
            grid_spec=pltpu.PrefetchScalarGridSpec(
                num_scalar_prefetch=0,
                grid=(nt, nv),
                in_specs=[
                    pl.BlockSpec((tile_t, H), lambda t, v: (t, 0)),    # x
                    resident((H, H)),                                  # layer weight (bf16)
                    resident((1, H)),                                  # layer bias
                    resident((1, H)),                                  # ln gamma
                    resident((1, H)),                                  # ln beta
                    pl.BlockSpec((H, tile_v), lambda t, v: (0, v)),    # lm_head weight tile (bf16)
                    pl.BlockSpec((1, tile_v), lambda t, v: (0, v)),    # lm_head bias tile
                ],
                out_specs=[
                    pl.BlockSpec((tile_t, H), lambda t, v: (t, 0)),        # layer hidden
                    pl.BlockSpec((tile_t, _PACK_W), lambda t, v: (t, 0)),  # packed top-3 slab
                ],
                scratch_shapes=[
                    pltpu.VMEM((tile_t, H), jnp.bfloat16),      # ln output (second matmul operand)
                    pltpu.VMEM((tile_t, 2), jnp.float32),       # running (softmax max, denominator)
                    pltpu.VMEM((tile_t, TOP_K), jnp.float32),   # running top-3 logit values
                    pltpu.VMEM((tile_t, TOP_K), jnp.int32),     # running top-3 global indices
                ],
            ),
            compiler_params=pltpu.CompilerParams(
                dimension_semantics=("parallel", "arbitrary"),
                vmem_limit_bytes=_vmem_limit(chip)),
        )(xp, wl, b_layer, gamma, beta, wh, bhp)

    try:
        hid, packed = run(True)
    except Exception:
        # pipeline_mode / Buffered(1) unsupported on this JAX/Mosaic: fall back to default buffering.
        hid, packed = run(False)

    topv = packed[:T, 0:TOP_K]
    topi = lax.bitcast_convert_type(packed[:T, _IDX_LANE:_IDX_LANE + TOP_K], jnp.int32)
    return hid[:T], topv, topi


def _reference(x, w_layer, b_layer, gamma, beta, w_head, b_head):
    # Mirrors the kernel's bf16 matmul operands / f32 accumulation.
    wl = w_layer.astype(jnp.bfloat16)
    wh = w_head.astype(jnp.bfloat16)
    y = x + jnp.dot(x.astype(jnp.bfloat16), wl,
                    preferred_element_type=jnp.float32) + b_layer
    mean = jnp.mean(y, axis=-1, keepdims=True)
    var = jnp.mean((y - mean) ** 2, axis=-1, keepdims=True)
    ln = (y - mean) * lax.rsqrt(var + LN_EPS) * gamma + beta
    logits = jnp.dot(ln.astype(jnp.bfloat16), wh,
                     preferred_element_type=jnp.float32) + b_head
    probs = jax.nn.softmax(logits, axis=-1)
    vals, idxs = lax.top_k(probs, TOP_K)
    return y, vals, idxs


if __name__ == "__main__":
    # small shapes consistent with the module: batch=2, seq=8, hidden=32, vocab=2000
    # (vocab deliberately NOT a multiple of 128 to exercise the padding + online-softmax path)
    B, S, H, V = 2, 8, 32, 2000
    T = B * S

    key = jax.random.PRNGKey(0)
    k1, k2, k3, k4, k5, k6, k7 = jax.random.split(key, 7)
    x = jax.random.normal(k1, (T, H), dtype=jnp.float32)
    w_layer = jax.random.normal(k2, (H, H), dtype=jnp.float32) * 0.1
    b_layer = jax.random.normal(k3, (1, H), dtype=jnp.float32) * 0.1
    gamma = 1.0 + 0.1 * jax.random.normal(k4, (1, H), dtype=jnp.float32)
    beta = 0.1 * jax.random.normal(k5, (1, H), dtype=jnp.float32)
    w_head = jax.random.normal(k6, (H, V), dtype=jnp.float32) * 0.2
    b_head = jax.random.normal(k7, (1, V), dtype=jnp.float32) * 0.1

    hid, topv, topi = check_monotonicity_forward(
        x, w_layer, b_layer, gamma, beta, w_head, b_head)
    jax.block_until_ready((hid, topv, topi))

    # sanity check against a pure-JAX reference
    hid_r, topv_r, topi_r = _reference(
        x, w_layer, b_layer, gamma, beta, w_head, b_head)
    assert jnp.allclose(hid, hid_r, atol=1e-4, rtol=1e-4)
    assert jnp.allclose(topv, topv_r, atol=1e-5, rtol=2e-3)
    assert jnp.array_equal(topi, topi_r.astype(jnp.int32))

    print("KERNEL_OK")
</pallas_src>

<mosaic_0001>
module attributes {stable_mosaic.version = 11 : i64} {
  func.func @_check_monotonicity_kernel(%arg0: i32, %arg1: i32, %arg2: memref<16x32xf32, #tpu.memory_space<vmem>>, %arg3: memref<32x32xbf16, #tpu.memory_space<vmem>>, %arg4: memref<1x32xf32, #tpu.memory_space<vmem>>, %arg5: memref<1x32xf32, #tpu.memory_space<vmem>>, %arg6: memref<1x32xf32, #tpu.memory_space<vmem>>, %arg7: memref<32x512xbf16, #tpu.memory_space<vmem>>, %arg8: memref<1x512xf32, #tpu.memory_space<vmem>>, %arg9: memref<16x32xf32, #tpu.memory_space<vmem>>, %arg10: memref<16x128xf32, #tpu.memory_space<vmem>>, %arg11: memref<16x32xbf16, #tpu.memory_space<vmem>>, %arg12: memref<16x2xf32, #tpu.memory_space<vmem>>, %arg13: memref<16x3xf32, #tpu.memory_space<vmem>>, %arg14: memref<16x3xi32, #tpu.memory_space<vmem>>) attributes {dimension_semantics = [#tpu.dimension_semantics<parallel>, #tpu.dimension_semantics<arbitrary>], iteration_bounds = array<i64: 1, 4>, scalar_prefetch = 0 : i64, scratch_operands = 4 : i64, tpu.core_type = #tpu.core_type<tc>, window_params = [{transform_indices = @transform_0, window_bounds = array<i64: 16, 32>}, {pipeline_mode = #tpu.pipeline_mode<synchronous>, transform_indices = @transform_1, window_bounds = array<i64: 32, 32>}, {pipeline_mode = #tpu.pipeline_mode<synchronous>, transform_indices = @transform_2, window_bounds = array<i64: 1, 32>}, {pipeline_mode = #tpu.pipeline_mode<synchronous>, transform_indices = @transform_3, window_bounds = array<i64: 1, 32>}, {pipeline_mode = #tpu.pipeline_mode<synchronous>, transform_indices = @transform_4, window_bounds = array<i64: 1, 32>}, {transform_indices = @transform_5, window_bounds = array<i64: 32, 512>}, {transform_indices = @transform_6, window_bounds = array<i64: 1, 512>}, {transform_indices = @transform_7, window_bounds = array<i64: 16, 32>}, {transform_indices = @transform_8, window_bounds = array<i64: 16, 128>}]} {
    %c0_i32 = arith.constant 0 : i32
    %0 = arith.cmpi eq, %arg1, %c0_i32 : i32
    %1 = arith.extui %0 : i1 to i32
    %cst = arith.constant 0xFF800000 : f32
    %c0_i32_0 = arith.constant 0 : i32
    %2 = arith.cmpi ne, %1, %c0_i32_0 : i32
    scf.if %2 {
      %c0_20 = arith.constant 0 : index
      %c0_21 = arith.constant 0 : index
      %45 = vector.load %arg2[%c0_20, %c0_21] : memref<16x32xf32, #tpu.memory_space<vmem>>, vector<16x32xf32>
      %46 = arith.truncf %45 : vector<16x32xf32> to vector<16x32xbf16>
      %c0_22 = arith.constant 0 : index
      %c0_23 = arith.constant 0 : index
      %47 = vector.load %arg3[%c0_22, %c0_23] : memref<32x32xbf16, #tpu.memory_space<vmem>>, vector<32x32xbf16>
      %cst_24 = arith.constant dense<0.000000e+00> : vector<16x32xf32>
      %48 = tpu.matmul %46, %47, %cst_24 {dimension_numbers = #tpu.dot_dimension_numbers<[1], [0], [0], [1], [0, 0, 1, 1], [], []>} : vector<16x32xbf16>, vector<32x32xbf16>, vector<16x32xf32> -> vector<16x32xf32>
      %49 = arith.addf %45, %48 : vector<16x32xf32>
      %c0_25 = arith.constant 0 : index
      %c0_26 = arith.constant 0 : index
      %50 = vector.load %arg4[%c0_25, %c0_26] : memref<1x32xf32, #tpu.memory_space<vmem>>, vector<1x32xf32>
      %51 = vector.broadcast %50 : vector<1x32xf32> to vector<16x32xf32>
      %52 = arith.addf %49, %51 : vector<16x32xf32>
      %c0_27 = arith.constant 0 : index
      %c0_28 = arith.constant 0 : index
      %53 = vector.load %arg9[%c0_27, %c0_28] : memref<16x32xf32, #tpu.memory_space<vmem>>, vector<16x32xf32>
      tpu.vector_store %arg9[%c0_27, %c0_28], %52 {strides = array<i32>} : memref<16x32xf32, #tpu.memory_space<vmem>>, vector<16x32xf32>,
      %cst_29 = arith.constant dense<0.000000e+00> : vector<16xf32>
      %54 = vector.multi_reduction <add>, %52, %cst_29 [1] : vector<16x32xf32> to vector<16xf32>
      %55 = vector.shape_cast %54 : vector<16xf32> to vector<16x1xf32>
      %cst_30 = arith.constant 3.200000e+01 : f32
      %56 = vector.broadcast %cst_30 : f32 to vector<16x1xf32>
      %57 = arith.divf %55, %56 : vector<16x1xf32>
      %58 = vector.broadcast %57 : vector<16x1xf32> to vector<16x32xf32>
      %59 = arith.subf %52, %58 : vector<16x32xf32>
      %60 = arith.mulf %59, %59 : vector<16x32xf32>
      %cst_31 = arith.constant dense<0.000000e+00> : vector<16xf32>
      %61 = vector.multi_reduction <add>, %60, %cst_31 [1] : vector<16x32xf32> to vector<16xf32>
      %62 = vector.shape_cast %61 : vector<16xf32> to vector<16x1xf32>
      %cst_32 = arith.constant 3.200000e+01 : f32
      %63 = vector.broadcast %cst_32 : f32 to vector<16x1xf32>
      %64 = arith.divf %62, %63 : vector<16x1xf32>
      %cst_33 = arith.constant 9.99999974E-6 : f32
      %65 = vector.broadcast %cst_33 : f32 to vector<16x1xf32>
      %66 = arith.addf %64, %65 : vector<16x1xf32>
      %67 = math.rsqrt %66 : vector<16x1xf32>
      %68 = vector.broadcast %67 : vector<16x1xf32> to vector<16x32xf32>
      %69 = arith.mulf %59, %68 : vector<16x32xf32>
      %c0_34 = arith.constant 0 : index
      %c0_35 = arith.constant 0 : index
      %70 = vector.load %arg5[%c0_34, %c0_35] : memref<1x32xf32, #tpu.memory_space<vmem>>, vector<1x32xf32>
      %71 = vector.broadcast %70 : vector<1x32xf32> to vector<16x32xf32>
      %72 = arith.mulf %69, %71 : vector<16x32xf32>
      %c0_36 = arith.constant 0 : index
      %c0_37 = arith.constant 0 : index
      %73 = vector.load %arg6[%c0_36, %c0_37] : memref<1x32xf32, #tpu.memory_space<vmem>>, vector<1x32xf32>
      %74 = vector.broadcast %73 : vector<1x32xf32> to vector<16x32xf32>
      %75 = arith.addf %72, %74 : vector<16x32xf32>
      %76 = arith.truncf %75 : vector<16x32xf32> to vector<16x32xbf16>
      %c0_38 = arith.constant 0 : index
      %c0_39 = arith.constant 0 : index
      %77 = vector.load %arg11[%c0_38, %c0_39] : memref<16x32xbf16, #tpu.memory_space<vmem>>, vector<16x32xbf16>
      tpu.vector_store %arg11[%c0_38, %c0_39], %76 {strides = array<i32>} : memref<16x32xbf16, #tpu.memory_space<vmem>>, vector<16x32xbf16>,
      %78 = tpu.iota {dimensions = array<i32: 1>} : vector<16x2xi32>
      %c0_i32_40 = arith.constant 0 : i32
      %79 = vector.broadcast %c0_i32_40 : i32 to vector<16x2xi32>
      %80 = arith.cmpi eq, %78, %79 : vector<16x2xi32>
      %cst_41 = arith.constant 0.000000e+00 : f32
      %81 = vector.broadcast %cst : f32 to vector<16x2xf32>
      %82 = vector.broadcast %cst_41 : f32 to vector<16x2xf32>
      %83 = arith.select %80, %81, %82 : vector<16x2xi1>, vector<16x2xf32>
      %c0_42 = arith.constant 0 : index
      %c0_43 = arith.constant 0 : index
      %84 = vector.load %arg12[%c0_42, %c0_43] : memref<16x2xf32, #tpu.memory_space<vmem>>, vector<16x2xf32>
      tpu.vector_store %arg12[%c0_42, %c0_43], %83 {strides = array<i32>} : memref<16x2xf32, #tpu.memory_space<vmem>>, vector<16x2xf32>,
      %85 = vector.broadcast %cst : f32 to vector<16x3xf32>
      %c0_44 = arith.constant 0 : index
      %c0_45 = arith.constant 0 : index
      %86 = vector.load %arg13[%c0_44, %c0_45] : memref<16x3xf32, #tpu.memory_space<vmem>>, vector<16x3xf32>
      tpu.vector_store %arg13[%c0_44, %c0_45], %85 {strides = array<i32>} : memref<16x3xf32, #tpu.memory_space<vmem>>, vector<16x3xf32>,
      %c0_i32_46 = arith.constant 0 : i32
      %87 = vector.broadcast %c0_i32_46 : i32 to vector<16x3xi32>
      %c0_47 = arith.constant 0 : index
      %c0_48 = arith.constant 0 : index
      %88 = vector.load %arg14[%c0_47, %c0_48] : memref<16x3xi32, #tpu.memory_space<vmem>>, vector<16x3xi32>
      tpu.vector_store %arg14[%c0_47, %c0_48], %87 {strides = array<i32>} : memref<16x3xi32, #tpu.memory_space<vmem>>, vector<16x3xi32>,
    } else {
    }
    %c0 = arith.constant 0 : index
    %c0_1 = arith.constant 0 : index
    %3 = vector.load %arg11[%c0, %c0_1] : memref<16x32xbf16, #tpu.memory_space<vmem>>, vector<16x32xbf16>
    %c0_2 = arith.constant 0 : index
    %c0_3 = arith.constant 0 : index
    %4 = vector.load %arg7[%c0_2, %c0_3] : memref<32x512xbf16, #tpu.memory_space<vmem>>, vector<32x512xbf16>
    %cst_4 = arith.constant dense<0.000000e+00> : vector<16x512xf32>
    %5 = tpu.matmul %3, %4, %cst_4 {dimension_numbers = #tpu.dot_dimension_numbers<[1], [0], [0], [1], [0, 0, 1, 1], [], []>} : vector<16x32xbf16>, vector<32x512xbf16>, vector<16x512xf32> -> vector<16x512xf32>
    %c0_5 = arith.constant 0 : index
    %c0_6 = arith.constant 0 : index
    %6 = vector.load %arg8[%c0_5, %c0_6] : memref<1x512xf32, #tpu.memory_space<vmem>>, vector<1x512xf32>
    %7 = vector.broadcast %6 : vector<1x512xf32> to vector<16x512xf32>
    %8 = arith.addf %5, %7 : vector<16x512xf32>
    %cst_7 = arith.constant dense<0xFF800000> : vector<16xf32>
    %9 = vector.multi_reduction <maximumf>, %8, %cst_7 [1] : vector<16x512xf32> to vector<16xf32>
    %10 = vector.shape_cast %9 : vector<16xf32> to vector<16x1xf32>
    %c0_8 = arith.constant 0 : index
    %c0_9 = arith.constant 0 : index
    %11 = vector.load %arg12[%c0_8, %c0_9] : memref<16x2xf32, #tpu.memory_space<vmem>>, vector<16x2xf32>
    %12 = vector.extract_strided_slice %11 {offsets = [0, 0], sizes = [16, 1], strides = [1, 1]} : vector<16x2xf32> to vector<16x1xf32>
    %13 = vector.extract_strided_slice %11 {offsets = [0, 1], sizes = [16, 1], strides = [1, 1]} : vector<16x2xf32> to vector<16x1xf32>
    %14 = arith.maximumf %12, %10 : vector<16x1xf32>
    %15 = arith.subf %12, %14 : vector<16x1xf32>
    %16 = math.exp %15 : vector<16x1xf32>
    %17 = arith.mulf %13, %16 : vector<16x1xf32>
    %18 = vector.broadcast %14 : vector<16x1xf32> to vector<16x512xf32>
    %19 = arith.subf %8, %18 : vector<16x512xf32>
    %20 = math.exp %19 : vector<16x512xf32>
    %cst_10 = arith.constant dense<0.000000e+00> : vector<16xf32>
    %21 = vector.multi_reduction <add>, %20, %cst_10 [1] : vector<16x512xf32> to vector<16xf32>
    %22 = vector.shape_cast %21 : vector<16xf32> to vector<16x1xf32>
    %23 = arith.addf %17, %22 : vector<16x1xf32>
    %24 = tpu.iota {dimensions = array<i32: 1>} : vector<16x2xi32>
    %c0_i32_11 = arith.constant 0 : i32
    %25 = vector.broadcast %c0_i32_11 : i32 to vector<16x2xi32>
    %26 = arith.cmpi eq, %24, %25 : vector<16x2xi32>
    %27 = vector.shape_cast %14 : vector<16x1xf32> to vector<16x1xf32>
    %28 = vector.broadcast %27 : vector<16x1xf32> to vector<16x2xf32>
    %29 = vector.shape_cast %23 : vector<16x1xf32> to vector<16x1xf32>
    %30 = vector.broadcast %29 : vector<16x1xf32> to vector<16x2xf32>
    %31 = arith.select %26, %28, %30 : vector<16x2xi1>, vector<16x2xf32>
    %c0_12 = arith.constant 0 : index
    %c0_13 = arith.constant 0 : index
    %32 = vector.load %arg12[%c0_12, %c0_13] : memref<16x2xf32, #tpu.memory_space<vmem>>, vector<16x2xf32>
    tpu.vector_store %arg12[%c0_12, %c0_13], %31 {strides = array<i32>} : memref<16x2xf32, #tpu.memory_space<vmem>>, vector<16x2xf32>,
    %c0_14 = arith.constant 0 : index
    %c2 = arith.constant 2 : index
    %33 = vector.load %arg13[%c0_14, %c2] : memref<16x3xf32, #tpu.memory_space<vmem>>, vector<16x1xf32>
    %34 = arith.subf %10, %33 : vector<16x1xf32>
    %35 = vector.shape_cast %34 : vector<16x1xf32> to vector<1x16x1xf32>
    %cst_15 = arith.constant dense<0xFF800000> : vector<1xf32>
    %36 = vector.multi_reduction <maximumf>, %35, %cst_15 [1, 2] : vector<1x16x1xf32> to vector<1xf32>
    %37 = vector.shape_cast %36 : vector<1xf32> to vector<1x1x1xf32>
    %38 = vector.extract %37[0, 0, 0] : f32 from vector<1x1x1xf32>
    %cst_16 = arith.constant 0.000000e+00 : f32
    %39 = arith.cmpf ogt, %38, %cst_16 : f32
    %40 = arith.extui %39 : i1 to i32
    %cst_17 = arith.constant 0xFF800000 : f32
    %c0_i32_18 = arith.constant 0 : i32
    %41 = arith.cmpi ne, %40, %c0_i32_18 : i32
    scf.if %41 {
      %c0_20 = arith.constant 0 : index
      %c0_21 = arith.constant 0 : index
      %45 = vector.load %arg13[%c0_20, %c0_21] : memref<16x3xf32, #tpu.memory_space<vmem>>, vector<16x3xf32>
      %c0_22 = arith.constant 0 : index
      %c0_23 = arith.constant 0 : index
      %46 = vector.load %arg14[%c0_22, %c0_23] : memref<16x3xi32, #tpu.memory_space<vmem>>, vector<16x3xi32>
      %47 = vector.extract_strided_slice %45 {offsets = [0, 0], sizes = [16, 1], strides = [1, 1]} : vector<16x3xf32> to vector<16x1xf32>
      %48 = vector.extract_strided_slice %45 {offsets = [0, 1], sizes = [16, 1], strides = [1, 1]} : vector<16x3xf32> to vector<16x1xf32>
      %49 = vector.extract_strided_slice %45 {offsets = [0, 2], sizes = [16, 1], strides = [1, 1]} : vector<16x3xf32> to vector<16x1xf32>
      %50 = vector.extract_strided_slice %46 {offsets = [0, 0], sizes = [16, 1], strides = [1, 1]} : vector<16x3xi32> to vector<16x1xi32>
      %51 = vector.extract_strided_slice %46 {offsets = [0, 1], sizes = [16, 1], strides = [1, 1]} : vector<16x3xi32> to vector<16x1xi32>
      %52 = vector.extract_strided_slice %46 {offsets = [0, 2], sizes = [16, 1], strides = [1, 1]} : vector<16x3xi32> to vector<16x1xi32>
      %53 = tpu.iota {dimensions = array<i32: 1>} : vector<16x512xi32>
      %c512_i32 = arith.constant 512 : i32
      %54 = arith.muli %arg1, %c512_i32 : i32
      %55 = vector.broadcast %10 : vector<16x1xf32> to vector<16x512xf32>
      %56 = arith.cmpf oeq, %8, %55 : vector<16x512xf32>
      %c2147483647_i32 = arith.constant 2147483647 : i32
      %57 = vector.broadcast %c2147483647_i32 : i32 to vector<16x512xi32>
      %58 = arith.select %56, %53, %57 : vector<16x512xi1>, vector<16x512xi32>
      %cst_24 = arith.constant dense<2147483647> : vector<16xi32>
      %59 = vector.multi_reduction <minsi>, %58, %cst_24 [1] : vector<16x512xi32> to vector<16xi32>
      %60 = vector.shape_cast %59 : vector<16xi32> to vector<16x1xi32>
      %61 = vector.broadcast %60 : vector<16x1xi32> to vector<16x512xi32>
      %62 = arith.cmpi eq, %53, %61 : vector<16x512xi32>
      %63 = vector.broadcast %cst_17 : f32 to vector<16x512xf32>
      %64 = arith.select %62, %63, %8 : vector<16x512xi1>, vector<16x512xf32>
      %65 = vector.broadcast %54 : i32 to vector<16x1xi32>
      %66 = arith.addi %60, %65 : vector<16x1xi32>
      %67 = arith.cmpf ogt, %10, %47 : vector<16x1xf32>
      %68 = arith.cmpf ogt, %10, %48 : vector<16x1xf32>
      %69 = arith.cmpf ogt, %10, %49 : vector<16x1xf32>
      %70 = arith.select %67, %10, %47 : vector<16x1xi1>, vector<16x1xf32>
      %71 = arith.select %67, %66, %50 : vector<16x1xi1>, vector<16x1xi32>
      %72 = arith.select %68, %10, %48 : vector<16x1xi1>, vector<16x1xf32>
      %73 = arith.select %67, %47, %72 : vector<16x1xi1>, vector<16x1xf32>
      %74 = arith.select %68, %66, %51 : vector<16x1xi1>, vector<16x1xi32>
      %75 = arith.select %67, %50, %74 : vector<16x1xi1>, vector<16x1xi32>
      %76 = arith.select %69, %10, %49 : vector<16x1xi1>, vector<16x1xf32>
      %77 = arith.select %68, %48, %76 : vector<16x1xi1>, vector<16x1xf32>
      %78 = arith.select %69, %66, %52 : vector<16x1xi1>, vector<16x1xi32>
      %79 = arith.select %68, %51, %78 : vector<16x1xi1>, vector<16x1xi32>
      %cst_25 = arith.constant dense<0xFF800000> : vector<16xf32>
      %80 = vector.multi_reduction <maximumf>, %64, %cst_25 [1] : vector<16x512xf32> to vector<16xf32>
      %81 = vector.shape_cast %80 : vector<16xf32> to vector<16x1xf32>
      %82 = vector.broadcast %81 : vector<16x1xf32> to vector<16x512xf32>
      %83 = arith.cmpf oeq, %64, %82 : vector<16x512xf32>
      %c2147483647_i32_26 = arith.constant 2147483647 : i32
      %84 = vector.broadcast %c2147483647_i32_26 : i32 to vector<16x512xi32>
      %85 = arith.select %83, %53, %84 : vector<16x512xi1>, vector<16x512xi32>
      %cst_27 = arith.constant dense<2147483647> : vector<16xi32>
      %86 = vector.multi_reduction <minsi>, %85, %cst_27 [1] : vector<16x512xi32> to vector<16xi32>
      %87 = vector.shape_cast %86 : vector<16xi32> to vector<16x1xi32>
      %88 = vector.broadcast %87 : vector<16x1xi32> to vector<16x512xi32>
      %89 = arith.cmpi eq, %53, %88 : vector<16x512xi32>
      %90 = vector.broadcast %cst_17 : f32 to vector<16x512xf32>
      %91 = arith.select %89, %90, %64 : vector<16x512xi1>, vector<16x512xf32>
      %92 = vector.broadcast %54 : i32 to vector<16x1xi32>
      %93 = arith.addi %87, %92 : vector<16x1xi32>
      %94 = arith.cmpf ogt, %81, %70 : vector<16x1xf32>
      %95 = arith.cmpf ogt, %81, %73 : vector<16x1xf32>
      %96 = arith.cmpf ogt, %81, %77 : vector<16x1xf32>
      %97 = arith.select %94, %81, %70 : vector<16x1xi1>, vector<16x1xf32>
      %98 = arith.select %94, %93, %71 : vector<16x1xi1>, vector<16x1xi32>
      %99 = arith.select %95, %81, %73 : vector<16x1xi1>, vector<16x1xf32>
      %100 = arith.select %94, %70, %99 : vector<16x1xi1>, vector<16x1xf32>
      %101 = arith.select %95, %93, %75 : vector<16x1xi1>, vector<16x1xi32>
      %102 = arith.select %94, %71, %101 : vector<16x1xi1>, vector<16x1xi32>
      %103 = arith.select %96, %81, %77 : vector<16x1xi1>, vector<16x1xf32>
      %104 = arith.select %95, %73, %103 : vector<16x1xi1>, vector<16x1xf32>
      %105 = arith.select %96, %93, %79 : vector<16x1xi1>, vector<16x1xi32>
      %106 = arith.select %95, %75, %105 : vector<16x1xi1>, vector<16x1xi32>
      %cst_28 = arith.constant dense<0xFF800000> : vector<16xf32>
      %107 = vector.multi_reduction <maximumf>, %91, %cst_28 [1] : vector<16x512xf32> to vector<16xf32>
      %108 = vector.shape_cast %107 : vector<16xf32> to vector<16x1xf32>
      %109 = vector.broadcast %108 : vector<16x1xf32> to vector<16x512xf32>
      %110 = arith.cmpf oeq, %91, %109 : vector<16x512xf32>
      %c2147483647_i32_29 = arith.constant 2147483647 : i32
      %111 = vector.broadcast %c2147483647_i32_29 : i32 to vector<16x512xi32>
      %112 = arith.select %110, %53, %111 : vector<16x512xi1>, vector<16x512xi32>
      %cst_30 = arith.constant dense<2147483647> : vector<16xi32>
      %113 = vector.multi_reduction <minsi>, %112, %cst_30 [1] : vector<16x512xi32> to vector<16xi32>
      %114 = vector.shape_cast %113 : vector<16xi32> to vector<16x1xi32>
      %115 = vector.broadcast %54 : i32 to vector<16x1xi32>
      %116 = arith.addi %114, %115 : vector<16x1xi32>
      %117 = arith.cmpf ogt, %108, %97 : vector<16x1xf32>
      %118 = arith.cmpf ogt, %108, %100 : vector<16x1xf32>
      %119 = arith.cmpf ogt, %108, %104 : vector<16x1xf32>
      %120 = arith.select %117, %108, %97 : vector<16x1xi1>, vector<16x1xf32>
      %121 = arith.select %117, %116, %98 : vector<16x1xi1>, vector<16x1xi32>
      %122 = arith.select %118, %108, %100 : vector<16x1xi1>, vector<16x1xf32>
      %123 = arith.select %117, %97, %122 : vector<16x1xi1>, vector<16x1xf32>
      %124 = arith.select %118, %116, %102 : vector<16x1xi1>, vector<16x1xi32>
      %125 = arith.select %117, %98, %124 : vector<16x1xi1>, vector<16x1xi32>
      %126 = arith.select %119, %108, %104 : vector<16x1xi1>, vector<16x1xf32>
      %127 = arith.select %118, %100, %126 : vector<16x1xi1>, vector<16x1xf32>
      %128 = arith.select %119, %116, %106 : vector<16x1xi1>, vector<16x1xi32>
      %129 = arith.select %118, %102, %128 : vector<16x1xi1>, vector<16x1xi32>
      %130 = tpu.iota {dimensions = array<i32: 1>} : vector<16x3xi32>
      %c0_i32_31 = arith.constant 0 : i32
      %131 = vector.broadcast %c0_i32_31 : i32 to vector<16x3xi32>
      %132 = arith.cmpi eq, %130, %131 : vector<16x3xi32>
      %c1_i32 = arith.constant 1 : i32
      %133 = vector.broadcast %c1_i32 : i32 to vector<16x3xi32>
      %134 = arith.cmpi eq, %130, %133 : vector<16x3xi32>
      %135 = vector.shape_cast %123 : vector<16x1xf32> to vector<16x1xf32>
      %136 = vector.broadcast %135 : vector<16x1xf32> to vector<16x3xf32>
      %137 = vector.shape_cast %127 : vector<16x1xf32> to vector<16x1xf32>
      %138 = vector.broadcast %137 : vector<16x1xf32> to vector<16x3xf32>
      %139 = arith.select %134, %136, %138 : vector<16x3xi1>, vector<16x3xf32>
      %140 = vector.shape_cast %120 : vector<16x1xf32> to vector<16x1xf32>
      %141 = vector.broadcast %140 : vector<16x1xf32> to vector<16x3xf32>
      %142 = arith.select %132, %141, %139 : vector<16x3xi1>, vector<16x3xf32>
      %c0_32 = arith.constant 0 : index
      %c0_33 = arith.constant 0 : index
      %143 = vector.load %arg13[%c0_32, %c0_33] : memref<16x3xf32, #tpu.memory_space<vmem>>, vector<16x3xf32>
      tpu.vector_store %arg13[%c0_32, %c0_33], %142 {strides = array<i32>} : memref<16x3xf32, #tpu.memory_space<vmem>>, vector<16x3xf32>,
      %c0_i32_34 = arith.constant 0 : i32
      %144 = vector.broadcast %c0_i32_34 : i32 to vector<16x3xi32>
      %145 = arith.cmpi eq, %130, %144 : vector<16x3xi32>
      %c1_i32_35 = arith.constant 1 : i32
      %146 = vector.broadcast %c1_i32_35 : i32 to vector<16x3xi32>
      %147 = arith.cmpi eq, %130, %146 : vector<16x3xi32>
      %148 = vector.shape_cast %125 : vector<16x1xi32> to vector<16x1xi32>
      %149 = vector.broadcast %148 : vector<16x1xi32> to vector<16x3xi32>
      %150 = vector.shape_cast %129 : vector<16x1xi32> to vector<16x1xi32>
      %151 = vector.broadcast %150 : vector<16x1xi32> to vector<16x3xi32>
      %152 = arith.select %147, %149, %151 : vector<16x3xi1>, vector<16x3xi32>
      %153 = vector.shape_cast %121 : vector<16x1xi32> to vector<16x1xi32>
      %154 = vector.broadcast %153 : vector<16x1xi32> to vector<16x3xi32>
      %155 = arith.select %145, %154, %152 : vector<16x3xi1>, vector<16x3xi32>
      %c0_36 = arith.constant 0 : index
      %c0_37 = arith.constant 0 : index
      %156 = vector.load %arg14[%c0_36, %c0_37] : memref<16x3xi32, #tpu.memory_space<vmem>>, vector<16x3xi32>
      tpu.vector_store %arg14[%c0_36, %c0_37], %155 {strides = array<i32>} : memref<16x3xi32, #tpu.memory_space<vmem>>, vector<16x3xi32>,
    } else {
    }
    %c3_i32 = arith.constant 3 : i32
    %42 = arith.cmpi eq, %arg1, %c3_i32 : i32
    %43 = arith.extui %42 : i1 to i32
    %c0_i32_19 = arith.constant 0 : i32
    %44 = arith.cmpi ne, %43, %c0_i32_19 : i32
    scf.if %44 {
      %c0_20 = arith.constant 0 : index
      %c0_21 = arith.constant 0 : index
      %45 = vector.load %arg12[%c0_20, %c0_21] : memref<16x2xf32, #tpu.memory_space<vmem>>, vector<16x2xf32>
      %46 = vector.extract_strided_slice %45 {offsets = [0, 0], sizes = [16, 1], strides = [1, 1]} : vector<16x2xf32> to vector<16x1xf32>
      %47 = vector.extract_strided_slice %45 {offsets = [0, 1], sizes = [16, 1], strides = [1, 1]} : vector<16x2xf32> to vector<16x1xf32>
      %cst_22 = arith.constant 1.000000e+00 : f32
      %48 = vector.broadcast %cst_22 : f32 to vector<16x1xf32>
      %49 = arith.divf %48, %47 : vector<16x1xf32>
      %c0_23 = arith.constant 0 : index
      %c0_24 = arith.constant 0 : index
      %50 = vector.load %arg13[%c0_23, %c0_24] : memref<16x3xf32, #tpu.memory_space<vmem>>, vector<16x3xf32>
      %c0_25 = arith.constant 0 : index
      %c0_26 = arith.constant 0 : index
      %51 = vector.load %arg14[%c0_25, %c0_26] : memref<16x3xi32, #tpu.memory_space<vmem>>, vector<16x3xi32>
      %52 = tpu.iota {dimensions = array<i32: 1>} : vector<16x128xi32>
      %cst_27 = arith.constant 0.000000e+00 : f32
      %53 = vector.broadcast %cst_27 : f32 to vector<16x128xf32>
      %54 = vector.extract_strided_slice %50 {offsets = [0, 0], sizes = [16, 1], strides = [1, 1]} : vector<16x3xf32> to vector<16x1xf32>
      %55 = arith.subf %54, %46 : vector<16x1xf32>
      %56 = math.exp %55 : vector<16x1xf32>
      %57 = arith.mulf %56, %49 : vector<16x1xf32>
      %c0_i32_28 = arith.constant 0 : i32
      %58 = vector.broadcast %c0_i32_28 : i32 to vector<16x128xi32>
      %59 = arith.cmpi eq, %52, %58 : vector<16x128xi32>
      %60 = vector.shape_cast %57 : vector<16x1xf32> to vector<16x1xf32>
      %61 = vector.broadcast %60 : vector<16x1xf32> to vector<16x128xf32>
      %62 = arith.select %59, %61, %53 : vector<16x128xi1>, vector<16x128xf32>
      %c8_i32 = arith.constant 8 : i32
      %63 = vector.broadcast %c8_i32 : i32 to vector<16x128xi32>
      %64 = arith.cmpi eq, %52, %63 : vector<16x128xi32>
      %65 = vector.extract_strided_slice %51 {offsets = [0, 0], sizes = [16, 1], strides = [1, 1]} : vector<16x3xi32> to vector<16x1xi32>
      %66 = tpu.bitcast %65 : vector<16x1xi32> -> vector<16x1xf32>
      %67 = vector.shape_cast %66 : vector<16x1xf32> to vector<16x1xf32>
      %68 = vector.broadcast %67 : vector<16x1xf32> to vector<16x128xf32>
      %69 = arith.select %64, %68, %62 : vector<16x128xi1>, vector<16x128xf32>
      %70 = vector.extract_strided_slice %50 {offsets = [0, 1], sizes = [16, 1], strides = [1, 1]} : vector<16x3xf32> to vector<16x1xf32>
      %71 = arith.subf %70, %46 : vector<16x1xf32>
      %72 = math.exp %71 : vector<16x1xf32>
      %73 = arith.mulf %72, %49 : vector<16x1xf32>
      %c1_i32 = arith.constant 1 : i32
      %74 = vector.broadcast %c1_i32 : i32 to vector<16x128xi32>
      %75 = arith.cmpi eq, %52, %74 : vector<16x128xi32>
      %76 = vector.shape_cast %73 : vector<16x1xf32> to vector<16x1xf32>
      %77 = vector.broadcast %76 : vector<16x1xf32> to vector<16x128xf32>
      %78 = arith.select %75, %77, %69 : vector<16x128xi1>, vector<16x128xf32>
      %c9_i32 = arith.constant 9 : i32
      %79 = vector.broadcast %c9_i32 : i32 to vector<16x128xi32>
      %80 = arith.cmpi eq, %52, %79 : vector<16x128xi32>
      %81 = vector.extract_strided_slice %51 {offsets = [0, 1], sizes = [16, 1], strides = [1, 1]} : vector<16x3xi32> to vector<16x1xi32>
      %82 = tpu.bitcast %81 : vector<16x1xi32> -> vector<16x1xf32>
      %83 = vector.shape_cast %82 : vector<16x1xf32> to vector<16x1xf32>
      %84 = vector.broadcast %83 : vector<16x1xf32> to vector<16x128xf32>
      %85 = arith.select %80, %84, %78 : vector<16x128xi1>, vector<16x128xf32>
      %86 = vector.extract_strided_slice %50 {offsets = [0, 2], sizes = [16, 1], strides = [1, 1]} : vector<16x3xf32> to vector<16x1xf32>
      %87 = arith.subf %86, %46 : vector<16x1xf32>
      %88 = math.exp %87 : vector<16x1xf32>
      %89 = arith.mulf %88, %49 : vector<16x1xf32>
      %c2_i32 = arith.constant 2 : i32
      %90 = vector.broadcast %c2_i32 : i32 to vector<16x128xi32>
      %91 = arith.cmpi eq, %52, %90 : vector<16x128xi32>
      %92 = vector.shape_cast %89 : vector<16x1xf32> to vector<16x1xf32>
      %93 = vector.broadcast %92 : vector<16x1xf32> to vector<16x128xf32>
      %94 = arith.select %91, %93, %85 : vector<16x128xi1>, vector<16x128xf32>
      %c10_i32 = arith.constant 10 : i32
      %95 = vector.broadcast %c10_i32 : i32 to vector<16x128xi32>
      %96 = arith.cmpi eq, %52, %95 : vector<16x128xi32>
      %97 = vector.extract_strided_slice %51 {offsets = [0, 2], sizes = [16, 1], strides = [1, 1]} : vector<16x3xi32> to vector<16x1xi32>
      %98 = tpu.bitcast %97 : vector<16x1xi32> -> vector<16x1xf32>
      %99 = vector.shape_cast %98 : vector<16x1xf32> to vector<16x1xf32>
      %100 = vector.broadcast %99 : vector<16x1xf32> to vector<16x128xf32>
      %101 = arith.select %96, %100, %94 : vector<16x128xi1>, vector<16x128xf32>
      %c0_29 = arith.constant 0 : index
      %c0_30 = arith.constant 0 : index
      %102 = vector.load %arg10[%c0_29, %c0_30] : memref<16x128xf32, #tpu.memory_space<vmem>>, vector<16x128xf32>
      tpu.vector_store %arg10[%c0_29, %c0_30], %101 {strides = array<i32>} : memref<16x128xf32, #tpu.memory_space<vmem>>, vector<16x128xf32>,
    } else {
    }
    return
  }
  func.func @transform_0(%arg0: i32, %arg1: i32) -> (i32, i32) {
    %c0_i32 = arith.constant 0 : i32
    %c0_i32_0 = arith.constant 0 : i32
    return %arg0, %c0_i32 : i32, i32
  }
  func.func @transform_1(%arg0: i32, %arg1: i32) -> (i32, i32) {
    %c0_i32 = arith.constant 0 : i32
    %c0_i32_0 = arith.constant 0 : i32
    %c0_i32_1 = arith.constant 0 : i32
    return %c0_i32, %c0_i32_0 : i32, i32
  }
  func.func @transform_2(%arg0: i32, %arg1: i32) -> (i32, i32) {
    %c0_i32 = arith.constant 0 : i32
    %c0_i32_0 = arith.constant 0 : i32
    %c0_i32_1 = arith.constant 0 : i32
    return %c0_i32, %c0_i32_0 : i32, i32
  }
  func.func @transform_3(%arg0: i32, %arg1: i32) -> (i32, i32) {
    %c0_i32 = arith.constant 0 : i32
    %c0_i32_0 = arith.constant 0 : i32
    %c0_i32_1 = arith.constant 0 : i32
    return %c0_i32, %c0_i32_0 : i32, i32
  }
  func.func @transform_4(%arg0: i32, %arg1: i32) -> (i32, i32) {
    %c0_i32 = arith.constant 0 : i32
    %c0_i32_0 = arith.constant 0 : i32
    %c0_i32_1 = arith.constant 0 : i32
    return %c0_i32, %c0_i32_0 : i32, i32
  }
  func.func @transform_5(%arg0: i32, %arg1: i32) -> (i32, i32) {
    %c0_i32 = arith.constant 0 : i32
    %c0_i32_0 = arith.constant 0 : i32
    return %c0_i32, %arg1 : i32, i32
  }
  func.func @transform_6(%arg0: i32, %arg1: i32) -> (i32, i32) {
    %c0_i32 = arith.constant 0 : i32
    %c0_i32_0 = arith.constant 0 : i32
    return %c0_i32, %arg1 : i32, i32
  }
  func.func @transform_7(%arg0: i32, %arg1: i32) -> (i32, i32) {
    %c0_i32 = arith.constant 0 : i32
    %c0_i32_0 = arith.constant 0 : i32
    return %arg0, %c0_i32 : i32, i32
  }
  func.func @transform_8(%arg0: i32, %arg1: i32) -> (i32, i32) {
    %c0_i32 = arith.constant 0 : i32
    %c0_i32_0 = arith.constant 0 : i32
    return %arg0, %c0_i32 : i32, i32
  }
}

module attributes {stable_mosaic.version = 11 : i64} {
  func.func @_check_monotonicity_kernel(%arg0: i32, %arg1: i32, %arg2: memref<16x32xf32, #tpu.memory_space<vmem>>, %arg3: memref<32x32xbf16, #tpu.memory_space<vmem>>, %arg4: memref<1x32xf32, #tpu.memory_space<vmem>>, %arg5: memref<1x32xf32, #tpu.memory_space<vmem>>, %arg6: memref<1x32xf32, #tpu.memory_space<vmem>>, %arg7: memref<32x512xbf16, #tpu.memory_space<vmem>>, %arg8: memref<1x512xf32, #tpu.memory_space<vmem>>, %arg9: memref<16x32xf32, #tpu.memory_space<vmem>>, %arg10: memref<16x128xf32, #tpu.memory_space<vmem>>, %arg11: memref<16x32xbf16, #tpu.memory_space<vmem>>, %arg12: memref<16x2xf32, #tpu.memory_space<vmem>>, %arg13: memref<16x3xf32, #tpu.memory_space<vmem>>, %arg14: memref<16x3xi32, #tpu.memory_space<vmem>>) attributes {dimension_semantics = [#tpu.dimension_semantics<parallel>, #tpu.dimension_semantics<arbitrary>], iteration_bounds = array<i64: 1, 4>, scalar_prefetch = 0 : i64, scratch_operands = 4 : i64, tpu.core_type = #tpu.core_type<tc>, window_params = [{transform_indices = @transform_0, window_bounds = array<i64: 16, 32>}, {pipeline_mode = #tpu.pipeline_mode<synchronous>, transform_indices = @transform_1, window_bounds = array<i64: 32, 32>}, {pipeline_mode = #tpu.pipeline_mode<synchronous>, transform_indices = @transform_2, window_bounds = array<i64: 1, 32>}, {pipeline_mode = #tpu.pipeline_mode<synchronous>, transform_indices = @transform_3, window_bounds = array<i64: 1, 32>}, {pipeline_mode = #tpu.pipeline_mode<synchronous>, transform_indices = @transform_4, window_bounds = array<i64: 1, 32>}, {transform_indices = @transform_5, window_bounds = array<i64: 32, 512>}, {transform_indices = @transform_6, window_bounds = array<i64: 1, 512>}, {transform_indices = @transform_7, window_bounds = array<i64: 16, 32>}, {transform_indices = @transform_8, window_bounds = array<i64: 16, 128>}]} {
    %c0_i32 = arith.constant 0 : i32
    %0 = arith.cmpi eq, %arg1, %c0_i32 : i32
    %1 = arith.extui %0 : i1 to i32
    %cst = arith.constant 0xFF800000 : f32
    %c0_i32_0 = arith.constant 0 : i32
    %2 = arith.cmpi ne, %1, %c0_i32_0 : i32
    scf.if %2 {
      %c0_20 = arith.constant 0 : index
      %c0_21 = arith.constant 0 : index
      %45 = vector.load %arg2[%c0_20, %c0_21] : memref<16x32xf32, #tpu.memory_space<vmem>>, vector<16x32xf32>
      %46 = arith.truncf %45 : vector<16x32xf32> to vector<16x32xbf16>
      %c0_22 = arith.constant 0 : index
      %c0_23 = arith.constant 0 : index
      %47 = vector.load %arg3[%c0_22, %c0_23] : memref<32x32xbf16, #tpu.memory_space<vmem>>, vector<32x32xbf16>
      %cst_24 = arith.constant dense<0.000000e+00> : vector<16x32xf32>
      %48 = tpu.matmul %46, %47, %cst_24 {dimension_numbers = #tpu.dot_dimension_numbers<[1], [0], [0], [1], [0, 0, 1, 1], [], []>} : vector<16x32xbf16>, vector<32x32xbf16>, vector<16x32xf32> -> vector<16x32xf32>
      %49 = arith.addf %45, %48 : vector<16x32xf32>
      %c0_25 = arith.constant 0 : index
      %c0_26 = arith.constant 0 : index
      %50 = vector.load %arg4[%c0_25, %c0_26] : memref<1x32xf32, #tpu.memory_space<vmem>>, vector<1x32xf32>
      %51 = vector.broadcast %50 : vector<1x32xf32> to vector<16x32xf32>
      %52 = arith.addf %49, %51 : vector<16x32xf32>
      %c0_27 = arith.constant 0 : index
      %c0_28 = arith.constant 0 : index
      %53 = vector.load %arg9[%c0_27, %c0_28] : memref<16x32xf32, #tpu.memory_space<vmem>>, vector<16x32xf32>
      tpu.vector_store %arg9[%c0_27, %c0_28], %52 {strides = array<i32>} : memref<16x32xf32, #tpu.memory_space<vmem>>, vector<16x32xf32>,
      %cst_29 = arith.constant dense<0.000000e+00> : vector<16xf32>
      %54 = vector.multi_reduction <add>, %52, %cst_29 [1] : vector<16x32xf32> to vector<16xf32>
      %55 = vector.shape_cast %54 : vector<16xf32> to vector<16x1xf32>
      %cst_30 = arith.constant 3.200000e+01 : f32
      %56 = vector.broadcast %cst_30 : f32 to vector<16x1xf32>
      %57 = arith.divf %55, %56 : vector<16x1xf32>
      %58 = vector.broadcast %57 : vector<16x1xf32> to vector<16x32xf32>
      %59 = arith.subf %52, %58 : vector<16x32xf32>
      %60 = arith.mulf %59, %59 : vector<16x32xf32>
      %cst_31 = arith.constant dense<0.000000e+00> : vector<16xf32>
      %61 = vector.multi_reduction <add>, %60, %cst_31 [1] : vector<16x32xf32> to vector<16xf32>
      %62 = vector.shape_cast %61 : vector<16xf32> to vector<16x1xf32>
      %cst_32 = arith.constant 3.200000e+01 : f32
      %63 = vector.broadcast %cst_32 : f32 to vector<16x1xf32>
      %64 = arith.divf %62, %63 : vector<16x1xf32>
      %cst_33 = arith.constant 9.99999974E-6 : f32
      %65 = vector.broadcast %cst_33 : f32 to vector<16x1xf32>
      %66 = arith.addf %64, %65 : vector<16x1xf32>
      %67 = math.rsqrt %66 : vector<16x1xf32>
      %68 = vector.broadcast %67 : vector<16x1xf32> to vector<16x32xf32>
      %69 = arith.mulf %59, %68 : vector<16x32xf32>
      %c0_34 = arith.constant 0 : index
      %c0_35 = arith.constant 0 : index
      %70 = vector.load %arg5[%c0_34, %c0_35] : memref<1x32xf32, #tpu.memory_space<vmem>>, vector<1x32xf32>
      %71 = vector.broadcast %70 : vector<1x32xf32> to vector<16x32xf32>
      %72 = arith.mulf %69, %71 : vector<16x32xf32>
      %c0_36 = arith.constant 0 : index
      %c0_37 = arith.constant 0 : index
      %73 = vector.load %arg6[%c0_36, %c0_37] : memref<1x32xf32, #tpu.memory_space<vmem>>, vector<1x32xf32>
      %74 = vector.broadcast %73 : vector<1x32xf32> to vector<16x32xf32>
      %75 = arith.addf %72, %74 : vector<16x32xf32>
      %76 = arith.truncf %75 : vector<16x32xf32> to vector<16x32xbf16>
      %c0_38 = arith.constant 0 : index
      %c0_39 = arith.constant 0 : index
      %77 = vector.load %arg11[%c0_38, %c0_39] : memref<16x32xbf16, #tpu.memory_space<vmem>>, vector<16x32xbf16>
      tpu.vector_store %arg11[%c0_38, %c0_39], %76 {strides = array<i32>} : memref<16x32xbf16, #tpu.memory_space<vmem>>, vector<16x32xbf16>,
      %78 = tpu.iota {dimensions = array<i32: 1>} : vector<16x2xi32>
      %c0_i32_40 = arith.constant 0 : i32
      %79 = vector.broadcast %c0_i32_40 : i32 to vector<16x2xi32>
      %80 = arith.cmpi eq, %78, %79 : vector<16x2xi32>
      %cst_41 = arith.constant 0.000000e+00 : f32
      %81 = vector.broadcast %cst : f32 to vector<16x2xf32>
      %82 = vector.broadcast %cst_41 : f32 to vector<16x2xf32>
      %83 = arith.select %80, %81, %82 : vector<16x2xi1>, vector<16x2xf32>
      %c0_42 = arith.constant 0 : index
      %c0_43 = arith.constant 0 : index
      %84 = vector.load %arg12[%c0_42, %c0_43] : memref<16x2xf32, #tpu.memory_space<vmem>>, vector<16x2xf32>
      tpu.vector_store %arg12[%c0_42, %c0_43], %83 {strides = array<i32>} : memref<16x2xf32, #tpu.memory_space<vmem>>, vector<16x2xf32>,
      %85 = vector.broadcast %cst : f32 to vector<16x3xf32>
      %c0_44 = arith.constant 0 : index
      %c0_45 = arith.constant 0 : index
      %86 = vector.load %arg13[%c0_44, %c0_45] : memref<16x3xf32, #tpu.memory_space<vmem>>, vector<16x3xf32>
      tpu.vector_store %arg13[%c0_44, %c0_45], %85 {strides = array<i32>} : memref<16x3xf32, #tpu.memory_space<vmem>>, vector<16x3xf32>,
      %c0_i32_46 = arith.constant 0 : i32
      %87 = vector.broadcast %c0_i32_46 : i32 to vector<16x3xi32>
      %c0_47 = arith.constant 0 : index
      %c0_48 = arith.constant 0 : index
      %88 = vector.load %arg14[%c0_47, %c0_48] : memref<16x3xi32, #tpu.memory_space<vmem>>, vector<16x3xi32>
      tpu.vector_store %arg14[%c0_47, %c0_48], %87 {strides = array<i32>} : memref<16x3xi32, #tpu.memory_space<vmem>>, vector<16x3xi32>,
    } else {
    }
    %c0 = arith.constant 0 : index
    %c0_1 = arith.constant 0 : index
    %3 = vector.load %arg11[%c0, %c0_1] : memref<16x32xbf16, #tpu.memory_space<vmem>>, vector<16x32xbf16>
    %c0_2 = arith.constant 0 : index
    %c0_3 = arith.constant 0 : index
    %4 = vector.load %arg7[%c0_2, %c0_3] : memref<32x512xbf16, #tpu.memory_space<vmem>>, vector<32x512xbf16>
    %cst_4 = arith.constant dense<0.000000e+00> : vector<16x512xf32>
    %5 = tpu.matmul %3, %4, %cst_4 {dimension_numbers = #tpu.dot_dimension_numbers<[1], [0], [0], [1], [0, 0, 1, 1], [], []>} : vector<16x32xbf16>, vector<32x512xbf16>, vector<16x512xf32> -> vector<16x512xf32>
    %c0_5 = arith.constant 0 : index
    %c0_6 = arith.constant 0 : index
    %6 = vector.load %arg8[%c0_5, %c0_6] : memref<1x512xf32, #tpu.memory_space<vmem>>, vector<1x512xf32>
    %7 = vector.broadcast %6 : vector<1x512xf32> to vector<16x512xf32>
    %8 = arith.addf %5, %7 : vector<16x512xf32>
    %cst_7 = arith.constant dense<0xFF800000> : vector<16xf32>
    %9 = vector.multi_reduction <maximumf>, %8, %cst_7 [1] : vector<16x512xf32> to vector<16xf32>
    %10 = vector.shape_cast %9 : vector<16xf32> to vector<16x1xf32>
    %c0_8 = arith.constant 0 : index
    %c0_9 = arith.constant 0 : index
    %11 = vector.load %arg12[%c0_8, %c0_9] : memref<16x2xf32, #tpu.memory_space<vmem>>, vector<16x2xf32>
    %12 = vector.extract_strided_slice %11 {offsets = [0, 0], sizes = [16, 1], strides = [1, 1]} : vector<16x2xf32> to vector<16x1xf32>
    %13 = vector.extract_strided_slice %11 {offsets = [0, 1], sizes = [16, 1], strides = [1, 1]} : vector<16x2xf32> to vector<16x1xf32>
    %14 = arith.maximumf %12, %10 : vector<16x1xf32>
    %15 = arith.subf %12, %14 : vector<16x1xf32>
    %16 = math.exp %15 : vector<16x1xf32>
    %17 = arith.mulf %13, %16 : vector<16x1xf32>
    %18 = vector.broadcast %14 : vector<16x1xf32> to vector<16x512xf32>
    %19 = arith.subf %8, %18 : vector<16x512xf32>
    %20 = math.exp %19 : vector<16x512xf32>
    %cst_10 = arith.constant dense<0.000000e+00> : vector<16xf32>
    %21 = vector.multi_reduction <add>, %20, %cst_10 [1] : vector<16x512xf32> to vector<16xf32>
    %22 = vector.shape_cast %21 : vector<16xf32> to vector<16x1xf32>
    %23 = arith.addf %17, %22 : vector<16x1xf32>
    %24 = tpu.iota {dimensions = array<i32: 1>} : vector<16x2xi32>
    %c0_i32_11 = arith.constant 0 : i32
    %25 = vector.broadcast %c0_i32_11 : i32 to vector<16x2xi32>
    %26 = arith.cmpi eq, %24, %25 : vector<16x2xi32>
    %27 = vector.shape_cast %14 : vector<16x1xf32> to vector<16x1xf32>
    %28 = vector.broadcast %27 : vector<16x1xf32> to vector<16x2xf32>
    %29 = vector.shape_cast %23 : vector<16x1xf32> to vector<16x1xf32>
    %30 = vector.broadcast %29 : vector<16x1xf32> to vector<16x2xf32>
    %31 = arith.select %26, %28, %30 : vector<16x2xi1>, vector<16x2xf32>
    %c0_12 = arith.constant 0 : index
    %c0_13 = arith.constant 0 : index
    %32 = vector.load %arg12[%c0_12, %c0_13] : memref<16x2xf32, #tpu.memory_space<vmem>>, vector<16x2xf32>
    tpu.vector_store %arg12[%c0_12, %c0_13], %31 {strides = array<i32>} : memref<16x2xf32, #tpu.memory_space<vmem>>, vector<16x2xf32>,
    %c0_14 = arith.constant 0 : index
    %c2 = arith.constant 2 : index
    %33 = vector.load %arg13[%c0_14, %c2] : memref<16x3xf32, #tpu.memory_space<vmem>>, vector<16x1xf32>
    %34 = arith.subf %10, %33 : vector<16x1xf32>
    %35 = vector.shape_cast %34 : vector<16x1xf32> to vector<1x16x1xf32>
    %cst_15 = arith.constant dense<0xFF800000> : vector<1xf32>
    %36 = vector.multi_reduction <maximumf>, %35, %cst_15 [1, 2] : vector<1x16x1xf32> to vector<1xf32>
    %37 = vector.shape_cast %36 : vector<1xf32> to vector<1x1x1xf32>
    %38 = vector.extract %37[0, 0, 0] : f32 from vector<1x1x1xf32>
    %cst_16 = arith.constant 0.000000e+00 : f32
    %39 = arith.cmpf ogt, %38, %cst_16 : f32
    %40 = arith.extui %39 : i1 to i32
    %cst_17 = arith.constant 0xFF800000 : f32
    %c0_i32_18 = arith.constant 0 : i32
    %41 = arith.cmpi ne, %40, %c0_i32_18 : i32
    scf.if %41 {
      %c0_20 = arith.constant 0 : index
      %c0_21 = arith.constant 0 : index
      %45 = vector.load %arg13[%c0_20, %c0_21] : memref<16x3xf32, #tpu.memory_space<vmem>>, vector<16x3xf32>
      %c0_22 = arith.constant 0 : index
      %c0_23 = arith.constant 0 : index
      %46 = vector.load %arg14[%c0_22, %c0_23] : memref<16x3xi32, #tpu.memory_space<vmem>>, vector<16x3xi32>
      %47 = vector.extract_strided_slice %45 {offsets = [0, 0], sizes = [16, 1], strides = [1, 1]} : vector<16x3xf32> to vector<16x1xf32>
      %48 = vector.extract_strided_slice %45 {offsets = [0, 1], sizes = [16, 1], strides = [1, 1]} : vector<16x3xf32> to vector<16x1xf32>
      %49 = vector.extract_strided_slice %45 {offsets = [0, 2], sizes = [16, 1], strides = [1, 1]} : vector<16x3xf32> to vector<16x1xf32>
      %50 = vector.extract_strided_slice %46 {offsets = [0, 0], sizes = [16, 1], strides = [1, 1]} : vector<16x3xi32> to vector<16x1xi32>
      %51 = vector.extract_strided_slice %46 {offsets = [0, 1], sizes = [16, 1], strides = [1, 1]} : vector<16x3xi32> to vector<16x1xi32>
      %52 = vector.extract_strided_slice %46 {offsets = [0, 2], sizes = [16, 1], strides = [1, 1]} : vector<16x3xi32> to vector<16x1xi32>
      %53 = tpu.iota {dimensions = array<i32: 1>} : vector<16x512xi32>
      %c512_i32 = arith.constant 512 : i32
      %54 = arith.muli %arg1, %c512_i32 : i32
      %55 = vector.broadcast %10 : vector<16x1xf32> to vector<16x512xf32>
      %56 = arith.cmpf oeq, %8, %55 : vector<16x512xf32>
      %c2147483647_i32 = arith.constant 2147483647 : i32
      %57 = vector.broadcast %c2147483647_i32 : i32 to vector<16x512xi32>
      %58 = arith.select %56, %53, %57 : vector<16x512xi1>, vector<16x512xi32>
      %cst_24 = arith.constant dense<2147483647> : vector<16xi32>
      %59 = vector.multi_reduction <minsi>, %58, %cst_24 [1] : vector<16x512xi32> to vector<16xi32>
      %60 = vector.shape_cast %59 : vector<16xi32> to vector<16x1xi32>
      %61 = vector.broadcast %60 : vector<16x1xi32> to vector<16x512xi32>
      %62 = arith.cmpi eq, %53, %61 : vector<16x512xi32>
      %63 = vector.broadcast %cst_17 : f32 to vector<16x512xf32>
      %64 = arith.select %62, %63, %8 : vector<16x512xi1>, vector<16x512xf32>
      %65 = vector.broadcast %54 : i32 to vector<16x1xi32>
      %66 = arith.addi %60, %65 : vector<16x1xi32>
      %67 = arith.cmpf ogt, %10, %47 : vector<16x1xf32>
      %68 = arith.cmpf ogt, %10, %48 : vector<16x1xf32>
      %69 = arith.cmpf ogt, %10, %49 : vector<16x1xf32>
      %70 = arith.select %67, %10, %47 : vector<16x1xi1>, vector<16x1xf32>
      %71 = arith.select %67, %66, %50 : vector<16x1xi1>, vector<16x1xi32>
      %72 = arith.select %68, %10, %48 : vector<16x1xi1>, vector<16x1xf32>
      %73 = arith.select %67, %47, %72 : vector<16x1xi1>, vector<16x1xf32>
      %74 = arith.select %68, %66, %51 : vector<16x1xi1>, vector<16x1xi32>
      %75 = arith.select %67, %50, %74 : vector<16x1xi1>, vector<16x1xi32>
      %76 = arith.select %69, %10, %49 : vector<16x1xi1>, vector<16x1xf32>
      %77 = arith.select %68, %48, %76 : vector<16x1xi1>, vector<16x1xf32>
      %78 = arith.select %69, %66, %52 : vector<16x1xi1>, vector<16x1xi32>
      %79 = arith.select %68, %51, %78 : vector<16x1xi1>, vector<16x1xi32>
      %cst_25 = arith.constant dense<0xFF800000> : vector<16xf32>
      %80 = vector.multi_reduction <maximumf>, %64, %cst_25 [1] : vector<16x512xf32> to vector<16xf32>
      %81 = vector.shape_cast %80 : vector<16xf32> to vector<16x1xf32>
      %82 = vector.broadcast %81 : vector<16x1xf32> to vector<16x512xf32>
      %83 = arith.cmpf oeq, %64, %82 : vector<16x512xf32>
      %c2147483647_i32_26 = arith.constant 2147483647 : i32
      %84 = vector.broadcast %c2147483647_i32_26 : i32 to vector<16x512xi32>
      %85 = arith.select %83, %53, %84 : vector<16x512xi1>, vector<16x512xi32>
      %cst_27 = arith.constant dense<2147483647> : vector<16xi32>
      %86 = vector.multi_reduction <minsi>, %85, %cst_27 [1] : vector<16x512xi32> to vector<16xi32>
      %87 = vector.shape_cast %86 : vector<16xi32> to vector<16x1xi32>
      %88 = vector.broadcast %87 : vector<16x1xi32> to vector<16x512xi32>
      %89 = arith.cmpi eq, %53, %88 : vector<16x512xi32>
      %90 = vector.broadcast %cst_17 : f32 to vector<16x512xf32>
      %91 = arith.select %89, %90, %64 : vector<16x512xi1>, vector<16x512xf32>
      %92 = vector.broadcast %54 : i32 to vector<16x1xi32>
      %93 = arith.addi %87, %92 : vector<16x1xi32>
      %94 = arith.cmpf ogt, %81, %70 : vector<16x1xf32>
      %95 = arith.cmpf ogt, %81, %73 : vector<16x1xf32>
      %96 = arith.cmpf ogt, %81, %77 : vector<16x1xf32>
      %97 = arith.select %94, %81, %70 : vector<16x1xi1>, vector<16x1xf32>
      %98 = arith.select %94, %93, %71 : vector<16x1xi1>, vector<16x1xi32>
      %99 = arith.select %95, %81, %73 : vector<16x1xi1>, vector<16x1xf32>
      %100 = arith.select %94, %70, %99 : vector<16x1xi1>, vector<16x1xf32>
      %101 = arith.select %95, %93, %75 : vector<16x1xi1>, vector<16x1xi32>
      %102 = arith.select %94, %71, %101 : vector<16x1xi1>, vector<16x1xi32>
      %103 = arith.select %96, %81, %77 : vector<16x1xi1>, vector<16x1xf32>
      %104 = arith.select %95, %73, %103 : vector<16x1xi1>, vector<16x1xf32>
      %105 = arith.select %96, %93, %79 : vector<16x1xi1>, vector<16x1xi32>
      %106 = arith.select %95, %75, %105 : vector<16x1xi1>, vector<16x1xi32>
      %cst_28 = arith.constant dense<0xFF800000> : vector<16xf32>
      %107 = vector.multi_reduction <maximumf>, %91, %cst_28 [1] : vector<16x512xf32> to vector<16xf32>
      %108 = vector.shape_cast %107 : vector<16xf32> to vector<16x1xf32>
      %109 = vector.broadcast %108 : vector<16x1xf32> to vector<16x512xf32>
      %110 = arith.cmpf oeq, %91, %109 : vector<16x512xf32>
      %c2147483647_i32_29 = arith.constant 2147483647 : i32
      %111 = vector.broadcast %c2147483647_i32_29 : i32 to vector<16x512xi32>
      %112 = arith.select %110, %53, %111 : vector<16x512xi1>, vector<16x512xi32>
      %cst_30 = arith.constant dense<2147483647> : vector<16xi32>
      %113 = vector.multi_reduction <minsi>, %112, %cst_30 [1] : vector<16x512xi32> to vector<16xi32>
      %114 = vector.shape_cast %113 : vector<16xi32> to vector<16x1xi32>
      %115 = vector.broadcast %54 : i32 to vector<16x1xi32>
      %116 = arith.addi %114, %115 : vector<16x1xi32>
      %117 = arith.cmpf ogt, %108, %97 : vector<16x1xf32>
      %118 = arith.cmpf ogt, %108, %100 : vector<16x1xf32>
      %119 = arith.cmpf ogt, %108, %104 : vector<16x1xf32>
      %120 = arith.select %117, %108, %97 : vector<16x1xi1>, vector<16x1xf32>
      %121 = arith.select %117, %116, %98 : vector<16x1xi1>, vector<16x1xi32>
      %122 = arith.select %118, %108, %100 : vector<16x1xi1>, vector<16x1xf32>
      %123 = arith.select %117, %97, %122 : vector<16x1xi1>, vector<16x1xf32>
      %124 = arith.select %118, %116, %102 : vector<16x1xi1>, vector<16x1xi32>
      %125 = arith.select %117, %98, %124 : vector<16x1xi1>, vector<16x1xi32>
      %126 = arith.select %119, %108, %104 : vector<16x1xi1>, vector<16x1xf32>
      %127 = arith.select %118, %100, %126 : vector<16x1xi1>, vector<16x1xf32>
      %128 = arith.select %119, %116, %106 : vector<16x1xi1>, vector<16x1xi32>
      %129 = arith.select %118, %102, %128 : vector<16x1xi1>, vector<16x1xi32>
      %130 = tpu.iota {dimensions = array<i32: 1>} : vector<16x3xi32>
      %c0_i32_31 = arith.constant 0 : i32
      %131 = vector.broadcast %c0_i32_31 : i32 to vector<16x3xi32>
      %132 = arith.cmpi eq, %130, %131 : vector<16x3xi32>
      %c1_i32 = arith.constant 1 : i32
      %133 = vector.broadcast %c1_i32 : i32 to vector<16x3xi32>
      %134 = arith.cmpi eq, %130, %133 : vector<16x3xi32>
      %135 = vector.shape_cast %123 : vector<16x1xf32> to vector<16x1xf32>
      %136 = vector.broadcast %135 : vector<16x1xf32> to vector<16x3xf32>
      %137 = vector.shape_cast %127 : vector<16x1xf32> to vector<16x1xf32>
      %138 = vector.broadcast %137 : vector<16x1xf32> to vector<16x3xf32>
      %139 = arith.select %134, %136, %138 : vector<16x3xi1>, vector<16x3xf32>
      %140 = vector.shape_cast %120 : vector<16x1xf32> to vector<16x1xf32>
      %141 = vector.broadcast %140 : vector<16x1xf32> to vector<16x3xf32>
      %142 = arith.select %132, %141, %139 : vector<16x3xi1>, vector<16x3xf32>
      %c0_32 = arith.constant 0 : index
      %c0_33 = arith.constant 0 : index
      %143 = vector.load %arg13[%c0_32, %c0_33] : memref<16x3xf32, #tpu.memory_space<vmem>>, vector<16x3xf32>
      tpu.vector_store %arg13[%c0_32, %c0_33], %142 {strides = array<i32>} : memref<16x3xf32, #tpu.memory_space<vmem>>, vector<16x3xf32>,
      %c0_i32_34 = arith.constant 0 : i32
      %144 = vector.broadcast %c0_i32_34 : i32 to vector<16x3xi32>
      %145 = arith.cmpi eq, %130, %144 : vector<16x3xi32>
      %c1_i32_35 = arith.constant 1 : i32
      %146 = vector.broadcast %c1_i32_35 : i32 to vector<16x3xi32>
      %147 = arith.cmpi eq, %130, %146 : vector<16x3xi32>
      %148 = vector.shape_cast %125 : vector<16x1xi32> to vector<16x1xi32>
      %149 = vector.broadcast %148 : vector<16x1xi32> to vector<16x3xi32>
      %150 = vector.shape_cast %129 : vector<16x1xi32> to vector<16x1xi32>
      %151 = vector.broadcast %150 : vector<16x1xi32> to vector<16x3xi32>
      %152 = arith.select %147, %149, %151 : vector<16x3xi1>, vector<16x3xi32>
      %153 = vector.shape_cast %121 : vector<16x1xi32> to vector<16x1xi32>
      %154 = vector.broadcast %153 : vector<16x1xi32> to vector<16x3xi32>
      %155 = arith.select %145, %154, %152 : vector<16x3xi1>, vector<16x3xi32>
      %c0_36 = arith.constant 0 : index
      %c0_37 = arith.constant 0 : index
      %156 = vector.load %arg14[%c0_36, %c0_37] : memref<16x3xi32, #tpu.memory_space<vmem>>, vector<16x3xi32>
      tpu.vector_store %arg14[%c0_36, %c0_37], %155 {strides = array<i32>} : memref<16x3xi32, #tpu.memory_space<vmem>>, vector<16x3xi32>,
    } else {
    }
    %c3_i32 = arith.constant 3 : i32
    %42 = arith.cmpi eq, %arg1, %c3_i32 : i32
    %43 = arith.extui %42 : i1 to i32
    %c0_i32_19 = arith.constant 0 : i32
    %44 = arith.cmpi ne, %43, %c0_i32_19 : i32
    scf.if %44 {
      %c0_20 = arith.constant 0 : index
      %c0_21 = arith.constant 0 : index
      %45 = vector.load %arg12[%c0_20, %c0_21] : memref<16x2xf32, #tpu.memory_space<vmem>>, vector<16x2xf32>
      %46 = vector.extract_strided_slice %45 {offsets = [0, 0], sizes = [16, 1], strides = [1, 1]} : vector<16x2xf32> to vector<16x1xf32>
      %47 = vector.extract_strided_slice %45 {offsets = [0, 1], sizes = [16, 1], strides = [1, 1]} : vector<16x2xf32> to vector<16x1xf32>
      %cst_22 = arith.constant 1.000000e+00 : f32
      %48 = vector.broadcast %cst_22 : f32 to vector<16x1xf32>
      %49 = arith.divf %48, %47 : vector<16x1xf32>
      %c0_23 = arith.constant 0 : index
      %c0_24 = arith.constant 0 : index
      %50 = vector.load %arg13[%c0_23, %c0_24] : memref<16x3xf32, #tpu.memory_space<vmem>>, vector<16x3xf32>
      %c0_25 = arith.constant 0 : index
      %c0_26 = arith.constant 0 : index
      %51 = vector.load %arg14[%c0_25, %c0_26] : memref<16x3xi32, #tpu.memory_space<vmem>>, vector<16x3xi32>
      %52 = tpu.iota {dimensions = array<i32: 1>} : vector<16x128xi32>
      %cst_27 = arith.constant 0.000000e+00 : f32
      %53 = vector.broadcast %cst_27 : f32 to vector<16x128xf32>
      %54 = vector.extract_strided_slice %50 {offsets = [0, 0], sizes = [16, 1], strides = [1, 1]} : vector<16x3xf32> to vector<16x1xf32>
      %55 = arith.subf %54, %46 : vector<16x1xf32>
      %56 = math.exp %55 : vector<16x1xf32>
      %57 = arith.mulf %56, %49 : vector<16x1xf32>
      %c0_i32_28 = arith.constant 0 : i32
      %58 = vector.broadcast %c0_i32_28 : i32 to vector<16x128xi32>
      %59 = arith.cmpi eq, %52, %58 : vector<16x128xi32>
      %60 = vector.shape_cast %57 : vector<16x1xf32> to vector<16x1xf32>
      %61 = vector.broadcast %60 : vector<16x1xf32> to vector<16x128xf32>
      %62 = arith.select %59, %61, %53 : vector<16x128xi1>, vector<16x128xf32>
      %c8_i32 = arith.constant 8 : i32
      %63 = vector.broadcast %c8_i32 : i32 to vector<16x128xi32>
      %64 = arith.cmpi eq, %52, %63 : vector<16x128xi32>
      %65 = vector.extract_strided_slice %51 {offsets = [0, 0], sizes = [16, 1], strides = [1, 1]} : vector<16x3xi32> to vector<16x1xi32>
      %66 = tpu.bitcast %65 : vector<16x1xi32> -> vector<16x1xf32>
      %67 = vector.shape_cast %66 : vector<16x1xf32> to vector<16x1xf32>
      %68 = vector.broadcast %67 : vector<16x1xf32> to vector<16x128xf32>
      %69 = arith.select %64, %68, %62 : vector<16x128xi1>, vector<16x128xf32>
      %70 = vector.extract_strided_slice %50 {offsets = [0, 1], sizes = [16, 1], strides = [1, 1]} : vector<16x3xf32> to vector<16x1xf32>
      %71 = arith.subf %70, %46 : vector<16x1xf32>
      %72 = math.exp %71 : vector<16x1xf32>
      %73 = arith.mulf %72, %49 : vector<16x1xf32>
      %c1_i32 = arith.constant 1 : i32
      %74 = vector.broadcast %c1_i32 : i32 to vector<16x128xi32>
      %75 = arith.cmpi eq, %52, %74 : vector<16x128xi32>
      %76 = vector.shape_cast %73 : vector<16x1xf32> to vector<16x1xf32>
      %77 = vector.broadcast %76 : vector<16x1xf32> to vector<16x128xf32>
      %78 = arith.select %75, %77, %69 : vector<16x128xi1>, vector<16x128xf32>
      %c9_i32 = arith.constant 9 : i32
      %79 = vector.broadcast %c9_i32 : i32 to vector<16x128xi32>
      %80 = arith.cmpi eq, %52, %79 : vector<16x128xi32>
      %81 = vector.extract_strided_slice %51 {offsets = [0, 1], sizes = [16, 1], strides = [1, 1]} : vector<16x3xi32> to vector<16x1xi32>
      %82 = tpu.bitcast %81 : vector<16x1xi32> -> vector<16x1xf32>
      %83 = vector.shape_cast %82 : vector<16x1xf32> to vector<16x1xf32>
      %84 = vector.broadcast %83 : vector<16x1xf32> to vector<16x128xf32>
      %85 = arith.select %80, %84, %78 : vector<16x128xi1>, vector<16x128xf32>
      %86 = vector.extract_strided_slice %50 {offsets = [0, 2], sizes = [16, 1], strides = [1, 1]} : vector<16x3xf32> to vector<16x1xf32>
      %87 = arith.subf %86, %46 : vector<16x1xf32>
      %88 = math.exp %87 : vector<16x1xf32>
      %89 = arith.mulf %88, %49 : vector<16x1xf32>
      %c2_i32 = arith.constant 2 : i32
      %90 = vector.broadcast %c2_i32 : i32 to vector<16x128xi32>
      %91 = arith.cmpi eq, %52, %90 : vector<16x128xi32>
      %92 = vector.shape_cast %89 : vector<16x1xf32> to vector<16x1xf32>
      %93 = vector.broadcast %92 : vector<16x1xf32> to vector<16x128xf32>
      %94 = arith.select %91, %93, %85 : vector<16x128xi1>, vector<16x128xf32>
      %c10_i32 = arith.constant 10 : i32
      %95 = vector.broadcast %c10_i32 : i32 to vector<16x128xi32>
      %96 = arith.cmpi eq, %52, %95 : vector<16x128xi32>
      %97 = vector.extract_strided_slice %51 {offsets = [0, 2], sizes = [16, 1], strides = [1, 1]} : vector<16x3xi32> to vector<16x1xi32>
      %98 = tpu.bitcast %97 : vector<16x1xi32> -> vector<16x1xf32>
      %99 = vector.shape_cast %98 : vector<16x1xf32> to vector<16x1xf32>
      %100 = vector.broadcast %99 : vector<16x1xf32> to vector<16x128xf32>
      %101 = arith.select %96, %100, %94 : vector<16x128xi1>, vector<16x128xf32>
      %c0_29 = arith.constant 0 : index
      %c0_30 = arith.constant 0 : index
      %102 = vector.load %arg10[%c0_29, %c0_30] : memref<16x128xf32, #tpu.memory_space<vmem>>, vector<16x128xf32>
      tpu.vector_store %arg10[%c0_29, %c0_30], %101 {strides = array<i32>} : memref<16x128xf32, #tpu.memory_space<vmem>>, vector<16x128xf32>,
    } else {
    }
    return
  }
  func.func @transform_0(%arg0: i32, %arg1: i32) -> (i32, i32) {
    %c0_i32 = arith.constant 0 : i32
    %c0_i32_0 = arith.constant 0 : i32
    return %arg0, %c0_i32 : i32, i32
  }
  func.func @transform_1(%arg0: i32, %arg1: i32) -> (i32, i32) {
    %c0_i32 = arith.constant 0 : i32
    %c0_i32_0 = arith.constant 0 : i32
    %c0_i32_1 = arith.constant 0 : i32
    return %c0_i32, %c0_i32_0 : i32, i32
  }
  func.func @transform_2(%arg0: i32, %arg1: i32) -> (i32, i32) {
    %c0_i32 = arith.constant 0 : i32
    %c0_i32_0 = arith.constant 0 : i32
    %c0_i32_1 = arith.constant 0 : i32
    return %c0_i32, %c0_i32_0 : i32, i32
  }
  func.func @transform_3(%arg0: i32, %arg1: i32) -> (i32, i32) {
    %c0_i32 = arith.constant 0 : i32
    %c0_i32_0 = arith.constant 0 : i32
    %c0_i32_1 = arith.constant 0 : i32
    return %c0_i32, %c0_i32_0 : i32, i32
  }
  func.func @transform_4(%arg0: i32, %arg1: i32) -> (i32, i32) {
    %c0_i32 = arith.constant 0 : i32
    %c0_i32_0 = arith.constant 0 : i32
    %c0_i32_1 = arith.constant 0 : i32
    return %c0_i32, %c0_i32_0 : i32, i32
  }
  func.func @transform_5(%arg0: i32, %arg1: i32) -> (i32, i32) {
    %c0_i32 = arith.constant 0 : i32
    %c0_i32_0 = arith.constant 0 : i32
    return %c0_i32, %arg1 : i32, i32
  }
  func.func @transform_6(%arg0: i32, %arg1: i32) -> (i32, i32) {
    %c0_i32 = arith.constant 0 : i32
    %c0_i32_0 = arith.constant 0 : i32
    return %c0_i32, %arg1 : i32, i32
  }
  func.func @transform_7(%arg0: i32, %arg1: i32) -> (i32, i32) {
    %c0_i32 = arith.constant 0 : i32
    %c0_i32_0 = arith.constant 0 : i32
    return %arg0, %c0_i32 : i32, i32
  }
  func.func @transform_8(%arg0: i32, %arg1: i32) -> (i32, i32) {
    %c0_i32 = arith.constant 0 : i32
    %c0_i32_0 = arith.constant 0 : i32
    return %arg0, %c0_i32 : i32, i32
  }
}

</mosaic_0001>

<bundles_post_ra>
// kernel: tpu_custom_call.1
= control target key start
LH: loop header
LB: loop body
LE: loop exit
PB: predicated region body
PF: predicated region fallthrough
CT: control target
= control target key end

     0   :  { %s3066_s0 = inlined_call_operand.hbm [shape: f32[16,32], index: 0, kind: input, shape index: {}]   ;;  %s3067_s1 = inlined_call_operand.hbm [shape: bf16[32,32], index: 1, kind: input, shape index: {}]   ;;  %s3068_s2 = inlined_call_operand.hbm [shape: f32[1,32], index: 2, kind: input, shape index: {}]   ;;  %s3069_s3 = inlined_call_operand.hbm [shape: f32[1,32], index: 3, kind: input, shape index: {}]   ;;  %s3070_s4 = inlined_call_operand.hbm [shape: f32[1,32], index: 4, kind: input, shape index: {}]   ;;  %s3071_s5 = inlined_call_operand.hbm [shape: bf16[32,2048], index: 5, kind: input, shape index: {}]   ;;  %s3072_s6 = inlined_call_operand.hbm [shape: f32[1,2048], index: 6, kind: input, shape index: {}]   ;;  %s3073_s7 = inlined_call_operand.hbm [shape: f32[16,32], index: 7, kind: output, shape index: {0}]   ;;  %s3074_s8 = inlined_call_operand.hbm [shape: f32[16,128], index: 8, kind: output, shape index: {1}]  }
   0x1   :  { %3086 = sst [smem:[#allocation29_spill]] %s3067_s1 }
   0x2   :  { %3087 = sst [smem:[#allocation30_spill]] %s3069_s3 }
   0x3   :  { %3088 = sst [smem:[#allocation31_spill]] %s3071_s5 }
   0x4   :  { %3089 = sst [smem:[#allocation32_spill]] %s3074_s8 }
   0x5   :  { %14 = vsyncpa [#allocation7], 0 }
   0x6   :  { %15 = vsyncpa [#allocation10], 0 }
   0x7   :  { %16 = vsyncpa [#allocation13], 0 }
   0x8   :  { %17 = vsyncpa [#allocation16], 0 }
   0x9   :  { %19 = vsyncpa [#allocation16 + $0x1], 0 }
   0xa   :  { %20 = vsyncpa [#allocation8], 0 }
   0xb   :  { %21 = vsyncpa [#allocation20], 0  ;;  %s2235_s27 = smov 0   ;;  %s2237_s28 = smov 0  }
   0xc   :  { %s2239_s29 = smov 0   ;;  %s2241_s30 = smov 0  }
   0xd   :  { %s2243_s9 = smov 0   ;;  %s2245_s10 = smov 0  }
   0xe LB: > { %s2264_s11 = sadd.s32 4294967295, %s2155_s10   ;;  %p169_p0 = scmp.ne.s32.totalorder %s2139_s28, %s2135_s27  ;;  %s2155_s10 = sphi %s2245_s10, %s27_s10   ;;  %s2151_s9 = sphi %s2243_s9, %s3120_s9   ;;  %s2147_s30 = sphi %s2241_s30, %s3119_s30   ;;  %s2143_s29 = sphi %s2239_s29, %s3118_s29   ;;  %s2139_s28 = sphi %s2237_s28, %s3117_s28   ;;  %s2135_s27 = sphi %s2235_s27, %s3116_s27  }
   0xf   : > { %p3075_p1 = scmp.eq.s32.totalorder %s2264_s11, 0  ;;  %p1556_p2 = scmp.ge.s32.totalorder %s2155_s10, 1 }
  0x10   : > { %p258_p3 = scmp.lt.s32.totalorder %s2155_s10, 5  ;;  %s2157_s14 = smov [#allocation9]  }
  0x11   : > { %p2272_p4 = por %p3075_p1, %p169_p0  ;;  %s286_s15 = sshll.u32 %s2157_s14, 4  ;;  %s287_s15 = int_to_ptr.vmem [resolvable:$true] %s286_s15 }
  0x12   : > { %p2276_p5 = pnand %p1556_p2, %p258_p3  ;;  %s2158_s17 = smov [#allocation12]  }
  0x13   : > { %s3090_s12 = scalar_select %p2272_p4, 1, 0 }
  0x14   : > { %s3091_s13 = scalar_select %p2276_p5, 1, 0 }
  0x15   : > { %p1649_p6 = pneg %p2276_p5  ;;  %s311_s18 = sshll.u32 %s2158_s17, 4  ;;  %s2288_s18 = int_to_ptr.vmem [resolvable:$true] %s311_s18 }
  0x16   : > { %s3093_s1 = sld [smem:[#allocation29_spill]] }
  0x17   : > { %p2284_p7 = pnand %p1649_p6, %p3075_p1 }
  0x19   : > { %s3092_s16 = scalar_select %p2284_p7, 1, 0 }
  0x1a   : > { %p2298_p9 = pneg %p2284_p7 }
  0x1c   : > { %s1833_s21 = scalar_lea.hbm %s3093_s1, 256 }
  0x1d   : > { %p1834_p8 = scmp.ne.s32.totalorder %s3093_s1, %s1833_s21  ;;  %p1840_p12 = scmp.lt.u32.totalorder %s1833_s21, %s3093_s1 }
  0x1f   : > { %p1836_p10 = pnand %p2298_p9, %p1834_p8 }
  0x21   : > { %p1837_p11 = pneg %p1836_p10 }
  0x23   : > { %p1842_p13 = pnand %p1840_p12, %p1837_p11 }
  0x25   : > { %1845 = shalt.err (!%p1842_p13)
}
  0x26   : > { %s1846_s27 = scalar_lea.vmem %s287_s15, 256  ;;  %p1854_p6 = scmp.lt.s32.totalorder %s287_s15, %s287_s15 }
  0x27   : > { %p1847_p0 = scmp.ne.s32.totalorder %s287_s15, %s1846_s27  ;;  %p1855_p1 = scmp.lt.s32.totalorder %s1846_s27, %s1846_s27 }
  0x29   : > { %p1849_p2 = pnand %p1847_p0, %p2298_p9  ;;  %p1856_p4 = por %p1855_p1, %p1854_p6 }
  0x2b   : > { %p1850_p3 = pneg %p1849_p2 }
  0x2d   : > { %p1857_p5 = pnand %p1856_p4, %p1850_p3 }
  0x2f   : > { %1860 = shalt.err (!%p1857_p5)
}
  0x30   : > { %s2159_s14 = smov 64   ;;  %s2160_s17 = smov 4  }
  0x31   : > { %1655 = dma.hbm_to_vmem [thread:$0]  (!%p2284_p7), %s3093_s1, 256, %s287_s15, [#allocation10], %s2159_s14, %s2159_s14, %s2160_s17  }
  0x32   : > { %s3095_s3 = sld [smem:[#allocation30_spill]] }
  0x38   : > { %s1861_s23 = scalar_lea.hbm %s3095_s3, 16 }
  0x39   : > { %p1862_p8 = scmp.ne.s32.totalorder %s3095_s3, %s1861_s23  ;;  %p1868_p5 = scmp.lt.u32.totalorder %s1861_s23, %s3095_s3 }
  0x3b   : > { %p1864_p1 = pnand %p1862_p8, %p2298_p9 }
  0x3d   : > { %p1865_p4 = pneg %p1864_p1 }
  0x3f   : > { %p1870_p10 = pnand %p1868_p5, %p1865_p4 }
  0x41   : > { %1873 = shalt.err (!%p1870_p10)
}
  0x42   : > { %s1874_s15 = scalar_lea.vmem %s2288_s18, 16  ;;  %s1881_s14 = scalar_lea.vmem %s2288_s18, 32 }
  0x43   : > { %p1875_p11 = scmp.ne.s32.totalorder %s2288_s18, %s1874_s15  ;;  %p1882_p0 = scmp.lt.s32.totalorder %s2288_s18, %s2288_s18 }
  0x44   : > { %p1883_p2 = scmp.lt.s32.totalorder %s1881_s14, %s1874_s15 }
  0x45   : > { %p1877_p12 = pnand %p1875_p11, %p2298_p9 }
  0x46   : > { %p1884_p3 = por %p1883_p2, %p1882_p0 }
  0x47   : > { %p1878_p13 = pneg %p1877_p12 }
  0x49   : > { %p1885_p6 = pnand %p1884_p3, %p1878_p13 }
  0x4b   : > { %1888 = shalt.err (!%p1885_p6)
}
  0x4c   : > { %1661 = dma.hbm_to_vmem [thread:$0]  (!%p2284_p7), %s3095_s3, 16, %s2288_s18, [#allocation13]  }
  0x4d   : > { %s36_s19 = sadd.s32 1, %s2151_s9  ;;  %s156_s20 = sadd.s32 1, %s2143_s29 }
  0x4e   : > { %p37_p8 = scmp.ge.s32.totalorder %s36_s19, 4  ;;  %p163_p1 = scmp.ne.s32.totalorder %s2143_s29, %s2139_s28 }
  0x4f   : > { %p164_p4 = scmp.eq.s32.totalorder %s2155_s10, 0  ;;  %p1677_p5 = scmp.lt.s32.totalorder %s2155_s10, 4 }
  0x50   : > { %s3122_s19 = smov (%p37_p8, %s36_s19), 0  ;;  %s333_s21 = sand.u32 1, %s2155_s10  }
  0x51   : > { %3096 = sst [smem:[#allocation27_spill]] %s3122_s19  ;;  %p165_p10 = por %p164_p4, %p163_p1 }
  0x52   : > { %s153_s22 = ssub.s32 %s2151_s9, %s3122_s19  ;;  %s3079_s23 = sand.u32 1, %s2143_s29  }
  0x53   : > { %p154_p11 = scmp.eq.s32.totalorder %s153_s22, 0  ;;  %s1563_s25 = sshll.u32 %s3079_s23, 6 }
  0x54   : > { %s1602_s26 = sshll.u32 %s2151_s9, 8  ;;  %s3098_s5 = sld [smem:[#allocation31_spill]] }
  0x55   : > { %s2354_s27 = scalar_select %p154_p11, %s2143_s29, %s156_s20  }
  0x56   : > { %s337_s8 = scalar_lea.vmem [#allocation15], %s1563_s25  ;;  %p2363_p12 = pnand %p1677_p5, %p165_p10 }
  0x57   : > { %3097 = sst [smem:[#allocation28_spill]] %s2354_s27  ;;  %s344_s17 = sshll.u32 %s337_s8, 4  ;;  %s2367_s17 = int_to_ptr.vmem [resolvable:$true] %s344_s17 }
  0x58   : > { %s3099_s22 = scalar_select %p2363_p12, 1, 0 }
  0x59   : > { %s2369_s20 = scalar_lea.sflag [#allocation16], %s333_s21  ;;  %p3083_p0 = pneg %p2363_p12 }
  0x5a   : > { %s2359_s14 = scalar_lea.hbm %s3098_s5, %s1602_s26  ;;  %s1894_s15 = scalar_lea.hbm %s3098_s5, 4096 }
  0x5b   : > { %s1889_s18 = scalar_lea.hbm %s2359_s14, 1024  ;;  %p1895_p6 = scmp.lt.u32.totalorder %s2359_s14, %s3098_s5 }
  0x5c   : > { %p1890_p13 = scmp.ne.s32.totalorder %s2359_s14, %s1889_s18  ;;  %p1896_p8 = scmp.lt.u32.totalorder %s1894_s15, %s1889_s18 }
  0x5d   : > { %p1898_p4 = scmp.lt.u32.totalorder %s1889_s18, %s2359_s14 }
  0x5e   : > { %p1892_p2 = pnand %p3083_p0, %p1890_p13  ;;  %p1897_p1 = por %p1896_p8, %p1895_p6 }
  0x60   : > { %p1893_p3 = pneg %p1892_p2  ;;  %p1899_p5 = por %p1898_p4, %p1897_p1 }
  0x62   : > { %p1900_p10 = pnand %p1899_p5, %p1893_p3 }
  0x64   : > { %1903 = shalt.err (!%p1900_p10)
}
  0x65   : > { %s1904_s21 = scalar_lea.vmem %s2367_s17, 1024  ;;  %s2161_s25 = smov [#allocation15]  }
  0x66   : > { %p1905_p11 = scmp.ne.s32.totalorder %s2367_s17, %s1904_s21  ;;  %s1909_s26 = sshll.u32 %s2161_s25, 4  ;;  %s1910_s26 = int_to_ptr.vmem [resolvable:$false] %s1909_s26 }
  0x67   : > { %s1911_s23 = scalar_lea.vmem %s1910_s26, 2048  ;;  %p1912_p7 = scmp.lt.s32.totalorder %s2367_s17, %s1910_s26 }
  0x68   : > { %p1907_p13 = pnand %p1905_p11, %p3083_p0  ;;  %p1913_p6 = scmp.lt.s32.totalorder %s1911_s23, %s1904_s21 }
  0x6a   : > { %p1908_p2 = pneg %p1907_p13  ;;  %p1914_p8 = por %p1913_p6, %p1912_p7 }
  0x6c   : > { %p1915_p1 = pnand %p1914_p8, %p1908_p2 }
  0x6e   : > { %1918 = shalt.err (!%p1915_p1)
}
  0x6f   : > { %s2162_s18 = smov 1024   ;;  %s2163_s15 = smov 256  }
  0x70   : > { %s2164_s8 = smov 16   ;;  %s2165_s1 = smov [#allocation6]  }
  0x71   : > { %1668 = dma.hbm_to_vmem [thread:$0]  (!%p2363_p12), %s2359_s14, 1024, %s2367_s17, %s2369_s20, %s2162_s18, %s2163_s15, %s2164_s8  }
  0x72   : > { %s273_s3 = sshll.u32 %s2165_s1, 4  ;;  %s1919_s21 = scalar_lea.hbm %s3066_s0, 256  ;;  %s274_s3 = int_to_ptr.vmem [resolvable:$true] %s273_s3 }
  0x73   : > { %p1920_p7 = scmp.ne.s32.totalorder %s3066_s0, %s1919_s21  ;;  %p1926_p5 = scmp.lt.u32.totalorder %s1919_s21, %s3066_s0 }
  0x75   : > { %p1922_p3 = pnand %p1920_p7, %p2298_p9 }
  0x77   : > { %p1923_p4 = pneg %p1922_p3 }
  0x79   : > { %p1928_p10 = pnand %p1926_p5, %p1923_p4 }
  0x7b   : > { %1931 = shalt.err (!%p1928_p10)
}
  0x7c   : > { %s1932_s14 = scalar_lea.vmem %s274_s3, 256  ;;  %p1940_p6 = scmp.lt.s32.totalorder %s274_s3, %s274_s3 }
  0x7d   : > { %p1933_p11 = scmp.ne.s32.totalorder %s274_s3, %s1932_s14  ;;  %p1941_p8 = scmp.lt.s32.totalorder %s1932_s14, %s1932_s14 }
  0x7f   : > { %p1935_p13 = pnand %p1933_p11, %p2298_p9  ;;  %p1942_p1 = por %p1941_p8, %p1940_p6 }
  0x81   : > { %p1936_p2 = pneg %p1935_p13 }
  0x83   : > { %p1943_p0 = pnand %p1942_p1, %p1936_p2 }
  0x85   : > { %1946 = shalt.err (!%p1943_p0)
}
  0x86   : > { %s2166_s1 = smov 128   ;;  %s2167_s5 = smov 8  }
  0x87   : > { %p3100_p7 = scmp.ne.s32.totalorder %s3092_s16, 0  ;;  %s2168_s17 = smov [#allocation11]  }
  0x88   : > { %s300_s18 = sshll.u32 %s2168_s17, 4  ;;  %s2169_s15 = smov [#allocation14]   ;;  %s301_s18 = int_to_ptr.vmem [resolvable:$true] %s300_s18 }
  0x89   : > { %1652 = dma.hbm_to_vmem [thread:$0]  (!%p3100_p7), %s3066_s0, 256, %s274_s3, [#allocation7], %s2166_s1, %s2166_s1, %s2167_s5  }
  0x8a   : > { %s322_s8 = sshll.u32 %s2169_s15, 4  ;;  %s1947_s26 = scalar_lea.hbm %s3068_s2, 16  ;;  %s2415_s8 = int_to_ptr.vmem [resolvable:$true] %s322_s8 }
  0x8b   : > { %p1948_p0 = scmp.ne.s32.totalorder %s3068_s2, %s1947_s26  ;;  %p1954_p5 = scmp.lt.u32.totalorder %s1947_s26, %s3068_s2 }
  0x8d   : > { %p1950_p3 = pnand %p1948_p0, %p2298_p9 }
  0x8f   : > { %p1951_p4 = pneg %p1950_p3 }
  0x91   : > { %p1956_p10 = pnand %p1954_p5, %p1951_p4 }
  0x93   : > { %1959 = shalt.err (!%p1956_p10)
}
  0x94   : > { %s1960_s1 = scalar_lea.vmem %s301_s18, 16  ;;  %s1967_s5 = scalar_lea.vmem %s301_s18, 32 }
  0x95   : > { %p1961_p11 = scmp.ne.s32.totalorder %s301_s18, %s1960_s1  ;;  %p1968_p6 = scmp.lt.s32.totalorder %s301_s18, %s301_s18 }
  0x96   : > { %p1969_p8 = scmp.lt.s32.totalorder %s1967_s5, %s1960_s1 }
  0x97   : > { %p1963_p13 = pnand %p1961_p11, %p2298_p9 }
  0x98   : > { %p1970_p1 = por %p1969_p8, %p1968_p6 }
  0x99   : > { %p1964_p2 = pneg %p1963_p13 }
  0x9b   : > { %p1971_p12 = pnand %p1970_p1, %p1964_p2 }
  0x9d   : > { %1974 = shalt.err (!%p1971_p12)
}
  0x9e   : > { %1658 = dma.hbm_to_vmem [thread:$0]  (!%p3100_p7), %s3068_s2, 16, %s301_s18, [#allocation10]  }
  0x9f   : > { %s1975_s21 = scalar_lea.hbm %s3070_s4, 16 }
  0xa0   : > { %p1976_p0 = scmp.ne.s32.totalorder %s3070_s4, %s1975_s21  ;;  %p1982_p12 = scmp.lt.u32.totalorder %s1975_s21, %s3070_s4 }
  0xa2   : > { %p1978_p3 = pnand %p1976_p0, %p2298_p9 }
  0xa4   : > { %p1979_p4 = pneg %p1978_p3 }
  0xa6   : > { %p1984_p5 = pnand %p1982_p12, %p1979_p4 }
  0xa8   : > { %1987 = shalt.err (!%p1984_p5)
}
  0xa9   : > { %s1988_s18 = scalar_lea.vmem %s2415_s8, 16  ;;  %s1995_s3 = scalar_lea.vmem %s2415_s8, 32 }
  0xaa   : > { %p1989_p10 = scmp.ne.s32.totalorder %s2415_s8, %s1988_s18  ;;  %p1996_p2 = scmp.lt.s32.totalorder %s2415_s8, %s2415_s8 }
  0xab   : > { %p1997_p6 = scmp.lt.s32.totalorder %s1995_s3, %s1988_s18 }
  0xac   : > { %p1991_p11 = pnand %p1989_p10, %p2298_p9 }
  0xad   : > { %p1998_p8 = por %p1997_p6, %p1996_p2 }
  0xae   : > { %p1992_p13 = pneg %p1991_p11 }
  0xb0   : > { %p1999_p1 = pnand %p1998_p8, %p1992_p13 }
  0xb2   : > { %2002 = shalt.err (!%p1999_p1)
}
  0xb3   : > { %1664 = dma.hbm_to_vmem [thread:$0]  (!%p3100_p7), %s3070_s4, 16, %s2415_s8, [#allocation13]  }
  0xb4   : > { %s3101_s24 = sand.u32 1, %s2143_s29   ;;  %s1603_s17 = sshll.u32 %s2151_s9, 6 }
  0xb5   : > { %s1566_s27 = sshll.u32 %s3101_s24, 2  ;;  %s2465_s21 = scalar_lea.hbm %s3072_s6, %s1603_s17 }
  0xb6   : > { %s358_s16 = scalar_lea.vmem [#allocation17], %s1566_s27  ;;  %s2003_s23 = scalar_lea.hbm %s2465_s21, 64 }
  0xb7   : > { %s366_s26 = sshll.u32 %s358_s16, 4  ;;  %p2004_p9 = scmp.ne.s32.totalorder %s2465_s21, %s2003_s23  ;;  %s367_s26 = int_to_ptr.vmem [resolvable:$true] %s366_s26 }
  0xb8   : > { %p3102_p0 = scmp.ne.s32.totalorder %s3099_s22, 0  ;;  %s2008_s19 = scalar_lea.hbm %s3072_s6, 256 }
  0xb9   : > { %p2009_p12 = scmp.lt.u32.totalorder %s2465_s21, %s3072_s6  ;;  %p2010_p5 = scmp.lt.u32.totalorder %s2008_s19, %s2003_s23 }
  0xba   : > { %p3103_p3 = pneg %p3102_p0  ;;  %p2012_p11 = scmp.lt.u32.totalorder %s2003_s23, %s2465_s21 }
  0xbb   : > { %p2011_p10 = por %p2010_p5, %p2009_p12 }
  0xbc   : > { %p2006_p7 = pnand %p2004_p9, %p3103_p3 }
  0xbd   : > { %p2013_p13 = por %p2012_p11, %p2011_p10 }
  0xbe   : > { %p2007_p4 = pneg %p2006_p7 }
  0xc0   : > { %p2014_p2 = pnand %p2013_p13, %p2007_p4 }
  0xc2   : > { %2017 = shalt.err (!%p2014_p2)
}
  0xc3   : > { %s2018_s1 = scalar_lea.vmem %s367_s26, 64  ;;  %p3104_p8 = pmov %p3103_p3 }
  0xc4   : > { %p2019_p6 = scmp.ne.s32.totalorder %s367_s26, %s2018_s1  ;;  %s2170_s5 = smov [#allocation17]  }
  0xc5   : > { %s2023_s24 = sshll.u32 %s2170_s5, 4  ;;  %s2024_s24 = int_to_ptr.vmem [resolvable:$false] %s2023_s24 }
  0xc6   : > { %p2021_p1 = pnand %p2019_p6, %p3104_p8  ;;  %s2025_s27 = scalar_lea.vmem %s2024_s24, 128 }
  0xc7   : > { %p2026_p3 = scmp.lt.s32.totalorder %s367_s26, %s2024_s24  ;;  %p2027_p7 = scmp.lt.s32.totalorder %s2025_s27, %s2018_s1 }
  0xc8   : > { %p2022_p9 = pneg %p2021_p1 }
  0xc9   : > { %p2028_p5 = por %p2027_p7, %p2026_p3 }
  0xcb   : > { %p2029_p12 = pnand %p2028_p5, %p2022_p9 }
  0xcd   : > { %2032 = shalt.err (!%p2029_p12)
}
  0xce   : > { %1671 = dma.hbm_to_vmem [thread:$0]  (!%p3102_p0), %s2465_s21, 64, %s367_s26, %s2369_s20  }
  0xcf   : > { %p3105_p4 = scmp.ne.s32.totalorder %s3091_s13, 0 }
  0xd0   : > { %p3106_p10 = scmp.eq.s32.totalorder (!%p3105_p4), %s2264_s11, 0 }
  0xd1   : > { %375 = sbr.rel (%p3105_p4) target bundleno = 3298 (0xce2), region = 48 }
  0xd8   : > { %2110 = dma.done.wait (%p3106_p10), [#allocation7], 256   ;;  %p3107_p11 = pmov %p3106_p10 }
  0xd9   : > { %p3108_p13 = pmov %p3106_p10 }
  0xda   : > { %2112 = vsyncadd (%p3107_p11), [#allocation7], 4294967040 }
  0xdb   : > { %2114 = dma.done.wait (%p3108_p13), [#allocation10], 272   ;;  %p3109_p2 = pmov %p3106_p10 }
  0xdd   : > { %2116 = vsyncadd (%p3109_p2), [#allocation10], 4294967024  ;;  %p3110_p6 = pmov %p3109_p2 }
  0xde   : > { %p3111_p0 = pmov %p3109_p2 }
  0xdf   : > { %2118 = dma.done.wait (%p3110_p6), [#allocation13], 32  }
  0xe0   : > { %2120 = vsyncadd (%p3111_p0), [#allocation13], 4294967264  ;;  %s397_s13 = sand.u32 1, %s2264_s11   ;;  %s399_s22 = sand.u32 1, %s2139_s28  }
  0xe1   : > { %s1575_s20 = sshll.u32 %s399_s22, 6  ;;  %s398_s17 = scalar_lea.sflag [#allocation16], %s397_s13 }
  0xe2   : > { %s2503_s15 = scalar_lea.vmem [#allocation15], %s1575_s20  ;;  %p3112_p8 = scmp.ne.s32.totalorder %s3090_s12, 0 }
  0xe4   : > { %2122 = dma.done.wait (%p3112_p8), %s398_s17, 1088  }
  0xe5   : > { %2124 = vsyncadd (%p3112_p8), %s398_s17, 4294966208  ;;  %s2509_s25 = sshll.u32 %s399_s22, 2  ;;  %p1577_p1 = scmp.ne.s32.totalorder %s2147_s30, 0 }
  0xe6   : > { %s410_s21 = scalar_lea.vmem [#allocation17], %s2509_s25  ;;  %v577_v0 = vlaneseq (!%p1577_p1)  ;;  %v2171_v1 = vmov (!%p1577_p1), 0.0   ;;  %v1766_v2 = vld [vmem:[#allocation9] sm:$0xff] (!%p1577_p1)   ;;  %vm2172_vm0 = vmmov (!%p1577_p1), 0   ;;  %vm581_vm1 = vcmask (!%p1577_p1), 15360   ;;  %v1767_v4 = vld [vmem:[#allocation9 + $0x8] sm:$0xff] (!%p1577_p1)  }
  0xe7   : > { %452 = sbr.rel (%p1577_p1) target bundleno = 775 (0x307), region = 80  ;;  %1607 = vmatprep.subr.bf16.mxu0 (!%p1577_p1), %v2171_v1  ;;  %1611 = vmatprep.mubr.msk.bf16.mxu0 (!%p1577_p1), %vm2172_vm0, %v2171_v1  ;;  %v453_v5 = vld [vmem:[#allocation6] sm:$0xff] (!%p1577_p1)  ;;  %v454_v6 = vld [vmem:[#allocation6 + $0x8] sm:$0xff] (!%p1577_p1)  ;;  %vm472_vm3 = vcmask (!%p1577_p1), 261120   ;;  %vm584_vm4 = vcmask (!%p1577_p1), 23552   ;;  %v2173_v30 = vmov (!%p1577_p1), -inf  }
  0xe8   : > { %v578_v3 = vand.u32 (!%p1577_p1), 127, %v577_v0  ;;  %1608 = vmatpush3.bf16.msra.mxu0 (!%p1577_p1), %v1766_v2  ;;  %v455_v8 = vpack.c.bf16 (!%p1577_p1), %v454_v6, %v453_v5  ;;  %v1581_v10 = vld [vmem:[#allocation11] ss:$0 sm:$0xff] (!%p1577_p1)  ;;  %585 = vst.msk [vmem:[#allocation4] sm:$0xff] (!%p1577_p1), %vm584_vm4, %v2173_v30  ;;  %586 = vst.msk [vmem:[#allocation4 + $0x8] sm:$0xff] (!%p1577_p1), %vm584_vm4, %v2173_v30  ;;  %v2174_v31 = vmov (!%p1577_p1), 0  }
  0xe9   : > { %1609 = vmatprep.subr.bf16.mxu0 (!%p1577_p1), %v2171_v1  ;;  %587 = vst.msk [vmem:[#allocation5] sm:$0xff] (!%p1577_p1), %vm584_vm4, %v2174_v31  ;;  %588 = vst.msk [vmem:[#allocation5 + $0x8] sm:$0xff] (!%p1577_p1), %vm584_vm4, %v2174_v31  ;;  %v1582_v40 = vld [vmem:[#allocation12] ss:$0 sm:$0xff] (!%p1577_p1)  ;;  %v1583_v44 = vld [vmem:[#allocation14] ss:$0 sm:$0xff] (!%p1577_p1) }
  0xea   : > { %vm579_vm2 = vcmp.eq.s32.totalorder (!%p1577_p1), %v578_v3, 0 }
  0xeb   : > { %v580_v7 = vsel (!%p1577_p1), %vm579_vm2, -inf, %v2171_v1 }
  0xec   : > { %582 = vst.msk [vmem:[#allocation3] sm:$0xff] (!%p1577_p1), %vm581_vm1, %v580_v7  ;;  %583 = vst.msk [vmem:[#allocation3 + $0x8] sm:$0xff] (!%p1577_p1), %vm581_vm1, %v580_v7  ;;  %1610 = vmatpush3.bf16.msra.mxu0 (!%p1577_p1), %v1767_v4 }
  0xef   : > { %1612 = vmatmul.mubr.msk.bf16.vlgmr.msra.gmra.mrb[0].mxu0 %vm472_vm3, %v455_v8 }
 0x1c2   : > { %v510_v9 = vpop.f32.mrb[0].mxu0 }
 0x1c3   : > { %v517_v11 = vadd.f32 %v510_v9, %v453_v5  ;;  %v1613_v12 = vpop.f32.mrb[1].mxu0 }
 0x1c4   : > { %v513_v13 = vpop.f32.mrb[2].mxu0 }
 0x1c5   : > { %v526_v14 = vadd.f32 %v1581_v10, %v517_v11  ;;  %v518_v15 = vadd.f32 %v513_v13, %v454_v6  ;;  %v1614_v16 = vpop.f32.mrb[3].mxu0 }
 0x1c7   : > { %528 = vst.msk [vmem:[#allocation18] sm:$0xff] %vm472_vm3, %v526_v14  ;;  %v527_v17 = vadd.f32 %v1581_v10, %v518_v15  ;;  %v530_v18 = vsel %vm472_vm3, %v526_v14, 0.0 }
 0x1c8   : > { %531 = vadd.xlane.f32.xlu0 %v530_v18 }
 0x1c9   : > { %529 = vst.msk [vmem:[#allocation18 + $0x8] sm:$0xff] %vm472_vm3, %v527_v17  ;;  %v533_v19 = vsel %vm472_vm3, %v527_v17, 0.0 }
 0x1cc   : > { %534 = vadd.xlane.f32.xlu0 %v533_v19 }
 0x255   : > { %v532_v20 = vpop.xlane.xlu0 %531 }
 0x256   : > { %v537_v21 = vmul.f32 0.03125, %v532_v20 }
 0x258   : > { %v539_v22 = vsub.f32 %v526_v14, %v537_v21 }
 0x259   : > { %v535_v23 = vpop.xlane.xlu0 %534 }
 0x25a   : > { %v538_v24 = vmul.f32 0.03125, %v535_v23  ;;  %v541_v25 = vmul.f32 %v539_v22, %v539_v22 }
 0x25c   : > { %v540_v26 = vsub.f32 %v527_v17, %v538_v24  ;;  %v543_v27 = vsel %vm472_vm3, %v541_v25, 0.0 }
 0x25d   : > { %544 = vadd.xlane.f32.xlu1 %v543_v27 }
 0x25e   : > { %v542_v28 = vmul.f32 %v540_v26, %v540_v26 }
 0x260   : > { %v546_v29 = vsel %vm472_vm3, %v542_v28, 0.0 }
 0x261   : > { %547 = vadd.xlane.f32.xlu1 %v546_v29 }
 0x2ea   : > { %v545_v32 = vpop.xlane.xlu1 %544 }
 0x2eb   : > { %v549_v33 = vmul.f32 0.03125, %v545_v32 }
 0x2ed   : > { %v551_v34 = vadd.f32 1e-05, %v549_v33 }
 0x2ee   : > { %v548_v35 = vpop.xlane.xlu1 %547 }
 0x2ef   : > { %1768 = vrsqrt.f32 %v551_v34  ;;  %v550_v36 = vmul.f32 0.03125, %v548_v35 }
 0x2f1   : > { %v552_v37 = vadd.f32 1e-05, %v550_v36 }
 0x2f3   : > { %1770 = vrsqrt.f32 %v552_v37 }
 0x2f9   : > { %v1769_v38 = vpop.eup %1768 }
 0x2fa   : > { %v555_v39 = vmul.f32 %v1769_v38, %v539_v22 }
 0x2fc   : > { %v564_v42 = vmul.f32 %v1582_v40, %v555_v39 }
 0x2fd   : > { %v1771_v41 = vpop.eup %1770 }
 0x2fe   : > { %v556_v43 = vmul.f32 %v1771_v41, %v540_v26  ;;  %v573_v46 = vadd.f32 %v1583_v44, %v564_v42 }
 0x300   : > { %v565_v45 = vmul.f32 %v1582_v40, %v556_v43 }
 0x302   : > { %v574_v47 = vadd.f32 %v1583_v44, %v565_v45 }
 0x304   : > { %v575_v48 = vpack.c.bf16 %v574_v47, %v573_v46 }
 0x306   : > { %576 = vst.msk [vmem:[#allocation2] sm:$0xff] %vm472_vm3, %v575_v48 }
 0x307 PF: > { %v1775_v49 = vld [vmem:[%s2503_s15 + $0x4] ss:$16 sps:$4 sm:$0xff]   ;;  %v1777_v50 = vld [vmem:[%s2503_s15 + $0xc] ss:$16 sps:$4 sm:$0xff]   ;;  %v2175_v51 = vmov 0   ;;  %vm660_vm5 = vcmask 261120   ;;  %v600_v59 = vlaneseq }
 0x308   : > { %696 = vmatprep.mubr.bf16.mxu0 %v2175_v51  ;;  %739 = vmatprep.mubr.bf16.mxu1 %v2175_v51  ;;  %v1779_v52 = vld [vmem:[%s2503_s15] ss:$16 sps:$4 sm:$0xff]   ;;  %v1780_v53 = vld [vmem:[%s2503_s15 + $0x8] ss:$16 sps:$4 sm:$0xff]   ;;  %v1781_v54 = vld [vmem:[%s2503_s15 + $0x24] ss:$16 sps:$4 sm:$0xff]  }
 0x309   : > { %664 = vmatprep.subr.bf16.mxu0 %v1775_v49  ;;  %1772 = vset.pattern.permute.xlu1 %v2175_v51  ;;  %v1783_v55 = vld [vmem:[%s2503_s15 + $0x2c] ss:$16 sps:$4 sm:$0xff]   ;;  %v1785_v56 = vld [vmem:[%s2503_s15 + $0x20] ss:$16 sps:$4 sm:$0xff]   ;;  %v1786_v57 = vld [vmem:[%s2503_s15 + $0x28] ss:$16 sps:$4 sm:$0xff]  }
 0x30a   : > { %707 = vmatprep.subr.bf16.mxu1 %v1777_v50  ;;  %665 = vmatpush1.bf16.msra.mxu0 %v1779_v52  ;;  %v601_v60 = vshrl.u32 %v600_v59, 7  ;;  %v598_v63 = vld [vmem:[%s410_s21] sm:$0xf]  ;;  %vm848_vm6 = vcmask 23568   ;;  %s2177_s12 = smov 1   ;;  %vm841_vm8 = vcmask 15360  }
 0x30b   : > { %708 = vmatpush1.bf16.msra.mxu1 %v1780_v53  ;;  %666 = vmatprep.subr.bf16.mxu0 %v1781_v54  ;;  %v845_v53 = vld [vmem:[#allocation4 + $0x8] sm:$0xff] }
 0x30c   : > { %709 = vmatprep.subr.bf16.mxu1 %v1783_v55  ;;  %v602_v61 = vsub.s32 0, %v601_v60  ;;  %v610_v62 = vsub.s32 2, %v601_v60  ;;  %v606_v0 = vsub.s32 1, %v601_v60  ;;  %v614_v1 = vsub.s32 3, %v601_v60  ;;  %v2556_v28 = vld [vmem:[#allocation3] sm:$0xff]  ;;  %v2562_v31 = vld [vmem:[#allocation3 + $0x8] sm:$0xff] }
 0x30d   : > { %v589_v58 = vld [vmem:[#allocation2] sm:$0xff] }
 0x30e   : > { %667 = vmatpush1.bf16.msra.mxu0 %v1785_v56  ;;  %v603_v2 = vrot.slane %v598_v63, %v602_v61  ;;  %v611_v3 = vrot.slane %v598_v63, %v610_v62  ;;  %v607_v4 = vrot.slane %v598_v63, %v606_v0  ;;  %v615_v5 = vrot.slane %v598_v63, %v614_v1  ;;  %v844_v56 = vld [vmem:[#allocation4] sm:$0xff] }
 0x30f   : > { %710 = vmatpush1.bf16.msra.mxu1 %v1786_v57 }
 0x311   : > { %1592 = vmatmul.mubr.msk.bf16.vlgmr.msra.gmra.mrb[0].mxu0 %vm660_vm5, %v589_v58 }
 0x312   : > { %1593 = vmatmul.mubr.msk.bf16.vlgmr.msra.gmra.mrb[0].mxu1 %vm660_vm5, %v589_v58 }
 0x3e4   : > { %v698_v6 = vpop.f32.mrb[0].mxu0 }
 0x3e5   : > { %v741_v7 = vpop.f32.mrb[0].mxu1  ;;  %v2532_v8 = vadd.f32 %v698_v6, %v603_v2  ;;  %v700_v10 = vpop.f32.mrb[1].mxu0 }
 0x3e6   : > { %v2534_v9 = vadd.f32 %v741_v7, %v611_v3  ;;  %v743_v11 = vpop.f32.mrb[1].mxu1  ;;  %v2536_v12 = vadd.f32 %v700_v10, %v607_v4  ;;  %v702_v14 = vpop.f32.mrb[2].mxu0 }
 0x3e7   : > { %v2538_v13 = vadd.f32 %v743_v11, %v615_v5  ;;  %v745_v15 = vpop.f32.mrb[2].mxu1  ;;  %v2540_v16 = vadd.f32 %v702_v14, %v603_v2  ;;  %v704_v18 = vpop.f32.mrb[3].mxu0 }
 0x3e8   : > { %v2542_v17 = vadd.f32 %v745_v15, %v611_v3  ;;  %v747_v19 = vpop.f32.mrb[3].mxu1  ;;  %v750_v20 = vmax.f32 %v2532_v8, %v2534_v9  ;;  %v2546_v21 = vadd.f32 %v704_v18, %v607_v4 }
 0x3e9   : > { %v2548_v22 = vadd.f32 %v747_v19, %v615_v5  ;;  %v751_v23 = vmax.f32 %v2536_v12, %v2538_v13 }
 0x3ea   : > { %v755_v24 = vmax.f32 %v2540_v16, %v2542_v17 }
 0x3eb   : > { %v756_v25 = vmax.f32 %v2546_v21, %v2548_v22  ;;  %v752_v26 = vmax.f32 %v750_v20, %v751_v23  ;;  %v2176_v23 = vmov 1  }
 0x3ec   : > { %1773 = vset.pattern.permute.xlu0 %v2176_v23 }
 0x3ed   : > { %753 = vmax.xlane.f32.xlu0 %v752_v26  ;;  %v757_v27 = vmax.f32 %v755_v24, %v756_v25 }
 0x3f1   : > { %758 = vmax.xlane.f32.xlu0 %v757_v27 }
 0x47a   : > { %v2558_v29 = vpop.xlane.xlu0 %753 }
 0x47b   : > { %v762_v30 = vmax.f32 %v2556_v28, %v2558_v29  ;;  %v846_v0 = vsub.f32 %v2558_v29, %v844_v56 }
 0x47d   : > { %782 = vperm.xlu1 %1772, %v762_v30   ;;  %v849_v7 = vsel %vm848_vm6, %v846_v0, -inf  ;;  %v764_v14 = vsub.f32 %v2556_v28, %v762_v30 }
 0x47e   : > { %v2564_v32 = vpop.xlane.xlu0 %758 }
 0x47f   : > { %v763_v33 = vmax.f32 %v2562_v31, %v2564_v32  ;;  %v847_v60 = vsub.f32 %v2564_v32, %v845_v53  ;;  %v766_v15 = vmul.f32 1.442695, %v764_v14 }
 0x481   : > { %787 = vperm.xlu1 %1772, %v763_v33   ;;  %v850_v4 = vsel %vm848_vm6, %v847_v60, -inf  ;;  %v765_v18 = vsub.f32 %v2562_v31, %v763_v33 }
 0x482   : > { %v851_v10 = vmax.f32 %v849_v7, %v850_v4 }
 0x483   : > { %v768_v19 = vmul.f32 1.442695, %v765_v18 }
 0x485   : > { %1774 = vset.pattern.permute.xlu1 %v2176_v23 }
 0x4fc   : > { %v2568_v34 = vpop.permute.xlu1 %782 }
 0x4fd   : > { %v790_v35 = vsub.f32 %v2532_v8, %v2568_v34  ;;  %v791_v36 = vsub.f32 %v2536_v12, %v2568_v34  ;;  %v792_v37 = vsub.f32 %v2534_v9, %v2568_v34  ;;  %v793_v38 = vsub.f32 %v2538_v13, %v2568_v34 }
 0x4ff   : > { %v798_v39 = vmul.f32 1.442695, %v790_v35  ;;  %v800_v40 = vmul.f32 1.442695, %v791_v36  ;;  %v802_v41 = vmul.f32 1.442695, %v792_v37 }
 0x500   : > { %v804_v42 = vmul.f32 1.442695, %v793_v38  ;;  %v2578_v43 = vpop.permute.xlu1 %787 }
 0x501   : > { %1787 = vpow2.f32 %v798_v39  ;;  %v794_v44 = vsub.f32 %v2540_v16, %v2578_v43  ;;  %v795_v45 = vsub.f32 %v2546_v21, %v2578_v43  ;;  %v796_v46 = vsub.f32 %v2542_v17, %v2578_v43 }
 0x502   : > { %1789 = vpow2.f32 %v800_v40  ;;  %v797_v47 = vsub.f32 %v2548_v22, %v2578_v43 }
 0x503   : > { %1791 = vpow2.f32 %v802_v41  ;;  %v806_v48 = vmul.f32 1.442695, %v794_v44  ;;  %v808_v49 = vmul.f32 1.442695, %v795_v45  ;;  %v810_v50 = vmul.f32 1.442695, %v796_v46 }
 0x504   : > { %1793 = vpow2.f32 %v804_v42  ;;  %v812_v51 = vmul.f32 1.442695, %v797_v47  ;;  %v2595_v46 = vand.u32 127, %v600_v59 }
 0x505   : > { %1795 = vpow2.f32 %v806_v48 }
 0x506   : > { %1797 = vpow2.f32 %v808_v49  ;;  %vm828_vm7 = vcmp.eq.s32.totalorder %v2595_v46, 0 }
 0x507   : > { %1799 = vpow2.f32 %v810_v50 }
 0x508   : > { %1801 = vpow2.f32 %v812_v51 }
 0x509   : > { %1803 = vpow2.f32 %v766_v15 }
 0x50a   : > { %1805 = vpow2.f32 %v768_v19 }
 0x50b   : > { %v1788_v52 = vpop.eup %1787 }
 0x50c   : > { %v1790_v54 = vpop.eup %1789 }
 0x50d   : > { %v1792_v55 = vpop.eup %1791  ;;  %v814_v57 = vadd.f32 %v1790_v54, %v1788_v52 }
 0x50e   : > { %v1794_v58 = vpop.eup %1793 }
 0x50f   : > { %v1796_v61 = vpop.eup %1795  ;;  %v815_v62 = vadd.f32 %v1792_v55, %v814_v57 }
 0x510   : > { %v1798_v63 = vpop.eup %1797 }
 0x511   : > { %v816_v1 = vadd.f32 %v1794_v58, %v815_v62  ;;  %v819_v2 = vadd.f32 %v1798_v63, %v1796_v61  ;;  %v1800_v3 = vpop.eup %1799 }
 0x512   : > { %v1802_v6 = vpop.eup %1801 }
 0x513   : > { %817 = vadd.xlane.f32.xlu0 %v816_v1  ;;  %v820_v5 = vadd.f32 %v1800_v3, %v819_v2  ;;  %v1804_v20 = vpop.eup %1803 }
 0x514   : > { %v1806_v24 = vpop.eup %1805 }
 0x515   : > { %v821_v11 = vadd.f32 %v1802_v6, %v820_v5 }
 0x517   : > { %852 = vmax.xlane.f32.xlu0 %v851_v10  ;;  %822 = vadd.xlane.f32.xlu1 %v821_v11 }
 0x52d   : > { %772 = vrot.lane.b32.xlu0 %v1804_v20, %s2177_s12 }
 0x531   : > { %774 = vrot.lane.b32.xlu0 %v1806_v24, %s2177_s12 }
 0x5a0   : > { %v818_v25 = vpop.xlane.xlu0 %817 }
 0x5a4   : > { %v853_v26 = vpop.xlane.xlu0 %852  ;;  %v823_v42 = vpop.xlane.xlu1 %822 }
 0x5a5   : > { %v854_v27 = vrot.slane %v853_v26, 4 }
 0x5a7   : > { %v855_v35 = vmax.f32 %v853_v26, %v854_v27 }
 0x5a8   : > { %v773_v36 = vpop.permute.xlu0 %772 }
 0x5a9   : > { %v856_v30 = vrot.slane %v855_v35, 2  ;;  %v778_v37 = vmul.f32 %v773_v36, %v2556_v28 }
 0x5ab   : > { %v824_v33 = vadd.f32 %v818_v25, %v778_v37  ;;  %v857_v38 = vmax.f32 %v855_v35, %v856_v30 }
 0x5ac   : > { %v775_v39 = vpop.permute.xlu0 %774 }
 0x5ad   : > { %v779_v40 = vmul.f32 %v775_v39, %v2562_v31  ;;  %831 = vperm.xlu0 %1773, %v824_v33   ;;  %v858_v41 = vrot.slane %v857_v38, 1 }
 0x5af   : > { %v825_v44 = vadd.f32 %v823_v42, %v779_v40  ;;  %v859_v45 = vmax.f32 %v857_v38, %v858_v41 }
 0x5b1   : > { %1615 = vpush %v859_v45  ;;  %836 = vperm.xlu1 %1774, %v825_v44  }
 0x5e2   : > { %s1616_s16 = spop %1615 }
 0x5e3   : > { %p861_p9 = scmp.gt.f32.partialorder %s1616_s16, 0.0 }
 0x5e4   : > { %v2605_v49 = vadd.s32 (%p861_p9), 128, %v2595_v46  ;;  %v2608_v59 = vadd.s32 (%p861_p9), 256, %v2595_v46  ;;  %v2611_v50 = vadd.s32 (%p861_p9), 384, %v2595_v46  ;;  %vm873_vm9 = vcmp.eq.f32.partialorder (%p861_p9), %v2532_v8, %v2558_v29  ;;  %s1594_s26 = sshll.u32 (%p861_p9), %s2147_s30, 9  ;;  %s2178_s23 = smov (%p861_p9), 127  }
 0x5e5   : > { %vm874_vm10 = vcmp.eq.f32.partialorder (%p861_p9), %v2536_v12, %v2558_v29  ;;  %vm875_vm11 = vcmp.eq.f32.partialorder (%p861_p9), %v2534_v9, %v2558_v29  ;;  %vm876_vm12 = vcmp.eq.f32.partialorder (%p861_p9), %v2538_v13, %v2558_v29  ;;  %vm877_vm13 = vcmp.eq.f32.partialorder (%p861_p9), %v2540_v16, %v2564_v32 }
 0x5e6   : > { %v883_v51 = vsel (%p861_p9), %vm875_vm11, %v2608_v59, 2147483647  ;;  %v884_v52 = vsel (%p861_p9), %vm876_vm12, %v2611_v50, 2147483647  ;;  %vm878_vm0 = vcmp.eq.f32.partialorder (%p861_p9), %v2546_v21, %v2564_v32  ;;  %vm879_vm1 = vcmp.eq.f32.partialorder (%p861_p9), %v2542_v17, %v2564_v32 }
 0x5e7   : > { %vm880_vm2 = vcmp.eq.f32.partialorder (%p861_p9), %v2548_v22, %v2564_v32  ;;  %v885_v55 = vsel (%p861_p9), %vm877_vm13, %v2595_v46, 2147483647  ;;  %v886_v56 = vsel (%p861_p9), %vm878_vm0, %v2605_v49, 2147483647  ;;  %v887_v57 = vsel (%p861_p9), %vm879_vm1, %v2608_v59, 2147483647 }
 0x5e8   : > { %v888_v58 = vsel (%p861_p9), %vm880_vm2, %v2611_v50, 2147483647  ;;  %vm909_vm4 = vcmp.lt.s32.totalorder (%p861_p9), %v885_v55, %v887_v57 }
 0x5e9   : > { %vm911_vm5 = vcmp.lt.s32.totalorder (%p861_p9), %v886_v56, %v888_v58  ;;  %v910_v62 = vsel (%p861_p9), %vm909_vm4, %v885_v55, %v887_v57 }
 0x5ea   : > { %v912_v63 = vsel (%p861_p9), %vm911_vm5, %v886_v56, %v888_v58 }
 0x5eb   : > { %vm913_vm6 = vcmp.lt.s32.totalorder (%p861_p9), %v910_v62, %v912_v63 }
 0x5ec   : > { %v914_v1 = vsel (%p861_p9), %vm913_vm6, %v910_v62, %v912_v63 }
 0x5ed   : > { %v916_v2 = vshra.s32 (%p861_p9), %v914_v1, 16  ;;  %v915_v6 = vand.u32 (%p861_p9), 65535, %v914_v1 }
 0x5ef   : > { %v918_v3 = vcvt.s32.f32 (%p861_p9), %v916_v2  ;;  %v917_v11 = vcvt.s32.f32 (%p861_p9), %v915_v6 }
 0x62c   : > { %v832_v28 = vpop.permute.xlu0 %831  ;;  %864 = sbr.rel (!%p861_p9) target bundleno = 2962 (0xb92), region = 84 }
 0x62d   : > { %v839_v31 = vsel %vm828_vm7, %v2568_v34, %v832_v28  ;;  %v881_v34 = vsel (%p861_p9), %vm873_vm9, %v2595_v46, 2147483647 }
 0x62e   : > { %842 = vst.msk [vmem:[#allocation3] sm:$0xff] %vm841_vm8, %v839_v31  ;;  %vm889_vm14 = vcmp.lt.s32.totalorder (%p861_p9), %v881_v34, %v883_v51 }
 0x62f   : > { %v890_v53 = vsel (%p861_p9), %vm889_vm14, %v881_v34, %v883_v51 }
 0x630   : > { %v837_v47 = vpop.permute.xlu1 %836 }
 0x631   : > { %v840_v48 = vsel %vm828_vm7, %v2578_v43, %v837_v47  ;;  %v882_v43 = vsel (%p861_p9), %vm874_vm10, %v2605_v49, 2147483647 }
 0x632   : > { %843 = vst.msk [vmem:[#allocation3 + $0x8] sm:$0xff] %vm841_vm8, %v840_v48  ;;  %vm891_vm15 = vcmp.lt.s32.totalorder (%p861_p9), %v882_v43, %v884_v52 }
 0x633   : > { %v892_v54 = vsel %vm891_vm15, %v882_v43, %v884_v52 }
 0x634   : > { %vm893_vm3 = vcmp.lt.s32.totalorder %v890_v53, %v892_v54 }
 0x635   : > { %v894_v60 = vsel %vm893_vm3, %v890_v53, %v892_v54 }
 0x636   : > { %v896_v61 = vshra.s32 %v894_v60, 16  ;;  %v895_v4 = vand.u32 65535, %v894_v60 }
 0x638   : > { %v898_v0 = vcvt.s32.f32 %v896_v61  ;;  %v897_v5 = vcvt.s32.f32 %v895_v4 }
 0x63a   : > { %899 = vmin.xlane.f32.xlu0 %v898_v0 }
 0x63e   : > { %919 = vmin.xlane.f32.xlu0 %v918_v3 }
 0x6c7   : > { %v900_v7 = vpop.xlane.xlu0 %899 }
 0x6c8   : > { %vm901_vm8 = vcmp.eq.f32.partialorder %v898_v0, %v900_v7  ;;  %v906_v18 = vcvt.f32.s32 %v900_v7 }
 0x6c9   : > { %v902_v10 = vsel %vm901_vm8, %v897_v5, inf }
 0x6ca   : > { %903 = vmin.xlane.f32.xlu1 %v902_v10  ;;  %v907_v23 = vshll.u32 %v906_v18, 16 }
 0x6cb   : > { %v920_v14 = vpop.xlane.xlu0 %919 }
 0x6cc   : > { %vm921_vm9 = vcmp.eq.f32.partialorder %v918_v3, %v920_v14  ;;  %v926_v19 = vcvt.f32.s32 %v920_v14 }
 0x6cd   : > { %v922_v15 = vsel %vm921_vm9, %v917_v11, inf }
 0x6ce   : > { %923 = vmin.xlane.f32.xlu1 %v922_v15  ;;  %v927_v26 = vshll.u32 %v926_v19, 16 }
 0x757   : > { %v904_v20 = vpop.xlane.xlu1 %903 }
 0x758   : > { %v905_v24 = vcvt.f32.s32 %v904_v20 }
 0x75a   : > { %v2637_v25 = vadd.s32 %v907_v23, %v905_v24 }
 0x75b   : > { %v924_v27 = vpop.xlane.xlu1 %923 }
 0x75c   : > { %v925_v35 = vcvt.f32.s32 %v924_v27  ;;  %vm929_vm10 = vcmp.eq.s32.totalorder %v2595_v46, %v2637_v25  ;;  %vm930_vm11 = vcmp.eq.s32.totalorder %v2605_v49, %v2637_v25  ;;  %vm931_vm12 = vcmp.eq.s32.totalorder %v2608_v59, %v2637_v25 }
 0x75d   : > { %vm932_vm13 = vcmp.eq.s32.totalorder %v2611_v50, %v2637_v25  ;;  %v2648_v36 = vsel %vm929_vm10, -inf, %v2532_v8  ;;  %v2651_v30 = vsel %vm930_vm11, -inf, %v2536_v12  ;;  %v2654_v37 = vsel %vm931_vm12, -inf, %v2534_v9 }
 0x75e   : > { %v2656_v33 = vadd.s32 %v927_v26, %v925_v35  ;;  %v2659_v38 = vsel %vm932_vm13, -inf, %v2538_v13  ;;  %v970_v39 = vmax.f32 %v2648_v36, %v2654_v37 }
 0x75f   : > { %v971_v40 = vmax.f32 %v2651_v30, %v2659_v38 }
 0x760   : > { %vm933_vm14 = vcmp.eq.s32.totalorder %v2595_v46, %v2656_v33  ;;  %vm934_vm15 = vcmp.eq.s32.totalorder %v2605_v49, %v2656_v33  ;;  %vm935_vm0 = vcmp.eq.s32.totalorder %v2608_v59, %v2656_v33  ;;  %vm936_vm1 = vcmp.eq.s32.totalorder %v2611_v50, %v2656_v33 }
 0x761   : > { %v972_v8 = vmax.f32 %v970_v39, %v971_v40  ;;  %v2674_v9 = vsel %vm933_vm14, -inf, %v2540_v16  ;;  %v2677_v12 = vsel %vm934_vm15, -inf, %v2546_v21  ;;  %v2680_v13 = vsel %vm935_vm0, -inf, %v2542_v17 }
 0x762   : > { %v2683_v41 = vsel %vm936_vm1, -inf, %v2548_v22  ;;  %v975_v42 = vmax.f32 %v2674_v9, %v2680_v13 }
 0x763   : > { %973 = vmax.xlane.f32.xlu0 %v972_v8  ;;  %v976_v44 = vmax.f32 %v2677_v12, %v2683_v41 }
 0x765   : > { %v977_v45 = vmax.f32 %v975_v42, %v976_v44 }
 0x767   : > { %978 = vmax.xlane.f32.xlu1 %v977_v45 }
 0x7f0   : > { %v2689_v16 = vpop.xlane.xlu0 %973 }
 0x7f1   : > { %vm980_vm2 = vcmp.eq.f32.partialorder %v2648_v36, %v2689_v16  ;;  %vm981_vm3 = vcmp.eq.f32.partialorder %v2651_v30, %v2689_v16  ;;  %vm982_vm4 = vcmp.eq.f32.partialorder %v2654_v37, %v2689_v16  ;;  %vm983_vm5 = vcmp.eq.f32.partialorder %v2659_v38, %v2689_v16 }
 0x7f2   : > { %v988_v17 = vsel %vm980_vm2, %v2595_v46, 2147483647  ;;  %v989_v21 = vsel %vm981_vm3, %v2605_v49, 2147483647  ;;  %v990_v22 = vsel %vm982_vm4, %v2608_v59, 2147483647 }
 0x7f3   : > { %v991_v28 = vsel %vm983_vm5, %v2611_v50, 2147483647  ;;  %vm996_vm6 = vcmp.lt.s32.totalorder %v988_v17, %v990_v22 }
 0x7f4   : > { %v2703_v31 = vpop.xlane.xlu1 %978  ;;  %v997_v47 = vsel %vm996_vm6, %v988_v17, %v990_v22  ;;  %vm998_vm8 = vcmp.lt.s32.totalorder %v989_v21, %v991_v28  ;;  %v2746_v17 = vld [vmem:[#allocation4 + $0x8] sm:$0xff]  ;;  %v2750_v22 = vld [vmem:[#allocation4] sm:$0xff] }
 0x7f5   : > { %v999_v48 = vsel %vm998_vm8, %v989_v21, %v991_v28  ;;  %vm984_vm9 = vcmp.eq.f32.partialorder %v2674_v9, %v2703_v31  ;;  %vm985_vm10 = vcmp.eq.f32.partialorder %v2677_v12, %v2703_v31  ;;  %vm986_vm11 = vcmp.eq.f32.partialorder %v2680_v13, %v2703_v31 }
 0x7f6   : > { %vm1000_vm12 = vcmp.lt.s32.totalorder %v997_v47, %v999_v48  ;;  %vm987_vm13 = vcmp.eq.f32.partialorder %v2683_v41, %v2703_v31  ;;  %v992_v34 = vsel %vm984_vm9, %v2595_v46, 2147483647  ;;  %v993_v43 = vsel %vm985_vm10, %v2605_v49, 2147483647 }
 0x7f7   : > { %v1001_v51 = vsel %vm1000_vm12, %v997_v47, %v999_v48  ;;  %v994_v52 = vsel %vm986_vm11, %v2608_v59, 2147483647  ;;  %v995_v53 = vsel %vm987_vm13, %v2611_v50, 2147483647  ;;  %v2748_v21 = vstv %s1594_s26 }
 0x7f8   : > { %v1003_v54 = vshra.s32 %v1001_v51, 16  ;;  %vm1016_vm14 = vcmp.lt.s32.totalorder %v992_v34, %v994_v52  ;;  %vm1018_vm15 = vcmp.lt.s32.totalorder %v993_v43, %v995_v53  ;;  %v1002_v62 = vand.u32 65535, %v1001_v51 }
 0x7f9   : > { %v1017_v55 = vsel %vm1016_vm14, %v992_v34, %v994_v52  ;;  %v1019_v56 = vsel %vm1018_vm15, %v993_v43, %v995_v53  ;;  %vm949_vm12 = vcmp.gt.f32.partialorder %v2564_v32, %v2746_v17  ;;  %vm948_vm13 = vcmp.gt.f32.partialorder %v2558_v29, %v2750_v22 }
 0x7fa   : > { %v1005_v57 = vcvt.s32.f32 %v1003_v54  ;;  %vm1020_vm0 = vcmp.lt.s32.totalorder %v1017_v55, %v1019_v56  ;;  %v1004_v0 = vcvt.s32.f32 %v1002_v62 }
 0x7fb   : > { %v1021_v58 = vsel %vm1020_vm0, %v1017_v55, %v1019_v56 }
 0x7fc   : > { %1006 = vmin.xlane.f32.xlu0 %v1005_v57  ;;  %v1023_v60 = vshra.s32 %v1021_v58, 16  ;;  %v1022_v1 = vand.u32 65535, %v1021_v58 }
 0x7fe   : > { %v1025_v61 = vcvt.s32.f32 %v1023_v60  ;;  %v1024_v4 = vcvt.s32.f32 %v1022_v1 }
 0x800   : > { %1026 = vmin.xlane.f32.xlu1 %v1025_v61 }
 0x889   : > { %v1007_v63 = vpop.xlane.xlu0 %1006 }
 0x88a   : > { %vm1008_vm1 = vcmp.eq.f32.partialorder %v1005_v57, %v1007_v63  ;;  %v1013_v6 = vcvt.f32.s32 %v1007_v63 }
 0x88b   : > { %v1009_v2 = vsel %vm1008_vm1, %v1004_v0, inf }
 0x88c   : > { %1010 = vmin.xlane.f32.xlu0 %v1009_v2  ;;  %v1014_v11 = vshll.u32 %v1013_v6, 16 }
 0x88d   : > { %v1027_v3 = vpop.xlane.xlu1 %1026 }
 0x88e   : > { %vm1028_vm2 = vcmp.eq.f32.partialorder %v1025_v61, %v1027_v3  ;;  %v1033_v7 = vcvt.f32.s32 %v1027_v3  ;;  %v868_v3 = vld [vmem:[#allocation5 + $0x8] sm:$0xff] }
 0x88f   : > { %v1029_v5 = vsel %vm1028_vm2, %v1024_v4, inf }
 0x890   : > { %1030 = vmin.xlane.f32.xlu1 %v1029_v5  ;;  %v1034_v18 = vshll.u32 %v1033_v7, 16  ;;  %v2179_v5 = vmov 0  }
 0x891   : > { %1808 = vset.pattern.permute.xlu1 %v2179_v5  ;;  %1807 = vset.pattern.permute.xlu0 %v2179_v5 }
 0x919   : > { %v1011_v10 = vpop.xlane.xlu0 %1010 }
 0x91a   : > { %v1012_v14 = vcvt.f32.s32 %v1011_v10 }
 0x91c   : > { %v2717_v15 = vadd.s32 %v1014_v11, %v1012_v14 }
 0x91d   : > { %v1031_v19 = vpop.xlane.xlu1 %1030 }
 0x91e   : > { %v1032_v20 = vcvt.f32.s32 %v1031_v19  ;;  %vm1036_vm3 = vcmp.eq.s32.totalorder %v2595_v46, %v2717_v15  ;;  %vm1037_vm4 = vcmp.eq.s32.totalorder %v2605_v49, %v2717_v15  ;;  %vm1038_vm5 = vcmp.eq.s32.totalorder %v2608_v59, %v2717_v15 }
 0x91f   : > { %vm1039_vm6 = vcmp.eq.s32.totalorder %v2611_v50, %v2717_v15  ;;  %v1044_v23 = vsel %vm1036_vm3, -inf, %v2648_v36  ;;  %v1045_v24 = vsel %vm1037_vm4, -inf, %v2651_v30  ;;  %v1046_v26 = vsel %vm1038_vm5, -inf, %v2654_v37 }
 0x920   : > { %v2730_v27 = vadd.s32 %v1034_v18, %v1032_v20  ;;  %v1047_v35 = vsel %vm1039_vm6, -inf, %v2659_v38  ;;  %v1086_v39 = vmax.f32 %v1044_v23, %v1046_v26 }
 0x921   : > { %v1087_v40 = vmax.f32 %v1045_v24, %v1047_v35 }
 0x922   : > { %vm1040_vm8 = vcmp.eq.s32.totalorder %v2595_v46, %v2730_v27  ;;  %vm1041_vm9 = vcmp.eq.s32.totalorder %v2605_v49, %v2730_v27  ;;  %vm1042_vm10 = vcmp.eq.s32.totalorder %v2608_v59, %v2730_v27  ;;  %vm1043_vm11 = vcmp.eq.s32.totalorder %v2611_v50, %v2730_v27 }
 0x923   : > { %v1088_v36 = vmax.f32 %v1086_v39, %v1087_v40  ;;  %v1048_v30 = vsel %vm1040_vm8, -inf, %v2674_v9  ;;  %v1049_v37 = vsel %vm1041_vm9, -inf, %v2677_v12  ;;  %v1050_v38 = vsel %vm1042_vm10, -inf, %v2680_v13  ;;  %v2765_v13 = vld [vmem:[#allocation5] sm:$0xff] }
 0x924   : > { %v1051_v8 = vsel %vm1043_vm11, -inf, %v2683_v41  ;;  %v1091_v42 = vmax.f32 %v1048_v30, %v1050_v38  ;;  %v2759_v9 = vsel %vm949_vm12, %v2564_v32, %v2746_v17  ;;  %v946_v12 = vadd.s32 %v2748_v21, %v2637_v25 }
 0x925   : > { %1089 = vmax.xlane.f32.xlu0 %v1088_v36  ;;  %v1092_v44 = vmax.f32 %v1049_v37, %v1051_v8  ;;  %v1053_v39 = vadd.s32 %v2730_v27, %v2748_v21 }
 0x926   : > { %v2773_v41 = vsel %vm948_vm13, %v946_v12, %v2765_v13 }
 0x927   : > { %v1093_v45 = vmax.f32 %v1091_v42, %v1092_v44  ;;  %v1052_v44 = vadd.s32 %v2717_v15, %v2748_v21 }
 0x929   : > { %1094 = vmax.xlane.f32.xlu1 %v1093_v45 }
 0x93a   : > { %958 = vrot.lane.b32.xlu1 %v2759_v9, %s2178_s23 }
 0x93e   : > { %964 = vrot.lane.b32.xlu1 %v2773_v41, %s2178_s23 }
 0x9b2   : > { %v2777_v28 = vpop.xlane.xlu0 %1089 }
 0x9b3   : > { %vm1096_vm14 = vcmp.eq.f32.partialorder %v1044_v23, %v2777_v28  ;;  %vm1097_vm15 = vcmp.eq.f32.partialorder %v1045_v24, %v2777_v28  ;;  %vm1098_vm0 = vcmp.eq.f32.partialorder %v1046_v26, %v2777_v28  ;;  %vm1099_vm1 = vcmp.eq.f32.partialorder %v1047_v35, %v2777_v28 }
 0x9b4   : > { %v1104_v25 = vsel %vm1096_vm14, %v2595_v46, 2147483647  ;;  %v1105_v47 = vsel %vm1097_vm15, %v2605_v49, 2147483647  ;;  %v1106_v48 = vsel %vm1098_vm0, %v2608_v59, 2147483647 }
 0x9b5   : > { %v1107_v34 = vsel %vm1099_vm1, %v2611_v50, 2147483647  ;;  %vm1112_vm2 = vcmp.lt.s32.totalorder %v1104_v25, %v1106_v48 }
 0x9b6   : > { %v2787_v43 = vpop.xlane.xlu1 %1094  ;;  %v1113_v51 = vsel %vm1112_vm2, %v1104_v25, %v1106_v48  ;;  %vm1114_vm3 = vcmp.lt.s32.totalorder %v1105_v47, %v1107_v34  ;;  %vm1055_vm2 = vcmp.gt.f32.partialorder %v2703_v31, %v2759_v9 }
 0x9b7   : > { %v1115_v52 = vsel %vm1114_vm3, %v1105_v47, %v1107_v34  ;;  %vm1100_vm4 = vcmp.eq.f32.partialorder %v1048_v30, %v2787_v43  ;;  %vm1101_vm5 = vcmp.eq.f32.partialorder %v1049_v37, %v2787_v43  ;;  %vm1102_vm6 = vcmp.eq.f32.partialorder %v1050_v38, %v2787_v43 }
 0x9b8   : > { %vm1116_vm8 = vcmp.lt.s32.totalorder %v1113_v51, %v1115_v52  ;;  %vm1103_vm9 = vcmp.eq.f32.partialorder %v1051_v8, %v2787_v43  ;;  %v1108_v53 = vsel %vm1100_vm4, %v2595_v46, 2147483647  ;;  %v1109_v54 = vsel %vm1101_vm5, %v2605_v49, 2147483647 }
 0x9b9   : > { %v1117_v55 = vsel %vm1116_vm8, %v1113_v51, %v1115_v52  ;;  %v1110_v56 = vsel %vm1102_vm6, %v2608_v59, 2147483647  ;;  %v1111_v57 = vsel %vm1103_vm9, %v2611_v50, 2147483647  ;;  %v947_v49 = vadd.s32 %v2748_v21, %v2656_v33 }
 0x9ba   : > { %v1119_v58 = vshra.s32 %v1117_v55, 16  ;;  %vm1132_vm10 = vcmp.lt.s32.totalorder %v1108_v53, %v1110_v56  ;;  %vm1134_vm11 = vcmp.lt.s32.totalorder %v1109_v54, %v1111_v57  ;;  %v959_v2 = vpop.permute.xlu1 %958  ;;  %v2819_v33 = vsel %vm948_vm13, %v2558_v29, %v2750_v22 }
 0x9bb   : > { %v1133_v60 = vsel %vm1132_vm10, %v1108_v53, %v1110_v56  ;;  %v1135_v61 = vsel %vm1134_vm11, %v1109_v54, %v1111_v57  ;;  %v2803_v59 = vsel %vm949_vm12, %v2746_v17, %v959_v2  ;;  %v2808_v50 = vsel %vm949_vm12, %v947_v49, %v868_v3 }
 0x9bc   : > { %v1121_v62 = vcvt.s32.f32 %v1119_v58  ;;  %vm1136_vm14 = vcmp.lt.s32.totalorder %v1133_v60, %v1135_v61  ;;  %vm1057_vm15 = vcmp.gt.f32.partialorder %v2703_v31, %v2803_v59  ;;  %v1059_v32 = vsel %vm1055_vm2, %v2703_v31, %v2759_v9 }
 0x9bd   : > { %v1137_v63 = vsel %vm1136_vm14, %v1133_v60, %v1135_v61  ;;  %v1063_v4 = vsel %vm1057_vm15, %v2703_v31, %v2803_v59  ;;  %v1118_v30 = vand.u32 65535, %v1117_v55  ;;  %vm1054_vm5 = vcmp.gt.f32.partialorder %v2689_v16, %v2819_v33 }
 0x9be   : > { %1122 = vmin.xlane.f32.xlu0 %v1121_v62  ;;  %v1139_v0 = vshra.s32 %v1137_v63, 16  ;;  %v965_v6 = vpop.permute.xlu1 %964  ;;  %v1138_v10 = vand.u32 65535, %v1137_v63  ;;  %v1065_v26 = vsel %vm1055_vm2, %v2759_v9, %v1063_v4  ;;  %v1058_v29 = vsel %vm1054_vm5, %v2689_v16, %v2819_v33 }
 0x9bf   : > { %vm1157_vm3 = vcmp.gt.f32.partialorder %v2787_v43, %v1065_v26  ;;  %v1120_v37 = vcvt.s32.f32 %v1118_v30  ;;  %v968_v45 = vsel %vm948_vm13, %v2765_v13, %v965_v6  ;;  %vm1180_vm10 = vcmp.eq.s32.totalorder %v2595_v46, 1 }
 0x9c0   : > { %v1141_v1 = vcvt.s32.f32 %v1139_v0  ;;  %v1140_v18 = vcvt.s32.f32 %v1138_v10  ;;  %v1165_v36 = vsel %vm1157_vm3, %v2787_v43, %v1065_v26  ;;  %v1061_v0 = vsel %vm1055_vm2, %v1053_v39, %v2808_v50 }
 0x9c1   : > { %vm1215_vm11 = vcmask 23552  }
 0x9c2   : > { %1142 = vmin.xlane.f32.xlu1 %v1141_v1 }
 0x9d3   : > { %966 = vrot.lane.b32.xlu1 %v2808_v50, %s2178_s23 }
 0x9d4   : > { %956 = vrot.lane.b32.xlu0 %v2819_v33, %s2178_s23 }
 0x9d7   : > { %1074 = vrot.lane.b32.xlu1 %v1063_v4, %s2178_s23 }
 0xa4b   : > { %v2829_v7 = vpop.xlane.xlu0 %1122 }
 0xa4c   : > { %vm1124_vm4 = vcmp.eq.f32.partialorder %v1121_v62, %v2829_v7  ;;  %v1129_v31 = vcvt.f32.s32 %v2829_v7  ;;  %v1060_v7 = vsel %vm1054_vm5, %v1052_v44, %v2773_v41 }
 0xa4d   : > { %v1125_v38 = vsel %vm1124_vm4, %v1120_v37, inf }
 0xa4f   : > { %v1143_v11 = vpop.xlane.xlu1 %1142  ;;  %v957_v14 = vpop.permute.xlu0 %956 }
 0xa50   : > { %v2835_v19 = vsel %vm948_vm13, %v2750_v22, %v957_v14  ;;  %vm1144_vm0 = vcmp.eq.f32.partialorder %v1141_v1, %v1143_v11  ;;  %vm1154_vm13 = vcmp.gt.f32.partialorder %v2777_v28, %v1058_v29  ;;  %v1149_v54 = vcvt.f32.s32 %v1143_v11 }
 0xa51   : > { %vm1056_vm1 = vcmp.gt.f32.partialorder %v2689_v16, %v2835_v19  ;;  %v1145_v20 = vsel %vm1144_vm0, %v1140_v18, inf  ;;  %v1160_v53 = vsel %vm1154_vm13, %v2777_v28, %v1058_v29 }
 0xa52   : > { %1146 = vmin.xlane.f32.xlu1 %v1145_v20  ;;  %v1062_v23 = vsel %vm1056_vm1, %v2689_v16, %v2835_v19  ;;  %v1066_v12 = vsel %vm1056_vm1, %v1052_v44, %v968_v45  ;;  %v1150_v56 = vshll.u32 %v1149_v54, 16 }
 0xa53   : > { %1072 = vrot.lane.b32.xlu0 %v1062_v23, %s2178_s23  ;;  %v967_v24 = vpop.permute.xlu1 %966  ;;  %v1064_v8 = vsel %vm1054_vm5, %v2819_v33, %v1062_v23 }
 0xa54   : > { %v969_v35 = vsel %vm949_vm12, %v868_v3, %v967_v24  ;;  %vm1155_vm12 = vcmp.gt.f32.partialorder %v2787_v43, %v1059_v32  ;;  %vm1156_vm6 = vcmp.gt.f32.partialorder %v2777_v28, %v1064_v8 }
 0xa55   : > { %v1067_v40 = vsel %vm1057_vm15, %v1053_v39, %v969_v35  ;;  %v1167_v27 = vsel %vm1155_vm12, %v1059_v32, %v1165_v36  ;;  %v1164_v15 = vsel %vm1156_vm6, %v2777_v28, %v1064_v8  ;;  %v1161_v47 = vsel %vm1155_vm12, %v2787_v43, %v1059_v32 }
 0xa56   : > { %v1166_v22 = vsel %vm1154_vm13, %v1058_v29, %v1164_v15  ;;  %v1069_v63 = vsel %vm1055_vm2, %v2808_v50, %v1067_v40  ;;  %v1130_v50 = vshll.u32 %v1129_v31, 16 }
 0xa57   : > { %v1075_v42 = vpop.permute.xlu1 %1074 }
 0xa58   : > { %v1079_v17 = vsel %vm1057_vm15, %v2803_v59, %v1075_v42 }
 0xa59   : > { %vm1159_vm8 = vcmp.gt.f32.partialorder %v2787_v43, %v1079_v17 }
 0xa5a   : > { %v1173_v13 = vsel %vm1159_vm8, %v2787_v43, %v1079_v17  ;;  %v1068_v43 = vsel %vm1054_vm5, %v2773_v41, %v1066_v12 }
 0xa5b   : > { %v1175_v25 = vsel %vm1157_vm3, %v1065_v26, %v1173_v13 }
 0xa63   : > { %1082 = vrot.lane.b32.xlu1 %v1067_v40, %s2178_s23 }
 0xa67   : > { %1188 = vperm.xlu1 %1808, %v1167_v27  }
 0xa72   : > { %1126 = vmin.xlane.f32.xlu0 %v1125_v38 }
 0xa88   : > { %1080 = vrot.lane.b32.xlu0 %v1066_v12, %s2178_s23 }
 0xa8c   : > { %1183 = vperm.xlu0 %1807, %v1166_v22  }
 0xa90   : > { %1198 = vperm.xlu0 %1807, %v1175_v25  }
 0xa94   : > { %1210 = vperm.xlu0 %1807, %v1161_v47  }
 0xac5   : > { %v1073_v48 = vpop.permute.xlu0 %1072 }
 0xac6   : > { %v1078_v34 = vsel %vm1056_vm1, %v2835_v19, %v1073_v48 }
 0xac7   : > { %vm1158_vm9 = vcmp.gt.f32.partialorder %v2777_v28, %v1078_v34 }
 0xac8   : > { %v1172_v51 = vsel %vm1158_vm9, %v2777_v28, %v1078_v34 }
 0xac9   : > { %v1174_v52 = vsel %vm1156_vm6, %v1064_v8, %v1172_v51 }
 0xaca   : > { %1193 = vperm.xlu1 %1808, %v1174_v52  }
 0xace   : > { %1205 = vperm.xlu1 %1808, %v1160_v53  }
 0xadf   : > { %v1147_v55 = vpop.xlane.xlu1 %1146 }
 0xae0   : > { %v1148_v57 = vcvt.f32.s32 %v1147_v55 }
 0xae2   : > { %v1151_v58 = vadd.s32 %v1150_v56, %v1148_v57 }
 0xae3   : > { %v1083_v60 = vpop.permute.xlu1 %1082 }
 0xae4   : > { %v1153_v61 = vadd.s32 %v1151_v58, %v2748_v21  ;;  %v1085_v62 = vsel %vm1057_vm15, %v969_v35, %v1083_v60 }
 0xae6   : > { %v1169_v1 = vsel %vm1157_vm3, %v1153_v61, %v1069_v63  ;;  %v1177_v2 = vsel %vm1159_vm8, %v1153_v61, %v1085_v62  ;;  %v1163_v59 = vsel %vm1155_vm12, %v1153_v61, %v1061_v0 }
 0xae7   : > { %v1171_v49 = vsel %vm1155_vm12, %v1061_v0, %v1169_v1  ;;  %v1179_v3 = vsel %vm1157_vm3, %v1069_v63, %v1177_v2  ;;  %v1189_v41 = vpop.permute.xlu1 %1188 }
 0xae8   : > { %1222 = vperm.xlu0 %1807, %v1171_v49  }
 0xaec   : > { %1228 = vperm.xlu0 %1807, %v1179_v3  }
 0xaf0   : > { %1236 = vperm.xlu0 %1807, %v1163_v59  }
 0xaff   : > { %v1127_v9 = vpop.xlane.xlu0 %1126 }
 0xb00   : > { %v1128_v4 = vcvt.f32.s32 %v1127_v9 }
 0xb02   : > { %v1131_v5 = vadd.s32 %v1130_v50, %v1128_v4 }
 0xb03   : > { %v1081_v6 = vpop.permute.xlu0 %1080 }
 0xb04   : > { %v1152_v10 = vadd.s32 %v1131_v5, %v2748_v21  ;;  %v1084_v11 = vsel %vm1056_vm1, %v968_v45, %v1081_v6 }
 0xb06   : > { %v1168_v14 = vsel %vm1156_vm6, %v1152_v10, %v1068_v43  ;;  %v1176_v21 = vsel %vm1158_vm9, %v1152_v10, %v1084_v11  ;;  %v1162_v16 = vsel %vm1154_vm13, %v1152_v10, %v1060_v7 }
 0xb07   : > { %v1170_v18 = vsel %vm1154_vm13, %v1060_v7, %v1168_v14  ;;  %v1178_v19 = vsel %vm1156_vm6, %v1068_v43, %v1176_v21 }
 0xb08   : > { %1219 = vperm.xlu1 %1808, %v1170_v18  }
 0xb0b   : > { %v1184_v20 = vpop.permute.xlu0 %1183 }
 0xb0c   : > { %1225 = vperm.xlu1 %1808, %v1178_v19  }
 0xb0f   : > { %v1199_v23 = vpop.permute.xlu0 %1198 }
 0xb10   : > { %1233 = vperm.xlu1 %1808, %v1162_v16   ;;  %v1202_v33 = vsel %vm1180_vm10, %v1189_v41, %v1199_v23 }
 0xb13   : > { %v1211_v24 = vpop.permute.xlu0 %1210 }
 0xb14   : > { %v1214_v26 = vsel %vm828_vm7, %v1211_v24, %v1202_v33 }
 0xb15   : > { %1217 = vst.msk [vmem:[#allocation4 + $0x8] sm:$0xff] %vm1215_vm11, %v1214_v26 }
 0xb49   : > { %v1194_v35 = vpop.permute.xlu1 %1193 }
 0xb4a   : > { %v1201_v39 = vsel %vm1180_vm10, %v1184_v20, %v1194_v35 }
 0xb4d   : > { %v1206_v28 = vpop.permute.xlu1 %1205 }
 0xb4e   : > { %v1213_v40 = vsel %vm828_vm7, %v1206_v28, %v1201_v39 }
 0xb4f   : > { %1216 = vst.msk [vmem:[#allocation4] sm:$0xff] %vm1215_vm11, %v1213_v40 }
 0xb67   : > { %v1223_v36 = vpop.permute.xlu0 %1222 }
 0xb6b   : > { %v1229_v32 = vpop.permute.xlu0 %1228 }
 0xb6c   : > { %v1231_v27 = vsel %vm1180_vm10, %v1223_v36, %v1229_v32 }
 0xb6f   : > { %v1237_v30 = vpop.permute.xlu0 %1236 }
 0xb70   : > { %v1239_v37 = vsel %vm828_vm7, %v1237_v30, %v1231_v27 }
 0xb71   : > { %1241 = vst.msk [vmem:[#allocation5 + $0x8] sm:$0xff] %vm1215_vm11, %v1239_v37 }
 0xb87   : > { %v1220_v38 = vpop.permute.xlu1 %1219 }
 0xb8b   : > { %v1226_v8 = vpop.permute.xlu1 %1225 }
 0xb8c   : > { %v1230_v42 = vsel %vm1180_vm10, %v1220_v38, %v1226_v8 }
 0xb8f   : > { %v1234_v44 = vpop.permute.xlu1 %1233 }
 0xb90   : > { %v1238_v45 = vsel %vm828_vm7, %v1234_v44, %v1230_v42 }
 0xb91   : > { %1240 = vst.msk [vmem:[#allocation5] sm:$0xff] %vm1215_vm11, %v1238_v45 }
 0xb92 PF: > { %p1595_p3 = scmp.ne.s32.totalorder %s2147_s30, 3 }
 0xb93   : > { %s2180_s8 = smov (!%p1595_p3), 1   ;;  %s2181_s14 = smov (!%p1595_p3), 2   ;;  %v2182_v15 = vmov (!%p1595_p3), 0   ;;  %v1255_v25 = vld [vmem:[#allocation5 + $0x8] sm:$0xff] (!%p1595_p3)  ;;  %v2184_v47 = vmov (!%p1595_p3), 1   ;;  %v1252_v48 = vld [vmem:[#allocation4] sm:$0xff] (!%p1595_p3) }
 0xb94   : > { %1245 = sbr.rel (%p1595_p3) target bundleno = 3241 (0xca9), region = 88  ;;  %v1246_v17 = vld [vmem:[#allocation3] sm:$0xff] (!%p1595_p3)  ;;  %1809 = vset.pattern.permute.xlu1 (!%p1595_p3), %v2182_v15  ;;  %1810 = vset.pattern.permute.xlu0 (!%p1595_p3), %v2182_v15  ;;  %s2183_s19 = smov (!%p1595_p3), 127   ;;  %v1253_v34 = vld [vmem:[#allocation4 + $0x8] sm:$0xff] (!%p1595_p3)  ;;  %v2185_v19 = vmov (!%p1595_p3), 2   ;;  %vm1284_vm14 = vcmp.eq.s32.totalorder (!%p1595_p3), %v2595_v46, 8 }
 0xb95   : > { %1297 = vrot.lane.b32.xlu0 (!%p1595_p3), %v1246_v17, %s2180_s8  ;;  %1817 = vrcp.f32 (!%p1595_p3), %v1246_v17  ;;  %1335 = vrot.lane.b32.xlu1 (!%p1595_p3), %v1246_v17, %s2181_s14  ;;  %v1256_v51 = vsub.f32 (!%p1595_p3), %v1252_v48, %v1246_v17  ;;  %vm1311_vm15 = vcmp.eq.s32.totalorder (!%p1595_p3), %v2595_v46, 1  ;;  %vm1324_vm0 = vcmp.eq.s32.totalorder (!%p1595_p3), %v2595_v46, 9 }
 0xb96   : > { %vm1355_vm1 = vcmp.eq.s32.totalorder (!%p1595_p3), %v2595_v46, 2  ;;  %vm1368_vm2 = vcmp.eq.s32.totalorder (!%p1595_p3), %v2595_v46, 10 }
 0xb97   : > { %v1258_v53 = vmul.f32 (!%p1595_p3), 1.442695, %v1256_v51 }
 0xb98   : > { %v1247_v12 = vld [vmem:[#allocation3 + $0x8] sm:$0xff] (!%p1595_p3)  ;;  %v1254_v13 = vld [vmem:[#allocation5] sm:$0xff] (!%p1595_p3) }
 0xb99   : > { %1819 = vrcp.f32 (!%p1595_p3), %v1247_v12  ;;  %1299 = vrot.lane.b32.xlu0 (!%p1595_p3), %v1247_v12, %s2180_s8  ;;  %1337 = vrot.lane.b32.xlu1 (!%p1595_p3), %v1247_v12, %s2181_s14  ;;  %v1257_v52 = vsub.f32 (!%p1595_p3), %v1253_v34, %v1247_v12 }
 0xb9a   : > { %1821 = vpow2.f32 (!%p1595_p3), %v1258_v53 }
 0xb9b   : > { %v1260_v54 = vmul.f32 1.442695, %v1257_v52 }
 0xb9d   : > { %1823 = vpow2.f32 %v1260_v54 }
 0xb9f   : > { %v1818_v29 = vpop.eup %1817 }
 0xba0   : > { %1264 = vrot.lane.b32.xlu0 %v1818_v29, %s2183_s19 }
 0xba3   : > { %v1820_v22 = vpop.eup %1819 }
 0xba4   : > { %1266 = vrot.lane.b32.xlu1 %v1820_v22, %s2183_s19  ;;  %1347 = vrot.lane.b32.xlu0 %v1818_v29, %s2180_s8  ;;  %v1822_v3 = vpop.eup %1821 }
 0xba7   : > { %v1824_v59 = vpop.eup %1823 }
 0xba8   : > { %1349 = vrot.lane.b32.xlu1 %v1820_v22, %s2180_s8  ;;  %1290 = vperm.xlu0 %1810, %v1255_v25  }
 0xbac   : > { %1286 = vperm.xlu1 %1809, %v1254_v13  }
 0xbb0   : > { %1811 = vset.pattern.permute.xlu1 %v2184_v47 }
 0xbb1   : > { %1326 = vperm.xlu1 %1811, %v1254_v13  }
 0xbb5   : > { %1330 = vperm.xlu1 %1811, %v1255_v25  }
 0xbb9   : > { %1812 = vset.pattern.permute.xlu1 %v2182_v15 }
 0xc07   : > { %v1298_v55 = vpop.permute.xlu0 %1297  ;;  %v1336_v56 = vpop.permute.xlu1 %1335 }
 0xc08   : > { %v1303_v57 = vsub.f32 %v1252_v48, %v1298_v55  ;;  %v1341_v60 = vsub.f32 %v1252_v48, %v1336_v56 }
 0xc0a   : > { %v1305_v58 = vmul.f32 1.442695, %v1303_v57  ;;  %v1343_v49 = vmul.f32 1.442695, %v1341_v60 }
 0xc0b   : > { %v1300_v61 = vpop.permute.xlu0 %1299  ;;  %v1338_v62 = vpop.permute.xlu1 %1337 }
 0xc0c   : > { %1825 = vpow2.f32 %v1305_v58  ;;  %v1304_v63 = vsub.f32 %v1253_v34, %v1300_v61  ;;  %v1342_v0 = vsub.f32 %v1253_v34, %v1338_v62 }
 0xc0e   : > { %v1307_v1 = vmul.f32 1.442695, %v1304_v63  ;;  %v1345_v2 = vmul.f32 1.442695, %v1342_v0 }
 0xc10   : > { %1827 = vpow2.f32 %v1307_v1 }
 0xc11   : > { %1829 = vpow2.f32 %v1345_v2 }
 0xc12   : > { %v1265_v31 = vpop.permute.xlu0 %1264  ;;  %1831 = vpow2.f32 %v1343_v49 }
 0xc13   : > { %v1270_v50 = vmul.f32 %v1822_v3, %v1265_v31 }
 0xc15   : > { %1274 = vperm.xlu0 %1810, %v1270_v50  }
 0xc16   : > { %v1267_v9 = vpop.permute.xlu1 %1266  ;;  %v1826_v5 = vpop.eup %1825 }
 0xc17   : > { %v1271_v4 = vmul.f32 %v1824_v59, %v1267_v9  ;;  %v1309_v6 = vmul.f32 %v1826_v5, %v1818_v29  ;;  %v1348_v18 = vpop.permute.xlu0 %1347 }
 0xc19   : > { %1279 = vperm.xlu1 %1812, %v1271_v4   ;;  %1814 = vset.pattern.permute.xlu0 %v2184_v47 }
 0xc1a   : > { %v1350_v10 = vpop.permute.xlu1 %1349  ;;  %v1828_v11 = vpop.eup %1827 }
 0xc1b   : > { %v1830_v43 = vpop.eup %1829  ;;  %v1310_v7 = vmul.f32 %v1828_v11, %v1820_v22 }
 0xc1c   : > { %v1354_v14 = vmul.f32 %v1830_v43, %v1350_v10  ;;  %v1832_v21 = vpop.eup %1831 }
 0xc1d   : > { %1813 = vset.pattern.permute.xlu1 %v2184_v47  ;;  %1319 = vperm.xlu0 %1814, %v1310_v7   ;;  %v1353_v20 = vmul.f32 %v1832_v21, %v1348_v18 }
 0xc1e   : > { %1314 = vperm.xlu1 %1813, %v1309_v6  }
 0xc21   : > { %1815 = vset.pattern.permute.xlu0 %v2185_v19 }
 0xc22   : > { %1816 = vset.pattern.permute.xlu1 %v2185_v19  ;;  %1358 = vperm.xlu0 %1815, %v1353_v20  }
 0xc23   : > { %1363 = vperm.xlu1 %1816, %v1354_v14  }
 0xc26   : > { %1374 = vperm.xlu0 %1815, %v1255_v25  }
 0xc27   : > { %1370 = vperm.xlu1 %1816, %v1254_v13   ;;  %v1291_v33 = vpop.permute.xlu0 %1290 }
 0xc2b   : > { %v1287_v23 = vpop.permute.xlu1 %1286 }
 0xc30   : > { %v1327_v16 = vpop.permute.xlu1 %1326 }
 0xc34   : > { %v1331_v41 = vpop.permute.xlu1 %1330 }
 0xc94   : > { %v1275_v26 = vpop.permute.xlu0 %1274 }
 0xc95   : > { %v1282_v35 = vsel %vm828_vm7, %v1275_v26, 0.0 }
 0xc96   : > { %v1293_v36 = vsel %vm1284_vm14, %v1287_v23, %v1282_v35 }
 0xc98   : > { %v1280_v24 = vpop.permute.xlu1 %1279 }
 0xc99   : > { %v1283_v28 = vsel %vm828_vm7, %v1280_v24, 0.0 }
 0xc9a   : > { %v1294_v32 = vsel %vm1284_vm14, %v1291_v33, %v1283_v28 }
 0xc9c   : > { %v1320_v40 = vpop.permute.xlu0 %1319 }
 0xc9d   : > { %v1315_v39 = vpop.permute.xlu1 %1314  ;;  %v1323_v30 = vsel %vm1311_vm15, %v1320_v40, %v1294_v32 }
 0xc9e   : > { %v1322_v27 = vsel %vm1311_vm15, %v1315_v39, %v1293_v36  ;;  %v1334_v42 = vsel %vm1324_vm0, %v1331_v41, %v1323_v30 }
 0xc9f   : > { %v1333_v8 = vsel %vm1324_vm0, %v1327_v16, %v1322_v27 }
 0xca1   : > { %v1359_v38 = vpop.permute.xlu0 %1358 }
 0xca2   : > { %v1364_v37 = vpop.permute.xlu1 %1363  ;;  %v1366_v44 = vsel %vm1355_vm1, %v1359_v38, %v1333_v8 }
 0xca3   : > { %v1367_v12 = vsel %vm1355_vm1, %v1364_v37, %v1334_v42 }
 0xca5   : > { %v1375_v15 = vpop.permute.xlu0 %1374 }
 0xca6   : > { %v1371_v45 = vpop.permute.xlu1 %1370  ;;  %v1378_v29 = vsel %vm1368_vm2, %v1375_v15, %v1367_v12 }
 0xca7   : > { %v1377_v17 = vsel %vm1368_vm2, %v1371_v45, %v1366_v44  ;;  %1380 = vst [vmem:[#allocation19 + $0x8] sm:$0xff] %v1378_v29 }
 0xca8   : > { %1379 = vst [vmem:[#allocation19] sm:$0xff] %v1377_v17 }
 0xca9 PF: > { %p1683_p7 = scmp.eq.s32.totalorder %s2264_s11, 3  ;;  %s2186_s30 = smov [#allocation18]  }
 0xcaa   : > { %s1390_s18 = sshll.u32 %s2186_s30, 4  ;;  %s1391_s18 = int_to_ptr.vmem [resolvable:$true] %s1390_s18 }
 0xcab   : > { %s2033_s3 = scalar_lea.vmem %s1391_s18, 256  ;;  %p2040_p10 = scmp.lt.s32.totalorder %s1391_s18, %s1391_s18 }
 0xcac   : > { %p2034_p5 = scmp.ne.s32.totalorder %s1391_s18, %s2033_s3  ;;  %p2041_p11 = scmp.lt.s32.totalorder %s2033_s3, %s2033_s3 }
 0xcae   : > { %p2035_p12 = pnand %p2034_p5, %p1683_p7  ;;  %p2042_p13 = por %p2041_p11, %p2040_p10 }
 0xcb0   : > { %p2036_p4 = pneg %p2035_p12 }
 0xcb2   : > { %p2043_p2 = pnand %p2042_p13, %p2036_p4 }
 0xcb4   : > { %2046 = shalt.err (!%p2043_p2)
}
 0xcb5   : > { %s2047_s24 = scalar_lea.hbm %s3073_s7, 256 }
 0xcb6   : > { %p2048_p6 = scmp.ne.s32.totalorder %s3073_s7, %s2047_s24  ;;  %p2053_p1 = scmp.lt.u32.totalorder %s2047_s24, %s3073_s7 }
 0xcb8   : > { %p2049_p0 = pnand %p2048_p6, %p1683_p7 }
 0xcba   : > { %p2050_p8 = pneg %p2049_p0 }
 0xcbc   : > { %p2055_p9 = pnand %p2053_p1, %p2050_p8 }
 0xcbe   : > { %2058 = shalt.err (!%p2055_p9)
}
 0xcbf   : > { %s2187_s17 = smov 128   ;;  %s2188_s15 = smov 8  }
 0xcc0   : > { %1642 = dma.vmem_to_hbm [thread:$0]  (%p1683_p7), %s1391_s18, 256, %s3073_s7, [#allocation8], %s2187_s17, %s2187_s17, %s2188_s15  }
 0xcc1   : > { %s2189_s12 = smov [#allocation19]  }
 0xcc2   : > { %s1406_s16 = sshll.u32 %s2189_s12, 4  ;;  %s1407_s16 = int_to_ptr.vmem [resolvable:$true] %s1406_s16 }
 0xcc3   : > { %s2059_s26 = scalar_lea.vmem %s1407_s16, 256  ;;  %p2066_p4 = scmp.lt.s32.totalorder %s1407_s16, %s1407_s16 }
 0xcc4   : > { %p2060_p3 = scmp.ne.s32.totalorder %s1407_s16, %s2059_s26  ;;  %p2067_p10 = scmp.lt.s32.totalorder %s2059_s26, %s2059_s26 }
 0xcc6   : > { %p2061_p5 = pnand %p2060_p3, %p1683_p7  ;;  %p2068_p11 = por %p2067_p10, %p2066_p4 }
 0xcc8   : > { %p2062_p12 = pneg %p2061_p5 }
 0xcca   : > { %p2069_p13 = pnand %p2068_p11, %p2062_p12 }
 0xccc   : > { %2072 = shalt.err (!%p2069_p13)
}
 0xccd   : > { %s3113_s14 = sld [smem:[#allocation32_spill]] }
 0xcd3   : > { %s2073_s19 = scalar_lea.hbm %s3113_s14, 256 }
 0xcd4   : > { %p2074_p2 = scmp.ne.s32.totalorder %s3113_s14, %s2073_s19  ;;  %p2079_p8 = scmp.lt.u32.totalorder %s2073_s19, %s3113_s14 }
 0xcd6   : > { %p2075_p6 = pnand %p2074_p2, %p1683_p7 }
 0xcd8   : > { %p2076_p0 = pneg %p2075_p6 }
 0xcda   : > { %p2081_p1 = pnand %p2079_p8, %p2076_p0 }
 0xcdc   : > { %2084 = shalt.err (!%p2081_p1)
}
 0xcdd   : > { %1644 = dma.vmem_to_hbm [thread:$0]  (%p1683_p7), %s1407_s16, 256, %s3113_s14, [#allocation20], %s2187_s17, %s2187_s17, %s2188_s15  }
 0xcde   : > { %2126 = dma.done.wait (%p1683_p7), [#allocation8], 256  }
 0xcdf   : > { %2128 = vsyncadd (%p1683_p7), [#allocation8], 4294967040 }
 0xce0   : > { %2130 = dma.done.wait (%p1683_p7), [#allocation20], 256  }
 0xce1   : > { %2132 = vsyncadd (%p1683_p7), [#allocation20], 4294967040 }
 0xce2 PF: > { %s27_s10 = sadd.s32 1, %s2155_s10   ;;  %s3114_s13 = sld [smem:[#allocation28_spill]] }
 0xce3   : > { %p24_p9 = scmp.ge.s32.totalorder %s27_s10, 6   ;;  %s3115_s22 = sld [smem:[#allocation27_spill]] }
 0xce4   : > { %s3116_s27 = smov %s2139_s28  ;;  %s3117_s28 = smov %s2143_s29 }
 0xce5   : > { %s3119_s30 = smov %s2151_s9  ;;  %26 = sbr.rel (!%p24_p9) target bundleno = 14 (0xe), region = 140 }
 0xce8   : > { %s3118_s29 = smov %s3114_s13 }
 0xce9   : > { %s3120_s9 = smov %s3115_s22 }
 0xcec   :  { %1426 = vsyncpa [#allocation7], 1 }
 0xced   :  { %1428 = vsyncpa [#allocation7 + $0x1], 1 }
 0xcee   :  { %1429 = vsyncpa [#allocation10], 1 }
 0xcef   :  { %1430 = vsyncpa [#allocation13], 1 }
 0xcf0   :  { %1431 = vsyncpa [#allocation16], 1 }
 0xcf1   :  { %1433 = vsyncpa [#allocation16 + $0x1], 1 }
 0xcf2   :  { %1434 = vsyncpa [#allocation8], 1 }
 0xcf3   :  { %1436 = vsyncpa [#allocation8 + $0x1], 1 }
 0xcf4   :  { %1437 = vsyncpa [#allocation20], 1 }

// kernel: tpu_custom_call.1
= control target key start
LH: loop header
LB: loop body
LE: loop exit
PB: predicated region body
PF: predicated region fallthrough
CT: control target
= control target key end

     0   :  { %s3066_s0 = inlined_call_operand.hbm [shape: f32[16,32], index: 0, kind: input, shape index: {}]   ;;  %s3067_s1 = inlined_call_operand.hbm [shape: bf16[32,32], index: 1, kind: input, shape index: {}]   ;;  %s3068_s2 = inlined_call_operand.hbm [shape: f32[1,32], index: 2, kind: input, shape index: {}]   ;;  %s3069_s3 = inlined_call_operand.hbm [shape: f32[1,32], index: 3, kind: input, shape index: {}]   ;;  %s3070_s4 = inlined_call_operand.hbm [shape: f32[1,32], index: 4, kind: input, shape index: {}]   ;;  %s3071_s5 = inlined_call_operand.hbm [shape: bf16[32,2048], index: 5, kind: input, shape index: {}]   ;;  %s3072_s6 = inlined_call_operand.hbm [shape: f32[1,2048], index: 6, kind: input, shape index: {}]   ;;  %s3073_s7 = inlined_call_operand.hbm [shape: f32[16,32], index: 7, kind: output, shape index: {0}]   ;;  %s3074_s8 = inlined_call_operand.hbm [shape: f32[16,128], index: 8, kind: output, shape index: {1}]  }
   0x1   :  { %3086 = sst [smem:[#allocation29_spill]] %s3067_s1 }
   0x2   :  { %3087 = sst [smem:[#allocation30_spill]] %s3069_s3 }
   0x3   :  { %3088 = sst [smem:[#allocation31_spill]] %s3071_s5 }
   0x4   :  { %3089 = sst [smem:[#allocation32_spill]] %s3074_s8 }
   0x5   :  { %14 = vsyncpa [#allocation7], 0 }
   0x6   :  { %15 = vsyncpa [#allocation10], 0 }
   0x7   :  { %16 = vsyncpa [#allocation13], 0 }
   0x8   :  { %17 = vsyncpa [#allocation16], 0 }
   0x9   :  { %19 = vsyncpa [#allocation16 + $0x1], 0 }
   0xa   :  { %20 = vsyncpa [#allocation8], 0 }
   0xb   :  { %21 = vsyncpa [#allocation20], 0  ;;  %s2235_s27 = smov 0   ;;  %s2237_s28 = smov 0  }
   0xc   :  { %s2239_s29 = smov 0   ;;  %s2241_s30 = smov 0  }
   0xd   :  { %s2243_s9 = smov 0   ;;  %s2245_s10 = smov 0  }
   0xe LB: > { %s2264_s11 = sadd.s32 4294967295, %s2155_s10   ;;  %p169_p0 = scmp.ne.s32.totalorder %s2139_s28, %s2135_s27  ;;  %s2155_s10 = sphi %s2245_s10, %s27_s10   ;;  %s2151_s9 = sphi %s2243_s9, %s3120_s9   ;;  %s2147_s30 = sphi %s2241_s30, %s3119_s30   ;;  %s2143_s29 = sphi %s2239_s29, %s3118_s29   ;;  %s2139_s28 = sphi %s2237_s28, %s3117_s28   ;;  %s2135_s27 = sphi %s2235_s27, %s3116_s27  }
   0xf   : > { %p3075_p1 = scmp.eq.s32.totalorder %s2264_s11, 0  ;;  %p1556_p2 = scmp.ge.s32.totalorder %s2155_s10, 1 }
  0x10   : > { %p258_p3 = scmp.lt.s32.totalorder %s2155_s10, 5  ;;  %s2157_s14 = smov [#allocation9]  }
  0x11   : > { %p2272_p4 = por %p3075_p1, %p169_p0  ;;  %s286_s15 = sshll.u32 %s2157_s14, 4  ;;  %s287_s15 = int_to_ptr.vmem [resolvable:$true] %s286_s15 }
  0x12   : > { %p2276_p5 = pnand %p1556_p2, %p258_p3  ;;  %s2158_s17 = smov [#allocation12]  }
  0x13   : > { %s3090_s12 = scalar_select %p2272_p4, 1, 0 }
  0x14   : > { %s3091_s13 = scalar_select %p2276_p5, 1, 0 }
  0x15   : > { %p1649_p6 = pneg %p2276_p5  ;;  %s311_s18 = sshll.u32 %s2158_s17, 4  ;;  %s2288_s18 = int_to_ptr.vmem [resolvable:$true] %s311_s18 }
  0x16   : > { %s3093_s1 = sld [smem:[#allocation29_spill]] }
  0x17   : > { %p2284_p7 = pnand %p1649_p6, %p3075_p1 }
  0x19   : > { %s3092_s16 = scalar_select %p2284_p7, 1, 0 }
  0x1a   : > { %p2298_p9 = pneg %p2284_p7 }
  0x1c   : > { %s1833_s21 = scalar_lea.hbm %s3093_s1, 256 }
  0x1d   : > { %p1834_p8 = scmp.ne.s32.totalorder %s3093_s1, %s1833_s21  ;;  %p1840_p12 = scmp.lt.u32.totalorder %s1833_s21, %s3093_s1 }
  0x1f   : > { %p1836_p10 = pnand %p2298_p9, %p1834_p8 }
  0x21   : > { %p1837_p11 = pneg %p1836_p10 }
  0x23   : > { %p1842_p13 = pnand %p1840_p12, %p1837_p11 }
  0x25   : > { %1845 = shalt.err (!%p1842_p13)
}
  0x26   : > { %s1846_s27 = scalar_lea.vmem %s287_s15, 256  ;;  %p1854_p6 = scmp.lt.s32.totalorder %s287_s15, %s287_s15 }
  0x27   : > { %p1847_p0 = scmp.ne.s32.totalorder %s287_s15, %s1846_s27  ;;  %p1855_p1 = scmp.lt.s32.totalorder %s1846_s27, %s1846_s27 }
  0x29   : > { %p1849_p2 = pnand %p1847_p0, %p2298_p9  ;;  %p1856_p4 = por %p1855_p1, %p1854_p6 }
  0x2b   : > { %p1850_p3 = pneg %p1849_p2 }
  0x2d   : > { %p1857_p5 = pnand %p1856_p4, %p1850_p3 }
  0x2f   : > { %1860 = shalt.err (!%p1857_p5)
}
  0x30   : > { %s2159_s14 = smov 64   ;;  %s2160_s17 = smov 4  }
  0x31   : > { %1655 = dma.hbm_to_vmem [thread:$0]  (!%p2284_p7), %s3093_s1, 256, %s287_s15, [#allocation10], %s2159_s14, %s2159_s14, %s2160_s17  }
  0x32   : > { %s3095_s3 = sld [smem:[#allocation30_spill]] }
  0x38   : > { %s1861_s23 = scalar_lea.hbm %s3095_s3, 16 }
  0x39   : > { %p1862_p8 = scmp.ne.s32.totalorder %s3095_s3, %s1861_s23  ;;  %p1868_p5 = scmp.lt.u32.totalorder %s1861_s23, %s3095_s3 }
  0x3b   : > { %p1864_p1 = pnand %p1862_p8, %p2298_p9 }
  0x3d   : > { %p1865_p4 = pneg %p1864_p1 }
  0x3f   : > { %p1870_p10 = pnand %p1868_p5, %p1865_p4 }
  0x41   : > { %1873 = shalt.err (!%p1870_p10)
}
  0x42   : > { %s1874_s15 = scalar_lea.vmem %s2288_s18, 16  ;;  %s1881_s14 = scalar_lea.vmem %s2288_s18, 32 }
  0x43   : > { %p1875_p11 = scmp.ne.s32.totalorder %s2288_s18, %s1874_s15  ;;  %p1882_p0 = scmp.lt.s32.totalorder %s2288_s18, %s2288_s18 }
  0x44   : > { %p1883_p2 = scmp.lt.s32.totalorder %s1881_s14, %s1874_s15 }
  0x45   : > { %p1877_p12 = pnand %p1875_p11, %p2298_p9 }
  0x46   : > { %p1884_p3 = por %p1883_p2, %p1882_p0 }
  0x47   : > { %p1878_p13 = pneg %p1877_p12 }
  0x49   : > { %p1885_p6 = pnand %p1884_p3, %p1878_p13 }
  0x4b   : > { %1888 = shalt.err (!%p1885_p6)
}
  0x4c   : > { %1661 = dma.hbm_to_vmem [thread:$0]  (!%p2284_p7), %s3095_s3, 16, %s2288_s18, [#allocation13]  }
  0x4d   : > { %s36_s19 = sadd.s32 1, %s2151_s9  ;;  %s156_s20 = sadd.s32 1, %s2143_s29 }
  0x4e   : > { %p37_p8 = scmp.ge.s32.totalorder %s36_s19, 4  ;;  %p163_p1 = scmp.ne.s32.totalorder %s2143_s29, %s2139_s28 }
  0x4f   : > { %p164_p4 = scmp.eq.s32.totalorder %s2155_s10, 0  ;;  %p1677_p5 = scmp.lt.s32.totalorder %s2155_s10, 4 }
  0x50   : > { %s3122_s19 = smov (%p37_p8, %s36_s19), 0  ;;  %s333_s21 = sand.u32 1, %s2155_s10  }
  0x51   : > { %3096 = sst [smem:[#allocation27_spill]] %s3122_s19  ;;  %p165_p10 = por %p164_p4, %p163_p1 }
  0x52   : > { %s153_s22 = ssub.s32 %s2151_s9, %s3122_s19  ;;  %s3079_s23 = sand.u32 1, %s2143_s29  }
  0x53   : > { %p154_p11 = scmp.eq.s32.totalorder %s153_s22, 0  ;;  %s1563_s25 = sshll.u32 %s3079_s23, 6 }
  0x54   : > { %s1602_s26 = sshll.u32 %s2151_s9, 8  ;;  %s3098_s5 = sld [smem:[#allocation31_spill]] }
  0x55   : > { %s2354_s27 = scalar_select %p154_p11, %s2143_s29, %s156_s20  }
  0x56   : > { %s337_s8 = scalar_lea.vmem [#allocation15], %s1563_s25  ;;  %p2363_p12 = pnand %p1677_p5, %p165_p10 }
  0x57   : > { %3097 = sst [smem:[#allocation28_spill]] %s2354_s27  ;;  %s344_s17 = sshll.u32 %s337_s8, 4  ;;  %s2367_s17 = int_to_ptr.vmem [resolvable:$true] %s344_s17 }
  0x58   : > { %s3099_s22 = scalar_select %p2363_p12, 1, 0 }
  0x59   : > { %s2369_s20 = scalar_lea.sflag [#allocation16], %s333_s21  ;;  %p3083_p0 = pneg %p2363_p12 }
  0x5a   : > { %s2359_s14 = scalar_lea.hbm %s3098_s5, %s1602_s26  ;;  %s1894_s15 = scalar_lea.hbm %s3098_s5, 4096 }
  0x5b   : > { %s1889_s18 = scalar_lea.hbm %s2359_s14, 1024  ;;  %p1895_p6 = scmp.lt.u32.totalorder %s2359_s14, %s3098_s5 }
  0x5c   : > { %p1890_p13 = scmp.ne.s32.totalorder %s2359_s14, %s1889_s18  ;;  %p1896_p8 = scmp.lt.u32.totalorder %s1894_s15, %s1889_s18 }
  0x5d   : > { %p1898_p4 = scmp.lt.u32.totalorder %s1889_s18, %s2359_s14 }
  0x5e   : > { %p1892_p2 = pnand %p3083_p0, %p1890_p13  ;;  %p1897_p1 = por %p1896_p8, %p1895_p6 }
  0x60   : > { %p1893_p3 = pneg %p1892_p2  ;;  %p1899_p5 = por %p1898_p4, %p1897_p1 }
  0x62   : > { %p1900_p10 = pnand %p1899_p5, %p1893_p3 }
  0x64   : > { %1903 = shalt.err (!%p1900_p10)
}
  0x65   : > { %s1904_s21 = scalar_lea.vmem %s2367_s17, 1024  ;;  %s2161_s25 = smov [#allocation15]  }
  0x66   : > { %p1905_p11 = scmp.ne.s32.totalorder %s2367_s17, %s1904_s21  ;;  %s1909_s26 = sshll.u32 %s2161_s25, 4  ;;  %s1910_s26 = int_to_ptr.vmem [resolvable:$false] %s1909_s26 }
  0x67   : > { %s1911_s23 = scalar_lea.vmem %s1910_s26, 2048  ;;  %p1912_p7 = scmp.lt.s32.totalorder %s2367_s17, %s1910_s26 }
  0x68   : > { %p1907_p13 = pnand %p1905_p11, %p3083_p0  ;;  %p1913_p6 = scmp.lt.s32.totalorder %s1911_s23, %s1904_s21 }
  0x6a   : > { %p1908_p2 = pneg %p1907_p13  ;;  %p1914_p8 = por %p1913_p6, %p1912_p7 }
  0x6c   : > { %p1915_p1 = pnand %p1914_p8, %p1908_p2 }
  0x6e   : > { %1918 = shalt.err (!%p1915_p1)
}
  0x6f   : > { %s2162_s18 = smov 1024   ;;  %s2163_s15 = smov 256  }
  0x70   : > { %s2164_s8 = smov 16   ;;  %s2165_s1 = smov [#allocation6]  }
  0x71   : > { %1668 = dma.hbm_to_vmem [thread:$0]  (!%p2363_p12), %s2359_s14, 1024, %s2367_s17, %s2369_s20, %s2162_s18, %s2163_s15, %s2164_s8  }
  0x72   : > { %s273_s3 = sshll.u32 %s2165_s1, 4  ;;  %s1919_s21 = scalar_lea.hbm %s3066_s0, 256  ;;  %s274_s3 = int_to_ptr.vmem [resolvable:$true] %s273_s3 }
  0x73   : > { %p1920_p7 = scmp.ne.s32.totalorder %s3066_s0, %s1919_s21  ;;  %p1926_p5 = scmp.lt.u32.totalorder %s1919_s21, %s3066_s0 }
  0x75   : > { %p1922_p3 = pnand %p1920_p7, %p2298_p9 }
  0x77   : > { %p1923_p4 = pneg %p1922_p3 }
  0x79   : > { %p1928_p10 = pnand %p1926_p5, %p1923_p4 }
  0x7b   : > { %1931 = shalt.err (!%p1928_p10)
}
  0x7c   : > { %s1932_s14 = scalar_lea.vmem %s274_s3, 256  ;;  %p1940_p6 = scmp.lt.s32.totalorder %s274_s3, %s274_s3 }
  0x7d   : > { %p1933_p11 = scmp.ne.s32.totalorder %s274_s3, %s1932_s14  ;;  %p1941_p8 = scmp.lt.s32.totalorder %s1932_s14, %s1932_s14 }
  0x7f   : > { %p1935_p13 = pnand %p1933_p11, %p2298_p9  ;;  %p1942_p1 = por %p1941_p8, %p1940_p6 }
  0x81   : > { %p1936_p2 = pneg %p1935_p13 }
  0x83   : > { %p1943_p0 = pnand %p1942_p1, %p1936_p2 }
  0x85   : > { %1946 = shalt.err (!%p1943_p0)
}
  0x86   : > { %s2166_s1 = smov 128   ;;  %s2167_s5 = smov 8  }
  0x87   : > { %p3100_p7 = scmp.ne.s32.totalorder %s3092_s16, 0  ;;  %s2168_s17 = smov [#allocation11]  }
  0x88   : > { %s300_s18 = sshll.u32 %s2168_s17, 4  ;;  %s2169_s15 = smov [#allocation14]   ;;  %s301_s18 = int_to_ptr.vmem [resolvable:$true] %s300_s18 }
  0x89   : > { %1652 = dma.hbm_to_vmem [thread:$0]  (!%p3100_p7), %s3066_s0, 256, %s274_s3, [#allocation7], %s2166_s1, %s2166_s1, %s2167_s5  }
  0x8a   : > { %s322_s8 = sshll.u32 %s2169_s15, 4  ;;  %s1947_s26 = scalar_lea.hbm %s3068_s2, 16  ;;  %s2415_s8 = int_to_ptr.vmem [resolvable:$true] %s322_s8 }
  0x8b   : > { %p1948_p0 = scmp.ne.s32.totalorder %s3068_s2, %s1947_s26  ;;  %p1954_p5 = scmp.lt.u32.totalorder %s1947_s26, %s3068_s2 }
  0x8d   : > { %p1950_p3 = pnand %p1948_p0, %p2298_p9 }
  0x8f   : > { %p1951_p4 = pneg %p1950_p3 }
  0x91   : > { %p1956_p10 = pnand %p1954_p5, %p1951_p4 }
  0x93   : > { %1959 = shalt.err (!%p1956_p10)
}
  0x94   : > { %s1960_s1 = scalar_lea.vmem %s301_s18, 16  ;;  %s1967_s5 = scalar_lea.vmem %s301_s18, 32 }
  0x95   : > { %p1961_p11 = scmp.ne.s32.totalorder %s301_s18, %s1960_s1  ;;  %p1968_p6 = scmp.lt.s32.totalorder %s301_s18, %s301_s18 }
  0x96   : > { %p1969_p8 = scmp.lt.s32.totalorder %s1967_s5, %s1960_s1 }
  0x97   : > { %p1963_p13 = pnand %p1961_p11, %p2298_p9 }
  0x98   : > { %p1970_p1 = por %p1969_p8, %p1968_p6 }
  0x99   : > { %p1964_p2 = pneg %p1963_p13 }
  0x9b   : > { %p1971_p12 = pnand %p1970_p1, %p1964_p2 }
  0x9d   : > { %1974 = shalt.err (!%p1971_p12)
}
  0x9e   : > { %1658 = dma.hbm_to_vmem [thread:$0]  (!%p3100_p7), %s3068_s2, 16, %s301_s18, [#allocation10]  }
  0x9f   : > { %s1975_s21 = scalar_lea.hbm %s3070_s4, 16 }
  0xa0   : > { %p1976_p0 = scmp.ne.s32.totalorder %s3070_s4, %s1975_s21  ;;  %p1982_p12 = scmp.lt.u32.totalorder %s1975_s21, %s3070_s4 }
  0xa2   : > { %p1978_p3 = pnand %p1976_p0, %p2298_p9 }
  0xa4   : > { %p1979_p4 = pneg %p1978_p3 }
  0xa6   : > { %p1984_p5 = pnand %p1982_p12, %p1979_p4 }
  0xa8   : > { %1987 = shalt.err (!%p1984_p5)
}
  0xa9   : > { %s1988_s18 = scalar_lea.vmem %s2415_s8, 16  ;;  %s1995_s3 = scalar_lea.vmem %s2415_s8, 32 }
  0xaa   : > { %p1989_p10 = scmp.ne.s32.totalorder %s2415_s8, %s1988_s18  ;;  %p1996_p2 = scmp.lt.s32.totalorder %s2415_s8, %s2415_s8 }
  0xab   : > { %p1997_p6 = scmp.lt.s32.totalorder %s1995_s3, %s1988_s18 }
  0xac   : > { %p1991_p11 = pnand %p1989_p10, %p2298_p9 }
  0xad   : > { %p1998_p8 = por %p1997_p6, %p1996_p2 }
  0xae   : > { %p1992_p13 = pneg %p1991_p11 }
  0xb0   : > { %p1999_p1 = pnand %p1998_p8, %p1992_p13 }
  0xb2   : > { %2002 = shalt.err (!%p1999_p1)
}
  0xb3   : > { %1664 = dma.hbm_to_vmem [thread:$0]  (!%p3100_p7), %s3070_s4, 16, %s2415_s8, [#allocation13]  }
  0xb4   : > { %s3101_s24 = sand.u32 1, %s2143_s29   ;;  %s1603_s17 = sshll.u32 %s2151_s9, 6 }
  0xb5   : > { %s1566_s27 = sshll.u32 %s3101_s24, 2  ;;  %s2465_s21 = scalar_lea.hbm %s3072_s6, %s1603_s17 }
  0xb6   : > { %s358_s16 = scalar_lea.vmem [#allocation17], %s1566_s27  ;;  %s2003_s23 = scalar_lea.hbm %s2465_s21, 64 }
  0xb7   : > { %s366_s26 = sshll.u32 %s358_s16, 4  ;;  %p2004_p9 = scmp.ne.s32.totalorder %s2465_s21, %s2003_s23  ;;  %s367_s26 = int_to_ptr.vmem [resolvable:$true] %s366_s26 }
  0xb8   : > { %p3102_p0 = scmp.ne.s32.totalorder %s3099_s22, 0  ;;  %s2008_s19 = scalar_lea.hbm %s3072_s6, 256 }
  0xb9   : > { %p2009_p12 = scmp.lt.u32.totalorder %s2465_s21, %s3072_s6  ;;  %p2010_p5 = scmp.lt.u32.totalorder %s2008_s19, %s2003_s23 }
  0xba   : > { %p3103_p3 = pneg %p3102_p0  ;;  %p2012_p11 = scmp.lt.u32.totalorder %s2003_s23, %s2465_s21 }
  0xbb   : > { %p2011_p10 = por %p2010_p5, %p2009_p12 }
  0xbc   : > { %p2006_p7 = pnand %p2004_p9, %p3103_p3 }
  0xbd   : > { %p2013_p13 = por %p2012_p11, %p2011_p10 }
  0xbe   : > { %p2007_p4 = pneg %p2006_p7 }
  0xc0   : > { %p2014_p2 = pnand %p2013_p13, %p2007_p4 }
  0xc2   : > { %2017 = shalt.err (!%p2014_p2)
}
  0xc3   : > { %s2018_s1 = scalar_lea.vmem %s367_s26, 64  ;;  %p3104_p8 = pmov %p3103_p3 }
  0xc4   : > { %p2019_p6 = scmp.ne.s32.totalorder %s367_s26, %s2018_s1  ;;  %s2170_s5 = smov [#allocation17]  }
  0xc5   : > { %s2023_s24 = sshll.u32 %s2170_s5, 4  ;;  %s2024_s24 = int_to_ptr.vmem [resolvable:$false] %s2023_s24 }
  0xc6   : > { %p2021_p1 = pnand %p2019_p6, %p3104_p8  ;;  %s2025_s27 = scalar_lea.vmem %s2024_s24, 128 }
  0xc7   : > { %p2026_p3 = scmp.lt.s32.totalorder %s367_s26, %s2024_s24  ;;  %p2027_p7 = scmp.lt.s32.totalorder %s2025_s27, %s2018_s1 }
  0xc8   : > { %p2022_p9 = pneg %p2021_p1 }
  0xc9   : > { %p2028_p5 = por %p2027_p7, %p2026_p3 }
  0xcb   : > { %p2029_p12 = pnand %p2028_p5, %p2022_p9 }
  0xcd   : > { %2032 = shalt.err (!%p2029_p12)
}
  0xce   : > { %1671 = dma.hbm_to_vmem [thread:$0]  (!%p3102_p0), %s2465_s21, 64, %s367_s26, %s2369_s20  }
  0xcf   : > { %p3105_p4 = scmp.ne.s32.totalorder %s3091_s13, 0 }
  0xd0   : > { %p3106_p10 = scmp.eq.s32.totalorder (!%p3105_p4), %s2264_s11, 0 }
  0xd1   : > { %375 = sbr.rel (%p3105_p4) target bundleno = 3298 (0xce2), region = 48 }
  0xd8   : > { %2110 = dma.done.wait (%p3106_p10), [#allocation7], 256   ;;  %p3107_p11 = pmov %p3106_p10 }
  0xd9   : > { %p3108_p13 = pmov %p3106_p10 }
  0xda   : > { %2112 = vsyncadd (%p3107_p11), [#allocation7], 4294967040 }
  0xdb   : > { %2114 = dma.done.wait (%p3108_p13), [#allocation10], 272   ;;  %p3109_p2 = pmov %p3106_p10 }
  0xdd   : > { %2116 = vsyncadd (%p3109_p2), [#allocation10], 4294967024  ;;  %p3110_p6 = pmov %p3109_p2 }
  0xde   : > { %p3111_p0 = pmov %p3109_p2 }
  0xdf   : > { %2118 = dma.done.wait (%p3110_p6), [#allocation13], 32  }
  0xe0   : > { %2120 = vsyncadd (%p3111_p0), [#allocation13], 4294967264  ;;  %s397_s13 = sand.u32 1, %s2264_s11   ;;  %s399_s22 = sand.u32 1, %s2139_s28  }
  0xe1   : > { %s1575_s20 = sshll.u32 %s399_s22, 6  ;;  %s398_s17 = scalar_lea.sflag [#allocation16], %s397_s13 }
  0xe2   : > { %s2503_s15 = scalar_lea.vmem [#allocation15], %s1575_s20  ;;  %p3112_p8 = scmp.ne.s32.totalorder %s3090_s12, 0 }
  0xe4   : > { %2122 = dma.done.wait (%p3112_p8), %s398_s17, 1088  }
  0xe5   : > { %2124 = vsyncadd (%p3112_p8), %s398_s17, 4294966208  ;;  %s2509_s25 = sshll.u32 %s399_s22, 2  ;;  %p1577_p1 = scmp.ne.s32.totalorder %s2147_s30, 0 }
  0xe6   : > { %s410_s21 = scalar_lea.vmem [#allocation17], %s2509_s25  ;;  %v577_v0 = vlaneseq (!%p1577_p1)  ;;  %v2171_v1 = vmov (!%p1577_p1), 0.0   ;;  %v1766_v2 = vld [vmem:[#allocation9] sm:$0xff] (!%p1577_p1)   ;;  %vm2172_vm0 = vmmov (!%p1577_p1), 0   ;;  %vm581_vm1 = vcmask (!%p1577_p1), 15360   ;;  %v1767_v4 = vld [vmem:[#allocation9 + $0x8] sm:$0xff] (!%p1577_p1)  }
  0xe7   : > { %452 = sbr.rel (%p1577_p1) target bundleno = 775 (0x307), region = 80  ;;  %1607 = vmatprep.subr.bf16.mxu0 (!%p1577_p1), %v2171_v1  ;;  %1611 = vmatprep.mubr.msk.bf16.mxu0 (!%p1577_p1), %vm2172_vm0, %v2171_v1  ;;  %v453_v5 = vld [vmem:[#allocation6] sm:$0xff] (!%p1577_p1)  ;;  %v454_v6 = vld [vmem:[#allocation6 + $0x8] sm:$0xff] (!%p1577_p1)  ;;  %vm472_vm3 = vcmask (!%p1577_p1), 261120   ;;  %vm584_vm4 = vcmask (!%p1577_p1), 23552   ;;  %v2173_v30 = vmov (!%p1577_p1), -inf  }
  0xe8   : > { %v578_v3 = vand.u32 (!%p1577_p1), 127, %v577_v0  ;;  %1608 = vmatpush3.bf16.msra.mxu0 (!%p1577_p1), %v1766_v2  ;;  %v455_v8 = vpack.c.bf16 (!%p1577_p1), %v454_v6, %v453_v5  ;;  %v1581_v10 = vld [vmem:[#allocation11] ss:$0 sm:$0xff] (!%p1577_p1)  ;;  %585 = vst.msk [vmem:[#allocation4] sm:$0xff] (!%p1577_p1), %vm584_vm4, %v2173_v30  ;;  %586 = vst.msk [vmem:[#allocation4 + $0x8] sm:$0xff] (!%p1577_p1), %vm584_vm4, %v2173_v30  ;;  %v2174_v31 = vmov (!%p1577_p1), 0  }
  0xe9   : > { %1609 = vmatprep.subr.bf16.mxu0 (!%p1577_p1), %v2171_v1  ;;  %587 = vst.msk [vmem:[#allocation5] sm:$0xff] (!%p1577_p1), %vm584_vm4, %v2174_v31  ;;  %588 = vst.msk [vmem:[#allocation5 + $0x8] sm:$0xff] (!%p1577_p1), %vm584_vm4, %v2174_v31  ;;  %v1582_v40 = vld [vmem:[#allocation12] ss:$0 sm:$0xff] (!%p1577_p1)  ;;  %v1583_v44 = vld [vmem:[#allocation14] ss:$0 sm:$0xff] (!%p1577_p1) }
  0xea   : > { %vm579_vm2 = vcmp.eq.s32.totalorder (!%p1577_p1), %v578_v3, 0 }
  0xeb   : > { %v580_v7 = vsel (!%p1577_p1), %vm579_vm2, -inf, %v2171_v1 }
  0xec   : > { %582 = vst.msk [vmem:[#allocation3] sm:$0xff] (!%p1577_p1), %vm581_vm1, %v580_v7  ;;  %583 = vst.msk [vmem:[#allocation3 + $0x8] sm:$0xff] (!%p1577_p1), %vm581_vm1, %v580_v7  ;;  %1610 = vmatpush3.bf16.msra.mxu0 (!%p1577_p1), %v1767_v4 }
  0xef   : > { %1612 = vmatmul.mubr.msk.bf16.vlgmr.msra.gmra.mrb[0].mxu0 %vm472_vm3, %v455_v8 }
 0x1c2   : > { %v510_v9 = vpop.f32.mrb[0].mxu0 }
 0x1c3   : > { %v517_v11 = vadd.f32 %v510_v9, %v453_v5  ;;  %v1613_v12 = vpop.f32.mrb[1].mxu0 }
 0x1c4   : > { %v513_v13 = vpop.f32.mrb[2].mxu0 }
 0x1c5   : > { %v526_v14 = vadd.f32 %v1581_v10, %v517_v11  ;;  %v518_v15 = vadd.f32 %v513_v13, %v454_v6  ;;  %v1614_v16 = vpop.f32.mrb[3].mxu0 }
 0x1c7   : > { %528 = vst.msk [vmem:[#allocation18] sm:$0xff] %vm472_vm3, %v526_v14  ;;  %v527_v17 = vadd.f32 %v1581_v10, %v518_v15  ;;  %v530_v18 = vsel %vm472_vm3, %v526_v14, 0.0 }
 0x1c8   : > { %531 = vadd.xlane.f32.xlu0 %v530_v18 }
 0x1c9   : > { %529 = vst.msk [vmem:[#allocation18 + $0x8] sm:$0xff] %vm472_vm3, %v527_v17  ;;  %v533_v19 = vsel %vm472_vm3, %v527_v17, 0.0 }
 0x1cc   : > { %534 = vadd.xlane.f32.xlu0 %v533_v19 }
 0x255   : > { %v532_v20 = vpop.xlane.xlu0 %531 }
 0x256   : > { %v537_v21 = vmul.f32 0.03125, %v532_v20 }
 0x258   : > { %v539_v22 = vsub.f32 %v526_v14, %v537_v21 }
 0x259   : > { %v535_v23 = vpop.xlane.xlu0 %534 }
 0x25a   : > { %v538_v24 = vmul.f32 0.03125, %v535_v23  ;;  %v541_v25 = vmul.f32 %v539_v22, %v539_v22 }
 0x25c   : > { %v540_v26 = vsub.f32 %v527_v17, %v538_v24  ;;  %v543_v27 = vsel %vm472_vm3, %v541_v25, 0.0 }
 0x25d   : > { %544 = vadd.xlane.f32.xlu1 %v543_v27 }
 0x25e   : > { %v542_v28 = vmul.f32 %v540_v26, %v540_v26 }
 0x260   : > { %v546_v29 = vsel %vm472_vm3, %v542_v28, 0.0 }
 0x261   : > { %547 = vadd.xlane.f32.xlu1 %v546_v29 }
 0x2ea   : > { %v545_v32 = vpop.xlane.xlu1 %544 }
 0x2eb   : > { %v549_v33 = vmul.f32 0.03125, %v545_v32 }
 0x2ed   : > { %v551_v34 = vadd.f32 1e-05, %v549_v33 }
 0x2ee   : > { %v548_v35 = vpop.xlane.xlu1 %547 }
 0x2ef   : > { %1768 = vrsqrt.f32 %v551_v34  ;;  %v550_v36 = vmul.f32 0.03125, %v548_v35 }
 0x2f1   : > { %v552_v37 = vadd.f32 1e-05, %v550_v36 }
 0x2f3   : > { %1770 = vrsqrt.f32 %v552_v37 }
 0x2f9   : > { %v1769_v38 = vpop.eup %1768 }
 0x2fa   : > { %v555_v39 = vmul.f32 %v1769_v38, %v539_v22 }
 0x2fc   : > { %v564_v42 = vmul.f32 %v1582_v40, %v555_v39 }
 0x2fd   : > { %v1771_v41 = vpop.eup %1770 }
 0x2fe   : > { %v556_v43 = vmul.f32 %v1771_v41, %v540_v26  ;;  %v573_v46 = vadd.f32 %v1583_v44, %v564_v42 }
 0x300   : > { %v565_v45 = vmul.f32 %v1582_v40, %v556_v43 }
 0x302   : > { %v574_v47 = vadd.f32 %v1583_v44, %v565_v45 }
 0x304   : > { %v575_v48 = vpack.c.bf16 %v574_v47, %v573_v46 }
 0x306   : > { %576 = vst.msk [vmem:[#allocation2] sm:$0xff] %vm472_vm3, %v575_v48 }
 0x307 PF: > { %v1775_v49 = vld [vmem:[%s2503_s15 + $0x4] ss:$16 sps:$4 sm:$0xff]   ;;  %v1777_v50 = vld [vmem:[%s2503_s15 + $0xc] ss:$16 sps:$4 sm:$0xff]   ;;  %v2175_v51 = vmov 0   ;;  %vm660_vm5 = vcmask 261120   ;;  %v600_v59 = vlaneseq }
 0x308   : > { %696 = vmatprep.mubr.bf16.mxu0 %v2175_v51  ;;  %739 = vmatprep.mubr.bf16.mxu1 %v2175_v51  ;;  %v1779_v52 = vld [vmem:[%s2503_s15] ss:$16 sps:$4 sm:$0xff]   ;;  %v1780_v53 = vld [vmem:[%s2503_s15 + $0x8] ss:$16 sps:$4 sm:$0xff]   ;;  %v1781_v54 = vld [vmem:[%s2503_s15 + $0x24] ss:$16 sps:$4 sm:$0xff]  }
 0x309   : > { %664 = vmatprep.subr.bf16.mxu0 %v1775_v49  ;;  %1772 = vset.pattern.permute.xlu1 %v2175_v51  ;;  %v1783_v55 = vld [vmem:[%s2503_s15 + $0x2c] ss:$16 sps:$4 sm:$0xff]   ;;  %v1785_v56 = vld [vmem:[%s2503_s15 + $0x20] ss:$16 sps:$4 sm:$0xff]   ;;  %v1786_v57 = vld [vmem:[%s2503_s15 + $0x28] ss:$16 sps:$4 sm:$0xff]  }
 0x30a   : > { %707 = vmatprep.subr.bf16.mxu1 %v1777_v50  ;;  %665 = vmatpush1.bf16.msra.mxu0 %v1779_v52  ;;  %v601_v60 = vshrl.u32 %v600_v59, 7  ;;  %v598_v63 = vld [vmem:[%s410_s21] sm:$0xf]  ;;  %vm848_vm6 = vcmask 23568   ;;  %s2177_s12 = smov 1   ;;  %vm841_vm8 = vcmask 15360  }
 0x30b   : > { %708 = vmatpush1.bf16.msra.mxu1 %v1780_v53  ;;  %666 = vmatprep.subr.bf16.mxu0 %v1781_v54  ;;  %v845_v53 = vld [vmem:[#allocation4 + $0x8] sm:$0xff] }
 0x30c   : > { %709 = vmatprep.subr.bf16.mxu1 %v1783_v55  ;;  %v602_v61 = vsub.s32 0, %v601_v60  ;;  %v610_v62 = vsub.s32 2, %v601_v60  ;;  %v606_v0 = vsub.s32 1, %v601_v60  ;;  %v614_v1 = vsub.s32 3, %v601_v60  ;;  %v2556_v28 = vld [vmem:[#allocation3] sm:$0xff]  ;;  %v2562_v31 = vld [vmem:[#allocation3 + $0x8] sm:$0xff] }
 0x30d   : > { %v589_v58 = vld [vmem:[#allocation2] sm:$0xff] }
 0x30e   : > { %667 = vmatpush1.bf16.msra.mxu0 %v1785_v56  ;;  %v603_v2 = vrot.slane %v598_v63, %v602_v61  ;;  %v611_v3 = vrot.slane %v598_v63, %v610_v62  ;;  %v607_v4 = vrot.slane %v598_v63, %v606_v0  ;;  %v615_v5 = vrot.slane %v598_v63, %v614_v1  ;;  %v844_v56 = vld [vmem:[#allocation4] sm:$0xff] }
 0x30f   : > { %710 = vmatpush1.bf16.msra.mxu1 %v1786_v57 }
 0x311   : > { %1592 = vmatmul.mubr.msk.bf16.vlgmr.msra.gmra.mrb[0].mxu0 %vm660_vm5, %v589_v58 }
 0x312   : > { %1593 = vmatmul.mubr.msk.bf16.vlgmr.msra.gmra.mrb[0].mxu1 %vm660_vm5, %v589_v58 }
 0x3e4   : > { %v698_v6 = vpop.f32.mrb[0].mxu0 }
 0x3e5   : > { %v741_v7 = vpop.f32.mrb[0].mxu1  ;;  %v2532_v8 = vadd.f32 %v698_v6, %v603_v2  ;;  %v700_v10 = vpop.f32.mrb[1].mxu0 }
 0x3e6   : > { %v2534_v9 = vadd.f32 %v741_v7, %v611_v3  ;;  %v743_v11 = vpop.f32.mrb[1].mxu1  ;;  %v2536_v12 = vadd.f32 %v700_v10, %v607_v4  ;;  %v702_v14 = vpop.f32.mrb[2].mxu0 }
 0x3e7   : > { %v2538_v13 = vadd.f32 %v743_v11, %v615_v5  ;;  %v745_v15 = vpop.f32.mrb[2].mxu1  ;;  %v2540_v16 = vadd.f32 %v702_v14, %v603_v2  ;;  %v704_v18 = vpop.f32.mrb[3].mxu0 }
 0x3e8   : > { %v2542_v17 = vadd.f32 %v745_v15, %v611_v3  ;;  %v747_v19 = vpop.f32.mrb[3].mxu1  ;;  %v750_v20 = vmax.f32 %v2532_v8, %v2534_v9  ;;  %v2546_v21 = vadd.f32 %v704_v18, %v607_v4 }
 0x3e9   : > { %v2548_v22 = vadd.f32 %v747_v19, %v615_v5  ;;  %v751_v23 = vmax.f32 %v2536_v12, %v2538_v13 }
 0x3ea   : > { %v755_v24 = vmax.f32 %v2540_v16, %v2542_v17 }
 0x3eb   : > { %v756_v25 = vmax.f32 %v2546_v21, %v2548_v22  ;;  %v752_v26 = vmax.f32 %v750_v20, %v751_v23  ;;  %v2176_v23 = vmov 1  }
 0x3ec   : > { %1773 = vset.pattern.permute.xlu0 %v2176_v23 }
 0x3ed   : > { %753 = vmax.xlane.f32.xlu0 %v752_v26  ;;  %v757_v27 = vmax.f32 %v755_v24, %v756_v25 }
 0x3f1   : > { %758 = vmax.xlane.f32.xlu0 %v757_v27 }
 0x47a   : > { %v2558_v29 = vpop.xlane.xlu0 %753 }
 0x47b   : > { %v762_v30 = vmax.f32 %v2556_v28, %v2558_v29  ;;  %v846_v0 = vsub.f32 %v2558_v29, %v844_v56 }
 0x47d   : > { %782 = vperm.xlu1 %1772, %v762_v30   ;;  %v849_v7 = vsel %vm848_vm6, %v846_v0, -inf  ;;  %v764_v14 = vsub.f32 %v2556_v28, %v762_v30 }
 0x47e   : > { %v2564_v32 = vpop.xlane.xlu0 %758 }
 0x47f   : > { %v763_v33 = vmax.f32 %v2562_v31, %v2564_v32  ;;  %v847_v60 = vsub.f32 %v2564_v32, %v845_v53  ;;  %v766_v15 = vmul.f32 1.442695, %v764_v14 }
 0x481   : > { %787 = vperm.xlu1 %1772, %v763_v33   ;;  %v850_v4 = vsel %vm848_vm6, %v847_v60, -inf  ;;  %v765_v18 = vsub.f32 %v2562_v31, %v763_v33 }
 0x482   : > { %v851_v10 = vmax.f32 %v849_v7, %v850_v4 }
 0x483   : > { %v768_v19 = vmul.f32 1.442695, %v765_v18 }
 0x485   : > { %1774 = vset.pattern.permute.xlu1 %v2176_v23 }
 0x4fc   : > { %v2568_v34 = vpop.permute.xlu1 %782 }
 0x4fd   : > { %v790_v35 = vsub.f32 %v2532_v8, %v2568_v34  ;;  %v791_v36 = vsub.f32 %v2536_v12, %v2568_v34  ;;  %v792_v37 = vsub.f32 %v2534_v9, %v2568_v34  ;;  %v793_v38 = vsub.f32 %v2538_v13, %v2568_v34 }
 0x4ff   : > { %v798_v39 = vmul.f32 1.442695, %v790_v35  ;;  %v800_v40 = vmul.f32 1.442695, %v791_v36  ;;  %v802_v41 = vmul.f32 1.442695, %v792_v37 }
 0x500   : > { %v804_v42 = vmul.f32 1.442695, %v793_v38  ;;  %v2578_v43 = vpop.permute.xlu1 %787 }
 0x501   : > { %1787 = vpow2.f32 %v798_v39  ;;  %v794_v44 = vsub.f32 %v2540_v16, %v2578_v43  ;;  %v795_v45 = vsub.f32 %v2546_v21, %v2578_v43  ;;  %v796_v46 = vsub.f32 %v2542_v17, %v2578_v43 }
 0x502   : > { %1789 = vpow2.f32 %v800_v40  ;;  %v797_v47 = vsub.f32 %v2548_v22, %v2578_v43 }
 0x503   : > { %1791 = vpow2.f32 %v802_v41  ;;  %v806_v48 = vmul.f32 1.442695, %v794_v44  ;;  %v808_v49 = vmul.f32 1.442695, %v795_v45  ;;  %v810_v50 = vmul.f32 1.442695, %v796_v46 }
 0x504   : > { %1793 = vpow2.f32 %v804_v42  ;;  %v812_v51 = vmul.f32 1.442695, %v797_v47  ;;  %v2595_v46 = vand.u32 127, %v600_v59 }
 0x505   : > { %1795 = vpow2.f32 %v806_v48 }
 0x506   : > { %1797 = vpow2.f32 %v808_v49  ;;  %vm828_vm7 = vcmp.eq.s32.totalorder %v2595_v46, 0 }
 0x507   : > { %1799 = vpow2.f32 %v810_v50 }
 0x508   : > { %1801 = vpow2.f32 %v812_v51 }
 0x509   : > { %1803 = vpow2.f32 %v766_v15 }
 0x50a   : > { %1805 = vpow2.f32 %v768_v19 }
 0x50b   : > { %v1788_v52 = vpop.eup %1787 }
 0x50c   : > { %v1790_v54 = vpop.eup %1789 }
 0x50d   : > { %v1792_v55 = vpop.eup %1791  ;;  %v814_v57 = vadd.f32 %v1790_v54, %v1788_v52 }
 0x50e   : > { %v1794_v58 = vpop.eup %1793 }
 0x50f   : > { %v1796_v61 = vpop.eup %1795  ;;  %v815_v62 = vadd.f32 %v1792_v55, %v814_v57 }
 0x510   : > { %v1798_v63 = vpop.eup %1797 }
 0x511   : > { %v816_v1 = vadd.f32 %v1794_v58, %v815_v62  ;;  %v819_v2 = vadd.f32 %v1798_v63, %v1796_v61  ;;  %v1800_v3 = vpop.eup %1799 }
 0x512   : > { %v1802_v6 = vpop.eup %1801 }
 0x513   : > { %817 = vadd.xlane.f32.xlu0 %v816_v1  ;;  %v820_v5 = vadd.f32 %v1800_v3, %v819_v2  ;;  %v1804_v20 = vpop.eup %1803 }
 0x514   : > { %v1806_v24 = vpop.eup %1805 }
 0x515   : > { %v821_v11 = vadd.f32 %v1802_v6, %v820_v5 }
 0x517   : > { %852 = vmax.xlane.f32.xlu0 %v851_v10  ;;  %822 = vadd.xlane.f32.xlu1 %v821_v11 }
 0x52d   : > { %772 = vrot.lane.b32.xlu0 %v1804_v20, %s2177_s12 }
 0x531   : > { %774 = vrot.lane.b32.xlu0 %v1806_v24, %s2177_s12 }
 0x5a0   : > { %v818_v25 = vpop.xlane.xlu0 %817 }
 0x5a4   : > { %v853_v26 = vpop.xlane.xlu0 %852  ;;  %v823_v42 = vpop.xlane.xlu1 %822 }
 0x5a5   : > { %v854_v27 = vrot.slane %v853_v26, 4 }
 0x5a7   : > { %v855_v35 = vmax.f32 %v853_v26, %v854_v27 }
 0x5a8   : > { %v773_v36 = vpop.permute.xlu0 %772 }
 0x5a9   : > { %v856_v30 = vrot.slane %v855_v35, 2  ;;  %v778_v37 = vmul.f32 %v773_v36, %v2556_v28 }
 0x5ab   : > { %v824_v33 = vadd.f32 %v818_v25, %v778_v37  ;;  %v857_v38 = vmax.f32 %v855_v35, %v856_v30 }
 0x5ac   : > { %v775_v39 = vpop.permute.xlu0 %774 }
 0x5ad   : > { %v779_v40 = vmul.f32 %v775_v39, %v2562_v31  ;;  %831 = vperm.xlu0 %1773, %v824_v33   ;;  %v858_v41 = vrot.slane %v857_v38, 1 }
 0x5af   : > { %v825_v44 = vadd.f32 %v823_v42, %v779_v40  ;;  %v859_v45 = vmax.f32 %v857_v38, %v858_v41 }
 0x5b1   : > { %1615 = vpush %v859_v45  ;;  %836 = vperm.xlu1 %1774, %v825_v44  }
 0x5e2   : > { %s1616_s16 = spop %1615 }
 0x5e3   : > { %p861_p9 = scmp.gt.f32.partialorder %s1616_s16, 0.0 }
 0x5e4   : > { %v2605_v49 = vadd.s32 (%p861_p9), 128, %v2595_v46  ;;  %v2608_v59 = vadd.s32 (%p861_p9), 256, %v2595_v46  ;;  %v2611_v50 = vadd.s32 (%p861_p9), 384, %v2595_v46  ;;  %vm873_vm9 = vcmp.eq.f32.partialorder (%p861_p9), %v2532_v8, %v2558_v29  ;;  %s1594_s26 = sshll.u32 (%p861_p9), %s2147_s30, 9  ;;  %s2178_s23 = smov (%p861_p9), 127  }
 0x5e5   : > { %vm874_vm10 = vcmp.eq.f32.partialorder (%p861_p9), %v2536_v12, %v2558_v29  ;;  %vm875_vm11 = vcmp.eq.f32.partialorder (%p861_p9), %v2534_v9, %v2558_v29  ;;  %vm876_vm12 = vcmp.eq.f32.partialorder (%p861_p9), %v2538_v13, %v2558_v29  ;;  %vm877_vm13 = vcmp.eq.f32.partialorder (%p861_p9), %v2540_v16, %v2564_v32 }
 0x5e6   : > { %v883_v51 = vsel (%p861_p9), %vm875_vm11, %v2608_v59, 2147483647  ;;  %v884_v52 = vsel (%p861_p9), %vm876_vm12, %v2611_v50, 2147483647  ;;  %vm878_vm0 = vcmp.eq.f32.partialorder (%p861_p9), %v2546_v21, %v2564_v32  ;;  %vm879_vm1 = vcmp.eq.f32.partialorder (%p861_p9), %v2542_v17, %v2564_v32 }
 0x5e7   : > { %vm880_vm2 = vcmp.eq.f32.partialorder (%p861_p9), %v2548_v22, %v2564_v32  ;;  %v885_v55 = vsel (%p861_p9), %vm877_vm13, %v2595_v46, 2147483647  ;;  %v886_v56 = vsel (%p861_p9), %vm878_vm0, %v2605_v49, 2147483647  ;;  %v887_v57 = vsel (%p861_p9), %vm879_vm1, %v2608_v59, 2147483647 }
 0x5e8   : > { %v888_v58 = vsel (%p861_p9), %vm880_vm2, %v2611_v50, 2147483647  ;;  %vm909_vm4 = vcmp.lt.s32.totalorder (%p861_p9), %v885_v55, %v887_v57 }
 0x5e9   : > { %vm911_vm5 = vcmp.lt.s32.totalorder (%p861_p9), %v886_v56, %v888_v58  ;;  %v910_v62 = vsel (%p861_p9), %vm909_vm4, %v885_v55, %v887_v57 }
 0x5ea   : > { %v912_v63 = vsel (%p861_p9), %vm911_vm5, %v886_v56, %v888_v58 }
 0x5eb   : > { %vm913_vm6 = vcmp.lt.s32.totalorder (%p861_p9), %v910_v62, %v912_v63 }
 0x5ec   : > { %v914_v1 = vsel (%p861_p9), %vm913_vm6, %v910_v62, %v912_v63 }
 0x5ed   : > { %v916_v2 = vshra.s32 (%p861_p9), %v914_v1, 16  ;;  %v915_v6 = vand.u32 (%p861_p9), 65535, %v914_v1 }
 0x5ef   : > { %v918_v3 = vcvt.s32.f32 (%p861_p9), %v916_v2  ;;  %v917_v11 = vcvt.s32.f32 (%p861_p9), %v915_v6 }
 0x62c   : > { %v832_v28 = vpop.permute.xlu0 %831  ;;  %864 = sbr.rel (!%p861_p9) target bundleno = 2962 (0xb92), region = 84 }
 0x62d   : > { %v839_v31 = vsel %vm828_vm7, %v2568_v34, %v832_v28  ;;  %v881_v34 = vsel (%p861_p9), %vm873_vm9, %v2595_v46, 2147483647 }
 0x62e   : > { %842 = vst.msk [vmem:[#allocation3] sm:$0xff] %vm841_vm8, %v839_v31  ;;  %vm889_vm14 = vcmp.lt.s32.totalorder (%p861_p9), %v881_v34, %v883_v51 }
 0x62f   : > { %v890_v53 = vsel (%p861_p9), %vm889_vm14, %v881_v34, %v883_v51 }
 0x630   : > { %v837_v47 = vpop.permute.xlu1 %836 }
 0x631   : > { %v840_v48 = vsel %vm828_vm7, %v2578_v43, %v837_v47  ;;  %v882_v43 = vsel (%p861_p9), %vm874_vm10, %v2605_v49, 2147483647 }
 0x632   : > { %843 = vst.msk [vmem:[#allocation3 + $0x8] sm:$0xff] %vm841_vm8, %v840_v48  ;;  %vm891_vm15 = vcmp.lt.s32.totalorder (%p861_p9), %v882_v43, %v884_v52 }
 0x633   : > { %v892_v54 = vsel %vm891_vm15, %v882_v43, %v884_v52 }
 0x634   : > { %vm893_vm3 = vcmp.lt.s32.totalorder %v890_v53, %v892_v54 }
 0x635   : > { %v894_v60 = vsel %vm893_vm3, %v890_v53, %v892_v54 }
 0x636   : > { %v896_v61 = vshra.s32 %v894_v60, 16  ;;  %v895_v4 = vand.u32 65535, %v894_v60 }
 0x638   : > { %v898_v0 = vcvt.s32.f32 %v896_v61  ;;  %v897_v5 = vcvt.s32.f32 %v895_v4 }
 0x63a   : > { %899 = vmin.xlane.f32.xlu0 %v898_v0 }
 0x63e   : > { %919 = vmin.xlane.f32.xlu0 %v918_v3 }
 0x6c7   : > { %v900_v7 = vpop.xlane.xlu0 %899 }
 0x6c8   : > { %vm901_vm8 = vcmp.eq.f32.partialorder %v898_v0, %v900_v7  ;;  %v906_v18 = vcvt.f32.s32 %v900_v7 }
 0x6c9   : > { %v902_v10 = vsel %vm901_vm8, %v897_v5, inf }
 0x6ca   : > { %903 = vmin.xlane.f32.xlu1 %v902_v10  ;;  %v907_v23 = vshll.u32 %v906_v18, 16 }
 0x6cb   : > { %v920_v14 = vpop.xlane.xlu0 %919 }
 0x6cc   : > { %vm921_vm9 = vcmp.eq.f32.partialorder %v918_v3, %v920_v14  ;;  %v926_v19 = vcvt.f32.s32 %v920_v14 }
 0x6cd   : > { %v922_v15 = vsel %vm921_vm9, %v917_v11, inf }
 0x6ce   : > { %923 = vmin.xlane.f32.xlu1 %v922_v15  ;;  %v927_v26 = vshll.u32 %v926_v19, 16 }
 0x757   : > { %v904_v20 = vpop.xlane.xlu1 %903 }
 0x758   : > { %v905_v24 = vcvt.f32.s32 %v904_v20 }
 0x75a   : > { %v2637_v25 = vadd.s32 %v907_v23, %v905_v24 }
 0x75b   : > { %v924_v27 = vpop.xlane.xlu1 %923 }
 0x75c   : > { %v925_v35 = vcvt.f32.s32 %v924_v27  ;;  %vm929_vm10 = vcmp.eq.s32.totalorder %v2595_v46, %v2637_v25  ;;  %vm930_vm11 = vcmp.eq.s32.totalorder %v2605_v49, %v2637_v25  ;;  %vm931_vm12 = vcmp.eq.s32.totalorder %v2608_v59, %v2637_v25 }
 0x75d   : > { %vm932_vm13 = vcmp.eq.s32.totalorder %v2611_v50, %v2637_v25  ;;  %v2648_v36 = vsel %vm929_vm10, -inf, %v2532_v8  ;;  %v2651_v30 = vsel %vm930_vm11, -inf, %v2536_v12  ;;  %v2654_v37 = vsel %vm931_vm12, -inf, %v2534_v9 }
 0x75e   : > { %v2656_v33 = vadd.s32 %v927_v26, %v925_v35  ;;  %v2659_v38 = vsel %vm932_vm13, -inf, %v2538_v13  ;;  %v970_v39 = vmax.f32 %v2648_v36, %v2654_v37 }
 0x75f   : > { %v971_v40 = vmax.f32 %v2651_v30, %v2659_v38 }
 0x760   : > { %vm933_vm14 = vcmp.eq.s32.totalorder %v2595_v46, %v2656_v33  ;;  %vm934_vm15 = vcmp.eq.s32.totalorder %v2605_v49, %v2656_v33  ;;  %vm935_vm0 = vcmp.eq.s32.totalorder %v2608_v59, %v2656_v33  ;;  %vm936_vm1 = vcmp.eq.s32.totalorder %v2611_v50, %v2656_v33 }
 0x761   : > { %v972_v8 = vmax.f32 %v970_v39, %v971_v40  ;;  %v2674_v9 = vsel %vm933_vm14, -inf, %v2540_v16  ;;  %v2677_v12 = vsel %vm934_vm15, -inf, %v2546_v21  ;;  %v2680_v13 = vsel %vm935_vm0, -inf, %v2542_v17 }
 0x762   : > { %v2683_v41 = vsel %vm936_vm1, -inf, %v2548_v22  ;;  %v975_v42 = vmax.f32 %v2674_v9, %v2680_v13 }
 0x763   : > { %973 = vmax.xlane.f32.xlu0 %v972_v8  ;;  %v976_v44 = vmax.f32 %v2677_v12, %v2683_v41 }
 0x765   : > { %v977_v45 = vmax.f32 %v975_v42, %v976_v44 }
 0x767   : > { %978 = vmax.xlane.f32.xlu1 %v977_v45 }
 0x7f0   : > { %v2689_v16 = vpop.xlane.xlu0 %973 }
 0x7f1   : > { %vm980_vm2 = vcmp.eq.f32.partialorder %v2648_v36, %v2689_v16  ;;  %vm981_vm3 = vcmp.eq.f32.partialorder %v2651_v30, %v2689_v16  ;;  %vm982_vm4 = vcmp.eq.f32.partialorder %v2654_v37, %v2689_v16  ;;  %vm983_vm5 = vcmp.eq.f32.partialorder %v2659_v38, %v2689_v16 }
 0x7f2   : > { %v988_v17 = vsel %vm980_vm2, %v2595_v46, 2147483647  ;;  %v989_v21 = vsel %vm981_vm3, %v2605_v49, 2147483647  ;;  %v990_v22 = vsel %vm982_vm4, %v2608_v59, 2147483647 }
 0x7f3   : > { %v991_v28 = vsel %vm983_vm5, %v2611_v50, 2147483647  ;;  %vm996_vm6 = vcmp.lt.s32.totalorder %v988_v17, %v990_v22 }
 0x7f4   : > { %v2703_v31 = vpop.xlane.xlu1 %978  ;;  %v997_v47 = vsel %vm996_vm6, %v988_v17, %v990_v22  ;;  %vm998_vm8 = vcmp.lt.s32.totalorder %v989_v21, %v991_v28  ;;  %v2746_v17 = vld [vmem:[#allocation4 + $0x8] sm:$0xff]  ;;  %v2750_v22 = vld [vmem:[#allocation4] sm:$0xff] }
 0x7f5   : > { %v999_v48 = vsel %vm998_vm8, %v989_v21, %v991_v28  ;;  %vm984_vm9 = vcmp.eq.f32.partialorder %v2674_v9, %v2703_v31  ;;  %vm985_vm10 = vcmp.eq.f32.partialorder %v2677_v12, %v2703_v31  ;;  %vm986_vm11 = vcmp.eq.f32.partialorder %v2680_v13, %v2703_v31 }
 0x7f6   : > { %vm1000_vm12 = vcmp.lt.s32.totalorder %v997_v47, %v999_v48  ;;  %vm987_vm13 = vcmp.eq.f32.partialorder %v2683_v41, %v2703_v31  ;;  %v992_v34 = vsel %vm984_vm9, %v2595_v46, 2147483647  ;;  %v993_v43 = vsel %vm985_vm10, %v2605_v49, 2147483647 }
 0x7f7   : > { %v1001_v51 = vsel %vm1000_vm12, %v997_v47, %v999_v48  ;;  %v994_v52 = vsel %vm986_vm11, %v2608_v59, 2147483647  ;;  %v995_v53 = vsel %vm987_vm13, %v2611_v50, 2147483647  ;;  %v2748_v21 = vstv %s1594_s26 }
 0x7f8   : > { %v1003_v54 = vshra.s32 %v1001_v51, 16  ;;  %vm1016_vm14 = vcmp.lt.s32.totalorder %v992_v34, %v994_v52  ;;  %vm1018_vm15 = vcmp.lt.s32.totalorder %v993_v43, %v995_v53  ;;  %v1002_v62 = vand.u32 65535, %v1001_v51 }
 0x7f9   : > { %v1017_v55 = vsel %vm1016_vm14, %v992_v34, %v994_v52  ;;  %v1019_v56 = vsel %vm1018_vm15, %v993_v43, %v995_v53  ;;  %vm949_vm12 = vcmp.gt.f32.partialorder %v2564_v32, %v2746_v17  ;;  %vm948_vm13 = vcmp.gt.f32.partialorder %v2558_v29, %v2750_v22 }
 0x7fa   : > { %v1005_v57 = vcvt.s32.f32 %v1003_v54  ;;  %vm1020_vm0 = vcmp.lt.s32.totalorder %v1017_v55, %v1019_v56  ;;  %v1004_v0 = vcvt.s32.f32 %v1002_v62 }
 0x7fb   : > { %v1021_v58 = vsel %vm1020_vm0, %v1017_v55, %v1019_v56 }
 0x7fc   : > { %1006 = vmin.xlane.f32.xlu0 %v1005_v57  ;;  %v1023_v60 = vshra.s32 %v1021_v58, 16  ;;  %v1022_v1 = vand.u32 65535, %v1021_v58 }
 0x7fe   : > { %v1025_v61 = vcvt.s32.f32 %v1023_v60  ;;  %v1024_v4 = vcvt.s32.f32 %v1022_v1 }
 0x800   : > { %1026 = vmin.xlane.f32.xlu1 %v1025_v61 }
 0x889   : > { %v1007_v63 = vpop.xlane.xlu0 %1006 }
 0x88a   : > { %vm1008_vm1 = vcmp.eq.f32.partialorder %v1005_v57, %v1007_v63  ;;  %v1013_v6 = vcvt.f32.s32 %v1007_v63 }
 0x88b   : > { %v1009_v2 = vsel %vm1008_vm1, %v1004_v0, inf }
 0x88c   : > { %1010 = vmin.xlane.f32.xlu0 %v1009_v2  ;;  %v1014_v11 = vshll.u32 %v1013_v6, 16 }
 0x88d   : > { %v1027_v3 = vpop.xlane.xlu1 %1026 }
 0x88e   : > { %vm1028_vm2 = vcmp.eq.f32.partialorder %v1025_v61, %v1027_v3  ;;  %v1033_v7 = vcvt.f32.s32 %v1027_v3  ;;  %v868_v3 = vld [vmem:[#allocation5 + $0x8] sm:$0xff] }
 0x88f   : > { %v1029_v5 = vsel %vm1028_vm2, %v1024_v4, inf }
 0x890   : > { %1030 = vmin.xlane.f32.xlu1 %v1029_v5  ;;  %v1034_v18 = vshll.u32 %v1033_v7, 16  ;;  %v2179_v5 = vmov 0  }
 0x891   : > { %1808 = vset.pattern.permute.xlu1 %v2179_v5  ;;  %1807 = vset.pattern.permute.xlu0 %v2179_v5 }
 0x919   : > { %v1011_v10 = vpop.xlane.xlu0 %1010 }
 0x91a   : > { %v1012_v14 = vcvt.f32.s32 %v1011_v10 }
 0x91c   : > { %v2717_v15 = vadd.s32 %v1014_v11, %v1012_v14 }
 0x91d   : > { %v1031_v19 = vpop.xlane.xlu1 %1030 }
 0x91e   : > { %v1032_v20 = vcvt.f32.s32 %v1031_v19  ;;  %vm1036_vm3 = vcmp.eq.s32.totalorder %v2595_v46, %v2717_v15  ;;  %vm1037_vm4 = vcmp.eq.s32.totalorder %v2605_v49, %v2717_v15  ;;  %vm1038_vm5 = vcmp.eq.s32.totalorder %v2608_v59, %v2717_v15 }
 0x91f   : > { %vm1039_vm6 = vcmp.eq.s32.totalorder %v2611_v50, %v2717_v15  ;;  %v1044_v23 = vsel %vm1036_vm3, -inf, %v2648_v36  ;;  %v1045_v24 = vsel %vm1037_vm4, -inf, %v2651_v30  ;;  %v1046_v26 = vsel %vm1038_vm5, -inf, %v2654_v37 }
 0x920   : > { %v2730_v27 = vadd.s32 %v1034_v18, %v1032_v20  ;;  %v1047_v35 = vsel %vm1039_vm6, -inf, %v2659_v38  ;;  %v1086_v39 = vmax.f32 %v1044_v23, %v1046_v26 }
 0x921   : > { %v1087_v40 = vmax.f32 %v1045_v24, %v1047_v35 }
 0x922   : > { %vm1040_vm8 = vcmp.eq.s32.totalorder %v2595_v46, %v2730_v27  ;;  %vm1041_vm9 = vcmp.eq.s32.totalorder %v2605_v49, %v2730_v27  ;;  %vm1042_vm10 = vcmp.eq.s32.totalorder %v2608_v59, %v2730_v27  ;;  %vm1043_vm11 = vcmp.eq.s32.totalorder %v2611_v50, %v2730_v27 }
 0x923   : > { %v1088_v36 = vmax.f32 %v1086_v39, %v1087_v40  ;;  %v1048_v30 = vsel %vm1040_vm8, -inf, %v2674_v9  ;;  %v1049_v37 = vsel %vm1041_vm9, -inf, %v2677_v12  ;;  %v1050_v38 = vsel %vm1042_vm10, -inf, %v2680_v13  ;;  %v2765_v13 = vld [vmem:[#allocation5] sm:$0xff] }
 0x924   : > { %v1051_v8 = vsel %vm1043_vm11, -inf, %v2683_v41  ;;  %v1091_v42 = vmax.f32 %v1048_v30, %v1050_v38  ;;  %v2759_v9 = vsel %vm949_vm12, %v2564_v32, %v2746_v17  ;;  %v946_v12 = vadd.s32 %v2748_v21, %v2637_v25 }
 0x925   : > { %1089 = vmax.xlane.f32.xlu0 %v1088_v36  ;;  %v1092_v44 = vmax.f32 %v1049_v37, %v1051_v8  ;;  %v1053_v39 = vadd.s32 %v2730_v27, %v2748_v21 }
 0x926   : > { %v2773_v41 = vsel %vm948_vm13, %v946_v12, %v2765_v13 }
 0x927   : > { %v1093_v45 = vmax.f32 %v1091_v42, %v1092_v44  ;;  %v1052_v44 = vadd.s32 %v2717_v15, %v2748_v21 }
 0x929   : > { %1094 = vmax.xlane.f32.xlu1 %v1093_v45 }
 0x93a   : > { %958 = vrot.lane.b32.xlu1 %v2759_v9, %s2178_s23 }
 0x93e   : > { %964 = vrot.lane.b32.xlu1 %v2773_v41, %s2178_s23 }
 0x9b2   : > { %v2777_v28 = vpop.xlane.xlu0 %1089 }
 0x9b3   : > { %vm1096_vm14 = vcmp.eq.f32.partialorder %v1044_v23, %v2777_v28  ;;  %vm1097_vm15 = vcmp.eq.f32.partialorder %v1045_v24, %v2777_v28  ;;  %vm1098_vm0 = vcmp.eq.f32.partialorder %v1046_v26, %v2777_v28  ;;  %vm1099_vm1 = vcmp.eq.f32.partialorder %v1047_v35, %v2777_v28 }
 0x9b4   : > { %v1104_v25 = vsel %vm1096_vm14, %v2595_v46, 2147483647  ;;  %v1105_v47 = vsel %vm1097_vm15, %v2605_v49, 2147483647  ;;  %v1106_v48 = vsel %vm1098_vm0, %v2608_v59, 2147483647 }
 0x9b5   : > { %v1107_v34 = vsel %vm1099_vm1, %v2611_v50, 2147483647  ;;  %vm1112_vm2 = vcmp.lt.s32.totalorder %v1104_v25, %v1106_v48 }
 0x9b6   : > { %v2787_v43 = vpop.xlane.xlu1 %1094  ;;  %v1113_v51 = vsel %vm1112_vm2, %v1104_v25, %v1106_v48  ;;  %vm1114_vm3 = vcmp.lt.s32.totalorder %v1105_v47, %v1107_v34  ;;  %vm1055_vm2 = vcmp.gt.f32.partialorder %v2703_v31, %v2759_v9 }
 0x9b7   : > { %v1115_v52 = vsel %vm1114_vm3, %v1105_v47, %v1107_v34  ;;  %vm1100_vm4 = vcmp.eq.f32.partialorder %v1048_v30, %v2787_v43  ;;  %vm1101_vm5 = vcmp.eq.f32.partialorder %v1049_v37, %v2787_v43  ;;  %vm1102_vm6 = vcmp.eq.f32.partialorder %v1050_v38, %v2787_v43 }
 0x9b8   : > { %vm1116_vm8 = vcmp.lt.s32.totalorder %v1113_v51, %v1115_v52  ;;  %vm1103_vm9 = vcmp.eq.f32.partialorder %v1051_v8, %v2787_v43  ;;  %v1108_v53 = vsel %vm1100_vm4, %v2595_v46, 2147483647  ;;  %v1109_v54 = vsel %vm1101_vm5, %v2605_v49, 2147483647 }
 0x9b9   : > { %v1117_v55 = vsel %vm1116_vm8, %v1113_v51, %v1115_v52  ;;  %v1110_v56 = vsel %vm1102_vm6, %v2608_v59, 2147483647  ;;  %v1111_v57 = vsel %vm1103_vm9, %v2611_v50, 2147483647  ;;  %v947_v49 = vadd.s32 %v2748_v21, %v2656_v33 }
 0x9ba   : > { %v1119_v58 = vshra.s32 %v1117_v55, 16  ;;  %vm1132_vm10 = vcmp.lt.s32.totalorder %v1108_v53, %v1110_v56  ;;  %vm1134_vm11 = vcmp.lt.s32.totalorder %v1109_v54, %v1111_v57  ;;  %v959_v2 = vpop.permute.xlu1 %958  ;;  %v2819_v33 = vsel %vm948_vm13, %v2558_v29, %v2750_v22 }
 0x9bb   : > { %v1133_v60 = vsel %vm1132_vm10, %v1108_v53, %v1110_v56  ;;  %v1135_v61 = vsel %vm1134_vm11, %v1109_v54, %v1111_v57  ;;  %v2803_v59 = vsel %vm949_vm12, %v2746_v17, %v959_v2  ;;  %v2808_v50 = vsel %vm949_vm12, %v947_v49, %v868_v3 }
 0x9bc   : > { %v1121_v62 = vcvt.s32.f32 %v1119_v58  ;;  %vm1136_vm14 = vcmp.lt.s32.totalorder %v1133_v60, %v1135_v61  ;;  %vm1057_vm15 = vcmp.gt.f32.partialorder %v2703_v31, %v2803_v59  ;;  %v1059_v32 = vsel %vm1055_vm2, %v2703_v31, %v2759_v9 }
 0x9bd   : > { %v1137_v63 = vsel %vm1136_vm14, %v1133_v60, %v1135_v61  ;;  %v1063_v4 = vsel %vm1057_vm15, %v2703_v31, %v2803_v59  ;;  %v1118_v30 = vand.u32 65535, %v1117_v55  ;;  %vm1054_vm5 = vcmp.gt.f32.partialorder %v2689_v16, %v2819_v33 }
 0x9be   : > { %1122 = vmin.xlane.f32.xlu0 %v1121_v62  ;;  %v1139_v0 = vshra.s32 %v1137_v63, 16  ;;  %v965_v6 = vpop.permute.xlu1 %964  ;;  %v1138_v10 = vand.u32 65535, %v1137_v63  ;;  %v1065_v26 = vsel %vm1055_vm2, %v2759_v9, %v1063_v4  ;;  %v1058_v29 = vsel %vm1054_vm5, %v2689_v16, %v2819_v33 }
 0x9bf   : > { %vm1157_vm3 = vcmp.gt.f32.partialorder %v2787_v43, %v1065_v26  ;;  %v1120_v37 = vcvt.s32.f32 %v1118_v30  ;;  %v968_v45 = vsel %vm948_vm13, %v2765_v13, %v965_v6  ;;  %vm1180_vm10 = vcmp.eq.s32.totalorder %v2595_v46, 1 }
 0x9c0   : > { %v1141_v1 = vcvt.s32.f32 %v1139_v0  ;;  %v1140_v18 = vcvt.s32.f32 %v1138_v10  ;;  %v1165_v36 = vsel %vm1157_vm3, %v2787_v43, %v1065_v26  ;;  %v1061_v0 = vsel %vm1055_vm2, %v1053_v39, %v2808_v50 }
 0x9c1   : > { %vm1215_vm11 = vcmask 23552  }
 0x9c2   : > { %1142 = vmin.xlane.f32.xlu1 %v1141_v1 }
 0x9d3   : > { %966 = vrot.lane.b32.xlu1 %v2808_v50, %s2178_s23 }
 0x9d4   : > { %956 = vrot.lane.b32.xlu0 %v2819_v33, %s2178_s23 }
 0x9d7   : > { %1074 = vrot.lane.b32.xlu1 %v1063_v4, %s2178_s23 }
 0xa4b   : > { %v2829_v7 = vpop.xlane.xlu0 %1122 }
 0xa4c   : > { %vm1124_vm4 = vcmp.eq.f32.partialorder %v1121_v62, %v2829_v7  ;;  %v1129_v31 = vcvt.f32.s32 %v2829_v7  ;;  %v1060_v7 = vsel %vm1054_vm5, %v1052_v44, %v2773_v41 }
 0xa4d   : > { %v1125_v38 = vsel %vm1124_vm4, %v1120_v37, inf }
 0xa4f   : > { %v1143_v11 = vpop.xlane.xlu1 %1142  ;;  %v957_v14 = vpop.permute.xlu0 %956 }
 0xa50   : > { %v2835_v19 = vsel %vm948_vm13, %v2750_v22, %v957_v14  ;;  %vm1144_vm0 = vcmp.eq.f32.partialorder %v1141_v1, %v1143_v11  ;;  %vm1154_vm13 = vcmp.gt.f32.partialorder %v2777_v28, %v1058_v29  ;;  %v1149_v54 = vcvt.f32.s32 %v1143_v11 }
 0xa51   : > { %vm1056_vm1 = vcmp.gt.f32.partialorder %v2689_v16, %v2835_v19  ;;  %v1145_v20 = vsel %vm1144_vm0, %v1140_v18, inf  ;;  %v1160_v53 = vsel %vm1154_vm13, %v2777_v28, %v1058_v29 }
 0xa52   : > { %1146 = vmin.xlane.f32.xlu1 %v1145_v20  ;;  %v1062_v23 = vsel %vm1056_vm1, %v2689_v16, %v2835_v19  ;;  %v1066_v12 = vsel %vm1056_vm1, %v1052_v44, %v968_v45  ;;  %v1150_v56 = vshll.u32 %v1149_v54, 16 }
 0xa53   : > { %1072 = vrot.lane.b32.xlu0 %v1062_v23, %s2178_s23  ;;  %v967_v24 = vpop.permute.xlu1 %966  ;;  %v1064_v8 = vsel %vm1054_vm5, %v2819_v33, %v1062_v23 }
 0xa54   : > { %v969_v35 = vsel %vm949_vm12, %v868_v3, %v967_v24  ;;  %vm1155_vm12 = vcmp.gt.f32.partialorder %v2787_v43, %v1059_v32  ;;  %vm1156_vm6 = vcmp.gt.f32.partialorder %v2777_v28, %v1064_v8 }
 0xa55   : > { %v1067_v40 = vsel %vm1057_vm15, %v1053_v39, %v969_v35  ;;  %v1167_v27 = vsel %vm1155_vm12, %v1059_v32, %v1165_v36  ;;  %v1164_v15 = vsel %vm1156_vm6, %v2777_v28, %v1064_v8  ;;  %v1161_v47 = vsel %vm1155_vm12, %v2787_v43, %v1059_v32 }
 0xa56   : > { %v1166_v22 = vsel %vm1154_vm13, %v1058_v29, %v1164_v15  ;;  %v1069_v63 = vsel %vm1055_vm2, %v2808_v50, %v1067_v40  ;;  %v1130_v50 = vshll.u32 %v1129_v31, 16 }
 0xa57   : > { %v1075_v42 = vpop.permute.xlu1 %1074 }
 0xa58   : > { %v1079_v17 = vsel %vm1057_vm15, %v2803_v59, %v1075_v42 }
 0xa59   : > { %vm1159_vm8 = vcmp.gt.f32.partialorder %v2787_v43, %v1079_v17 }
 0xa5a   : > { %v1173_v13 = vsel %vm1159_vm8, %v2787_v43, %v1079_v17  ;;  %v1068_v43 = vsel %vm1054_vm5, %v2773_v41, %v1066_v12 }
 0xa5b   : > { %v1175_v25 = vsel %vm1157_vm3, %v1065_v26, %v1173_v13 }
 0xa63   : > { %1082 = vrot.lane.b32.xlu1 %v1067_v40, %s2178_s23 }
 0xa67   : > { %1188 = vperm.xlu1 %1808, %v1167_v27  }
 0xa72   : > { %1126 = vmin.xlane.f32.xlu0 %v1125_v38 }
 0xa88   : > { %1080 = vrot.lane.b32.xlu0 %v1066_v12, %s2178_s23 }
 0xa8c   : > { %1183 = vperm.xlu0 %1807, %v1166_v22  }
 0xa90   : > { %1198 = vperm.xlu0 %1807, %v1175_v25  }
 0xa94   : > { %1210 = vperm.xlu0 %1807, %v1161_v47  }
 0xac5   : > { %v1073_v48 = vpop.permute.xlu0 %1072 }
 0xac6   : > { %v1078_v34 = vsel %vm1056_vm1, %v2835_v19, %v1073_v48 }
 0xac7   : > { %vm1158_vm9 = vcmp.gt.f32.partialorder %v2777_v28, %v1078_v34 }
 0xac8   : > { %v1172_v51 = vsel %vm1158_vm9, %v2777_v28, %v1078_v34 }
 0xac9   : > { %v1174_v52 = vsel %vm1156_vm6, %v1064_v8, %v1172_v51 }
 0xaca   : > { %1193 = vperm.xlu1 %1808, %v1174_v52  }
 0xace   : > { %1205 = vperm.xlu1 %1808, %v1160_v53  }
 0xadf   : > { %v1147_v55 = vpop.xlane.xlu1 %1146 }
 0xae0   : > { %v1148_v57 = vcvt.f32.s32 %v1147_v55 }
 0xae2   : > { %v1151_v58 = vadd.s32 %v1150_v56, %v1148_v57 }
 0xae3   : > { %v1083_v60 = vpop.permute.xlu1 %1082 }
 0xae4   : > { %v1153_v61 = vadd.s32 %v1151_v58, %v2748_v21  ;;  %v1085_v62 = vsel %vm1057_vm15, %v969_v35, %v1083_v60 }
 0xae6   : > { %v1169_v1 = vsel %vm1157_vm3, %v1153_v61, %v1069_v63  ;;  %v1177_v2 = vsel %vm1159_vm8, %v1153_v61, %v1085_v62  ;;  %v1163_v59 = vsel %vm1155_vm12, %v1153_v61, %v1061_v0 }
 0xae7   : > { %v1171_v49 = vsel %vm1155_vm12, %v1061_v0, %v1169_v1  ;;  %v1179_v3 = vsel %vm1157_vm3, %v1069_v63, %v1177_v2  ;;  %v1189_v41 = vpop.permute.xlu1 %1188 }
 0xae8   : > { %1222 = vperm.xlu0 %1807, %v1171_v49  }
 0xaec   : > { %1228 = vperm.xlu0 %1807, %v1179_v3  }
 0xaf0   : > { %1236 = vperm.xlu0 %1807, %v1163_v59  }
 0xaff   : > { %v1127_v9 = vpop.xlane.xlu0 %1126 }
 0xb00   : > { %v1128_v4 = vcvt.f32.s32 %v1127_v9 }
 0xb02   : > { %v1131_v5 = vadd.s32 %v1130_v50, %v1128_v4 }
 0xb03   : > { %v1081_v6 = vpop.permute.xlu0 %1080 }
 0xb04   : > { %v1152_v10 = vadd.s32 %v1131_v5, %v2748_v21  ;;  %v1084_v11 = vsel %vm1056_vm1, %v968_v45, %v1081_v6 }
 0xb06   : > { %v1168_v14 = vsel %vm1156_vm6, %v1152_v10, %v1068_v43  ;;  %v1176_v21 = vsel %vm1158_vm9, %v1152_v10, %v1084_v11  ;;  %v1162_v16 = vsel %vm1154_vm13, %v1152_v10, %v1060_v7 }
 0xb07   : > { %v1170_v18 = vsel %vm1154_vm13, %v1060_v7, %v1168_v14  ;;  %v1178_v19 = vsel %vm1156_vm6, %v1068_v43, %v1176_v21 }
 0xb08   : > { %1219 = vperm.xlu1 %1808, %v1170_v18  }
 0xb0b   : > { %v1184_v20 = vpop.permute.xlu0 %1183 }
 0xb0c   : > { %1225 = vperm.xlu1 %1808, %v1178_v19  }
 0xb0f   : > { %v1199_v23 = vpop.permute.xlu0 %1198 }
 0xb10   : > { %1233 = vperm.xlu1 %1808, %v1162_v16   ;;  %v1202_v33 = vsel %vm1180_vm10, %v1189_v41, %v1199_v23 }
 0xb13   : > { %v1211_v24 = vpop.permute.xlu0 %1210 }
 0xb14   : > { %v1214_v26 = vsel %vm828_vm7, %v1211_v24, %v1202_v33 }
 0xb15   : > { %1217 = vst.msk [vmem:[#allocation4 + $0x8] sm:$0xff] %vm1215_vm11, %v1214_v26 }
 0xb49   : > { %v1194_v35 = vpop.permute.xlu1 %1193 }
 0xb4a   : > { %v1201_v39 = vsel %vm1180_vm10, %v1184_v20, %v1194_v35 }
 0xb4d   : > { %v1206_v28 = vpop.permute.xlu1 %1205 }
 0xb4e   : > { %v1213_v40 = vsel %vm828_vm7, %v1206_v28, %v1201_v39 }
 0xb4f   : > { %1216 = vst.msk [vmem:[#allocation4] sm:$0xff] %vm1215_vm11, %v1213_v40 }
 0xb67   : > { %v1223_v36 = vpop.permute.xlu0 %1222 }
 0xb6b   : > { %v1229_v32 = vpop.permute.xlu0 %1228 }
 0xb6c   : > { %v1231_v27 = vsel %vm1180_vm10, %v1223_v36, %v1229_v32 }
 0xb6f   : > { %v1237_v30 = vpop.permute.xlu0 %1236 }
 0xb70   : > { %v1239_v37 = vsel %vm828_vm7, %v1237_v30, %v1231_v27 }
 0xb71   : > { %1241 = vst.msk [vmem:[#allocation5 + $0x8] sm:$0xff] %vm1215_vm11, %v1239_v37 }
 0xb87   : > { %v1220_v38 = vpop.permute.xlu1 %1219 }
 0xb8b   : > { %v1226_v8 = vpop.permute.xlu1 %1225 }
 0xb8c   : > { %v1230_v42 = vsel %vm1180_vm10, %v1220_v38, %v1226_v8 }
 0xb8f   : > { %v1234_v44 = vpop.permute.xlu1 %1233 }
 0xb90   : > { %v1238_v45 = vsel %vm828_vm7, %v1234_v44, %v1230_v42 }
 0xb91   : > { %1240 = vst.msk [vmem:[#allocation5] sm:$0xff] %vm1215_vm11, %v1238_v45 }
 0xb92 PF: > { %p1595_p3 = scmp.ne.s32.totalorder %s2147_s30, 3 }
 0xb93   : > { %s2180_s8 = smov (!%p1595_p3), 1   ;;  %s2181_s14 = smov (!%p1595_p3), 2   ;;  %v2182_v15 = vmov (!%p1595_p3), 0   ;;  %v1255_v25 = vld [vmem:[#allocation5 + $0x8] sm:$0xff] (!%p1595_p3)  ;;  %v2184_v47 = vmov (!%p1595_p3), 1   ;;  %v1252_v48 = vld [vmem:[#allocation4] sm:$0xff] (!%p1595_p3) }
 0xb94   : > { %1245 = sbr.rel (%p1595_p3) target bundleno = 3241 (0xca9), region = 88  ;;  %v1246_v17 = vld [vmem:[#allocation3] sm:$0xff] (!%p1595_p3)  ;;  %1809 = vset.pattern.permute.xlu1 (!%p1595_p3), %v2182_v15  ;;  %1810 = vset.pattern.permute.xlu0 (!%p1595_p3), %v2182_v15  ;;  %s2183_s19 = smov (!%p1595_p3), 127   ;;  %v1253_v34 = vld [vmem:[#allocation4 + $0x8] sm:$0xff] (!%p1595_p3)  ;;  %v2185_v19 = vmov (!%p1595_p3), 2   ;;  %vm1284_vm14 = vcmp.eq.s32.totalorder (!%p1595_p3), %v2595_v46, 8 }
 0xb95   : > { %1297 = vrot.lane.b32.xlu0 (!%p1595_p3), %v1246_v17, %s2180_s8  ;;  %1817 = vrcp.f32 (!%p1595_p3), %v1246_v17  ;;  %1335 = vrot.lane.b32.xlu1 (!%p1595_p3), %v1246_v17, %s2181_s14  ;;  %v1256_v51 = vsub.f32 (!%p1595_p3), %v1252_v48, %v1246_v17  ;;  %vm1311_vm15 = vcmp.eq.s32.totalorder (!%p1595_p3), %v2595_v46, 1  ;;  %vm1324_vm0 = vcmp.eq.s32.totalorder (!%p1595_p3), %v2595_v46, 9 }
 0xb96   : > { %vm1355_vm1 = vcmp.eq.s32.totalorder (!%p1595_p3), %v2595_v46, 2  ;;  %vm1368_vm2 = vcmp.eq.s32.totalorder (!%p1595_p3), %v2595_v46, 10 }
 0xb97   : > { %v1258_v53 = vmul.f32 (!%p1595_p3), 1.442695, %v1256_v51 }
 0xb98   : > { %v1247_v12 = vld [vmem:[#allocation3 + $0x8] sm:$0xff] (!%p1595_p3)  ;;  %v1254_v13 = vld [vmem:[#allocation5] sm:$0xff] (!%p1595_p3) }
 0xb99   : > { %1819 = vrcp.f32 (!%p1595_p3), %v1247_v12  ;;  %1299 = vrot.lane.b32.xlu0 (!%p1595_p3), %v1247_v12, %s2180_s8  ;;  %1337 = vrot.lane.b32.xlu1 (!%p1595_p3), %v1247_v12, %s2181_s14  ;;  %v1257_v52 = vsub.f32 (!%p1595_p3), %v1253_v34, %v1247_v12 }
 0xb9a   : > { %1821 = vpow2.f32 (!%p1595_p3), %v1258_v53 }
 0xb9b   : > { %v1260_v54 = vmul.f32 1.442695, %v1257_v52 }
 0xb9d   : > { %1823 = vpow2.f32 %v1260_v54 }
 0xb9f   : > { %v1818_v29 = vpop.eup %1817 }
 0xba0   : > { %1264 = vrot.lane.b32.xlu0 %v1818_v29, %s2183_s19 }
 0xba3   : > { %v1820_v22 = vpop.eup %1819 }
 0xba4   : > { %1266 = vrot.lane.b32.xlu1 %v1820_v22, %s2183_s19  ;;  %1347 = vrot.lane.b32.xlu0 %v1818_v29, %s2180_s8  ;;  %v1822_v3 = vpop.eup %1821 }
 0xba7   : > { %v1824_v59 = vpop.eup %1823 }
 0xba8   : > { %1349 = vrot.lane.b32.xlu1 %v1820_v22, %s2180_s8  ;;  %1290 = vperm.xlu0 %1810, %v1255_v25  }
 0xbac   : > { %1286 = vperm.xlu1 %1809, %v1254_v13  }
 0xbb0   : > { %1811 = vset.pattern.permute.xlu1 %v2184_v47 }
 0xbb1   : > { %1326 = vperm.xlu1 %1811, %v1254_v13  }
 0xbb5   : > { %1330 = vperm.xlu1 %1811, %v1255_v25  }
 0xbb9   : > { %1812 = vset.pattern.permute.xlu1 %v2182_v15 }
 0xc07   : > { %v1298_v55 = vpop.permute.xlu0 %1297  ;;  %v1336_v56 = vpop.permute.xlu1 %1335 }
 0xc08   : > { %v1303_v57 = vsub.f32 %v1252_v48, %v1298_v55  ;;  %v1341_v60 = vsub.f32 %v1252_v48, %v1336_v56 }
 0xc0a   : > { %v1305_v58 = vmul.f32 1.442695, %v1303_v57  ;;  %v1343_v49 = vmul.f32 1.442695, %v1341_v60 }
 0xc0b   : > { %v1300_v61 = vpop.permute.xlu0 %1299  ;;  %v1338_v62 = vpop.permute.xlu1 %1337 }
 0xc0c   : > { %1825 = vpow2.f32 %v1305_v58  ;;  %v1304_v63 = vsub.f32 %v1253_v34, %v1300_v61  ;;  %v1342_v0 = vsub.f32 %v1253_v34, %v1338_v62 }
 0xc0e   : > { %v1307_v1 = vmul.f32 1.442695, %v1304_v63  ;;  %v1345_v2 = vmul.f32 1.442695, %v1342_v0 }
 0xc10   : > { %1827 = vpow2.f32 %v1307_v1 }
 0xc11   : > { %1829 = vpow2.f32 %v1345_v2 }
 0xc12   : > { %v1265_v31 = vpop.permute.xlu0 %1264  ;;  %1831 = vpow2.f32 %v1343_v49 }
 0xc13   : > { %v1270_v50 = vmul.f32 %v1822_v3, %v1265_v31 }
 0xc15   : > { %1274 = vperm.xlu0 %1810, %v1270_v50  }
 0xc16   : > { %v1267_v9 = vpop.permute.xlu1 %1266  ;;  %v1826_v5 = vpop.eup %1825 }
 0xc17   : > { %v1271_v4 = vmul.f32 %v1824_v59, %v1267_v9  ;;  %v1309_v6 = vmul.f32 %v1826_v5, %v1818_v29  ;;  %v1348_v18 = vpop.permute.xlu0 %1347 }
 0xc19   : > { %1279 = vperm.xlu1 %1812, %v1271_v4   ;;  %1814 = vset.pattern.permute.xlu0 %v2184_v47 }
 0xc1a   : > { %v1350_v10 = vpop.permute.xlu1 %1349  ;;  %v1828_v11 = vpop.eup %1827 }
 0xc1b   : > { %v1830_v43 = vpop.eup %1829  ;;  %v1310_v7 = vmul.f32 %v1828_v11, %v1820_v22 }
 0xc1c   : > { %v1354_v14 = vmul.f32 %v1830_v43, %v1350_v10  ;;  %v1832_v21 = vpop.eup %1831 }
 0xc1d   : > { %1813 = vset.pattern.permute.xlu1 %v2184_v47  ;;  %1319 = vperm.xlu0 %1814, %v1310_v7   ;;  %v1353_v20 = vmul.f32 %v1832_v21, %v1348_v18 }
 0xc1e   : > { %1314 = vperm.xlu1 %1813, %v1309_v6  }
 0xc21   : > { %1815 = vset.pattern.permute.xlu0 %v2185_v19 }
 0xc22   : > { %1816 = vset.pattern.permute.xlu1 %v2185_v19  ;;  %1358 = vperm.xlu0 %1815, %v1353_v20  }
 0xc23   : > { %1363 = vperm.xlu1 %1816, %v1354_v14  }
 0xc26   : > { %1374 = vperm.xlu0 %1815, %v1255_v25  }
 0xc27   : > { %1370 = vperm.xlu1 %1816, %v1254_v13   ;;  %v1291_v33 = vpop.permute.xlu0 %1290 }
 0xc2b   : > { %v1287_v23 = vpop.permute.xlu1 %1286 }
 0xc30   : > { %v1327_v16 = vpop.permute.xlu1 %1326 }
 0xc34   : > { %v1331_v41 = vpop.permute.xlu1 %1330 }
 0xc94   : > { %v1275_v26 = vpop.permute.xlu0 %1274 }
 0xc95   : > { %v1282_v35 = vsel %vm828_vm7, %v1275_v26, 0.0 }
 0xc96   : > { %v1293_v36 = vsel %vm1284_vm14, %v1287_v23, %v1282_v35 }
 0xc98   : > { %v1280_v24 = vpop.permute.xlu1 %1279 }
 0xc99   : > { %v1283_v28 = vsel %vm828_vm7, %v1280_v24, 0.0 }
 0xc9a   : > { %v1294_v32 = vsel %vm1284_vm14, %v1291_v33, %v1283_v28 }
 0xc9c   : > { %v1320_v40 = vpop.permute.xlu0 %1319 }
 0xc9d   : > { %v1315_v39 = vpop.permute.xlu1 %1314  ;;  %v1323_v30 = vsel %vm1311_vm15, %v1320_v40, %v1294_v32 }
 0xc9e   : > { %v1322_v27 = vsel %vm1311_vm15, %v1315_v39, %v1293_v36  ;;  %v1334_v42 = vsel %vm1324_vm0, %v1331_v41, %v1323_v30 }
 0xc9f   : > { %v1333_v8 = vsel %vm1324_vm0, %v1327_v16, %v1322_v27 }
 0xca1   : > { %v1359_v38 = vpop.permute.xlu0 %1358 }
 0xca2   : > { %v1364_v37 = vpop.permute.xlu1 %1363  ;;  %v1366_v44 = vsel %vm1355_vm1, %v1359_v38, %v1333_v8 }
 0xca3   : > { %v1367_v12 = vsel %vm1355_vm1, %v1364_v37, %v1334_v42 }
 0xca5   : > { %v1375_v15 = vpop.permute.xlu0 %1374 }
 0xca6   : > { %v1371_v45 = vpop.permute.xlu1 %1370  ;;  %v1378_v29 = vsel %vm1368_vm2, %v1375_v15, %v1367_v12 }
 0xca7   : > { %v1377_v17 = vsel %vm1368_vm2, %v1371_v45, %v1366_v44  ;;  %1380 = vst [vmem:[#allocation19 + $0x8] sm:$0xff] %v1378_v29 }
 0xca8   : > { %1379 = vst [vmem:[#allocation19] sm:$0xff] %v1377_v17 }
 0xca9 PF: > { %p1683_p7 = scmp.eq.s32.totalorder %s2264_s11, 3  ;;  %s2186_s30 = smov [#allocation18]  }
 0xcaa   : > { %s1390_s18 = sshll.u32 %s2186_s30, 4  ;;  %s1391_s18 = int_to_ptr.vmem [resolvable:$true] %s1390_s18 }
 0xcab   : > { %s2033_s3 = scalar_lea.vmem %s1391_s18, 256  ;;  %p2040_p10 = scmp.lt.s32.totalorder %s1391_s18, %s1391_s18 }
 0xcac   : > { %p2034_p5 = scmp.ne.s32.totalorder %s1391_s18, %s2033_s3  ;;  %p2041_p11 = scmp.lt.s32.totalorder %s2033_s3, %s2033_s3 }
 0xcae   : > { %p2035_p12 = pnand %p2034_p5, %p1683_p7  ;;  %p2042_p13 = por %p2041_p11, %p2040_p10 }
 0xcb0   : > { %p2036_p4 = pneg %p2035_p12 }
 0xcb2   : > { %p2043_p2 = pnand %p2042_p13, %p2036_p4 }
 0xcb4   : > { %2046 = shalt.err (!%p2043_p2)
}
 0xcb5   : > { %s2047_s24 = scalar_lea.hbm %s3073_s7, 256 }
 0xcb6   : > { %p2048_p6 = scmp.ne.s32.totalorder %s3073_s7, %s2047_s24  ;;  %p2053_p1 = scmp.lt.u32.totalorder %s2047_s24, %s3073_s7 }
 0xcb8   : > { %p2049_p0 = pnand %p2048_p6, %p1683_p7 }
 0xcba   : > { %p2050_p8 = pneg %p2049_p0 }
 0xcbc   : > { %p2055_p9 = pnand %p2053_p1, %p2050_p8 }
 0xcbe   : > { %2058 = shalt.err (!%p2055_p9)
}
 0xcbf   : > { %s2187_s17 = smov 128   ;;  %s2188_s15 = smov 8  }
 0xcc0   : > { %1642 = dma.vmem_to_hbm [thread:$0]  (%p1683_p7), %s1391_s18, 256, %s3073_s7, [#allocation8], %s2187_s17, %s2187_s17, %s2188_s15  }
 0xcc1   : > { %s2189_s12 = smov [#allocation19]  }
 0xcc2   : > { %s1406_s16 = sshll.u32 %s2189_s12, 4  ;;  %s1407_s16 = int_to_ptr.vmem [resolvable:$true] %s1406_s16 }
 0xcc3   : > { %s2059_s26 = scalar_lea.vmem %s1407_s16, 256  ;;  %p2066_p4 = scmp.lt.s32.totalorder %s1407_s16, %s1407_s16 }
 0xcc4   : > { %p2060_p3 = scmp.ne.s32.totalorder %s1407_s16, %s2059_s26  ;;  %p2067_p10 = scmp.lt.s32.totalorder %s2059_s26, %s2059_s26 }
 0xcc6   : > { %p2061_p5 = pnand %p2060_p3, %p1683_p7  ;;  %p2068_p11 = por %p2067_p10, %p2066_p4 }
 0xcc8   : > { %p2062_p12 = pneg %p2061_p5 }
 0xcca   : > { %p2069_p13 = pnand %p2068_p11, %p2062_p12 }
 0xccc   : > { %2072 = shalt.err (!%p2069_p13)
}
 0xccd   : > { %s3113_s14 = sld [smem:[#allocation32_spill]] }
 0xcd3   : > { %s2073_s19 = scalar_lea.hbm %s3113_s14, 256 }
 0xcd4   : > { %p2074_p2 = scmp.ne.s32.totalorder %s3113_s14, %s2073_s19  ;;  %p2079_p8 = scmp.lt.u32.totalorder %s2073_s19, %s3113_s14 }
 0xcd6   : > { %p2075_p6 = pnand %p2074_p2, %p1683_p7 }
 0xcd8   : > { %p2076_p0 = pneg %p2075_p6 }
 0xcda   : > { %p2081_p1 = pnand %p2079_p8, %p2076_p0 }
 0xcdc   : > { %2084 = shalt.err (!%p2081_p1)
}
 0xcdd   : > { %1644 = dma.vmem_to_hbm [thread:$0]  (%p1683_p7), %s1407_s16, 256, %s3113_s14, [#allocation20], %s2187_s17, %s2187_s17, %s2188_s15  }
 0xcde   : > { %2126 = dma.done.wait (%p1683_p7), [#allocation8], 256  }
 0xcdf   : > { %2128 = vsyncadd (%p1683_p7), [#allocation8], 4294967040 }
 0xce0   : > { %2130 = dma.done.wait (%p1683_p7), [#allocation20], 256  }
 0xce1   : > { %2132 = vsyncadd (%p1683_p7), [#allocation20], 4294967040 }
 0xce2 PF: > { %s27_s10 = sadd.s32 1, %s2155_s10   ;;  %s3114_s13 = sld [smem:[#allocation28_spill]] }
 0xce3   : > { %p24_p9 = scmp.ge.s32.totalorder %s27_s10, 6   ;;  %s3115_s22 = sld [smem:[#allocation27_spill]] }
 0xce4   : > { %s3116_s27 = smov %s2139_s28  ;;  %s3117_s28 = smov %s2143_s29 }
 0xce5   : > { %s3119_s30 = smov %s2151_s9  ;;  %26 = sbr.rel (!%p24_p9) target bundleno = 14 (0xe), region = 140 }
 0xce8   : > { %s3118_s29 = smov %s3114_s13 }
 0xce9   : > { %s3120_s9 = smov %s3115_s22 }
 0xcec   :  { %1426 = vsyncpa [#allocation7], 1 }
 0xced   :  { %1428 = vsyncpa [#allocation7 + $0x1], 1 }
 0xcee   :  { %1429 = vsyncpa [#allocation10], 1 }
 0xcef   :  { %1430 = vsyncpa [#allocation13], 1 }
 0xcf0   :  { %1431 = vsyncpa [#allocation16], 1 }
 0xcf1   :  { %1433 = vsyncpa [#allocation16 + $0x1], 1 }
 0xcf2   :  { %1434 = vsyncpa [#allocation8], 1 }
 0xcf3   :  { %1436 = vsyncpa [#allocation8 + $0x1], 1 }
 0xcf4   :  { %1437 = vsyncpa [#allocation20], 1 }

</bundles_post_ra>
